<compile_context>
chip_gen: v6e
topology: v6e:2x2x1
jax: 0.10.0
libtpu: 0.0.40
codegen_flags: <defaults>
</compile_context>

<pallas_src>
from functools import partial

import numpy as np
import jax
import jax.numpy as jnp
from jax import lax
from jax.experimental import pallas as pl
from jax.experimental.pallas import tpu as pltpu

_LANE = 128
_SUBLANE = 8
_CHUNK = 512  # in-kernel column chunk = output rows produced per inner step


def _round_up(x, m):
    return ((x + m - 1) // m) * m


def _make_frequencies(num_freqs, logspace, include_pi):
    if logspace:
        freqs = 2.0 ** np.arange(num_freqs, dtype=np.float32)
    else:
        freqs = np.linspace(1.0, 2.0 ** (num_freqs - 1), num_freqs,
                            dtype=np.float32)
    if include_pi:
        freqs = (freqs * np.pi).astype(np.float32)
    return freqs  # (num_freqs,) f32


def _build_row_tables(input_dim, num_freqs, include_input, freqs):
    """Per-output-row weight (over input features) and phase tables.

    Output column r is:
        r < n_pass                     : x[..., r]                       (passthrough)
        n_pass <= r < n_pass + D*F     : sin(freq[f] * x[..., i])
        n_pass + D*F <= r < out_dim    : cos(freq[f] * x[..., i]) = sin(. + pi/2)
    Encoded as  out_r = select(r < n_pass, lin_r, sin(lin_r + B_r)),
    with lin_r = sum_i W[r, i] * x_i  (W one-hot * freq -> exact f32 on the VPU).
    """
    n_pass = input_dim if include_input else 0
    out_dim = input_dim * (2 * num_freqs + (1 if include_input else 0))
    rows = _round_up(out_dim, _SUBLANE)           # pad so the in-kernel transpose is aligned
    w = np.zeros((rows, input_dim), np.float32)
    b = np.zeros((rows, 1), np.float32)
    for i in range(input_dim):
        if include_input:
            w[i, i] = 1.0
        for f in range(num_freqs):
            w[n_pass + i * num_freqs + f, i] = freqs[f]                      # sin rows
            r_cos = n_pass + input_dim * num_freqs + i * num_freqs + f
            w[r_cos, i] = freqs[f]                                           # cos rows
            b[r_cos, 0] = np.float32(np.pi / 2.0)
    return out_dim, n_pass, jnp.asarray(w), jnp.asarray(b)


def _fourier_kernel(w_ref, b_ref, x_ref, o_ref, *, n_pass, chunk):
    # w_ref : (R, D)  f32 VMEM, resident — one-hot(feature) * frequency per output row
    # b_ref : (R, 1)  f32 VMEM, resident — phase offset (0 sin rows, pi/2 cos rows)
    # x_ref : (D, TN)      VMEM — input features, lane-major (rows on lanes)
    # o_ref : (TN, OUT)    VMEM — row-major output block (module's [..., out_dim] layout)
    rows = w_ref.shape[0]
    input_dim = w_ref.shape[1]
    tn, out_dim = o_ref.shape

    w = w_ref[...]                                   # (R, D)
    b = b_ref[...]                                   # (R, 1)
    if n_pass:
        row_id = lax.broadcasted_iota(jnp.int32, (rows, 1), 0)
        pass_mask = row_id < n_pass                  # passthrough rows keep lin as-is

    @pl.loop(0, tn // chunk)
    def _(j):
        base = pl.multiple_of(j * chunk, chunk)
        # Lane-dense (D, C) feature slab; math is f32 even for bf16 inputs.
        x = x_ref[:, pl.ds(base, chunk)].astype(jnp.float32)
        # lin[r, :] = W[r, feat(r)] * x[feat(r), :]  — D-term broadcast-multiply sum
        # (exact f32: W is one-hot * freq).  D is tiny, unrolled.
        lin = x[0:1, :] * w[:, 0:1]
        for i in range(1, input_dim):
            lin = lin + x[i:i + 1, :] * w[:, i:i + 1]          # (R, C)
        emb = jnp.sin(lin + b)                                  # sin rows; cos = sin(.+pi/2)
        slab = jnp.where(pass_mask, lin, emb) if n_pass else emb
        # One aligned XLU transpose (R multiple of 8, C multiple of 128) and a
        # single store per chunk; padded rows [out_dim, R) are sliced off after
        # the transpose.  The last grid block's tail lanes are garbage but only
        # feed sin() and are masked by Pallas on the HBM writeback.
        o_ref[pl.ds(base, chunk), :] = slab.T[:, :out_dim].astype(o_ref.dtype)


def fourier_embed(x, *, num_freqs=6, logspace=True, include_input=True,
                  include_pi=True, tile_n=16384, out_dtype=None):
    """Pallas implementation of FourierEmbedder.forward.  x: [..., input_dim]."""
    input_dim = x.shape[-1]
    if num_freqs == 0:
        return x
    out_dtype = x.dtype if out_dtype is None else jnp.dtype(out_dtype)

    freqs = _make_frequencies(num_freqs, logspace, include_pi)
    out_dim, n_pass, w, b = _build_row_tables(input_dim, num_freqs,
                                              include_input, freqs)

    lead_shape = x.shape[:-1]
    n_rows = int(np.prod(lead_shape, dtype=np.int64))
    if n_rows == 0:
        return jnp.zeros((*lead_shape, out_dim), dtype=out_dtype)

    # Lane-major input view so sin() runs lane-dense.  The input is ~1/13 of
    # the HBM traffic, so this small transpose is cheap.
    # TODO(synk): move this into the kernel / a fused consumer to also drop the
    # extra launch for small point clouds.
    x_t = x.reshape(n_rows, input_dim).T                       # (D, N)

    # Row tile: multiple of the in-kernel chunk, big enough to amortize the
    # ~0.35us per-grid-step overhead, capped so large inputs get >= 2 grid
    # steps (v7x: two TensorCores split the "parallel" axis).
    tn_req = max(_CHUNK, (int(tile_n) // _CHUNK) * _CHUNK)
    half = _round_up(pl.cdiv(n_rows, 2), _CHUNK)
    tn = min(tn_req, max(8 * _CHUNK, half), _round_up(n_rows, _CHUNK))
    grid = (pl.cdiv(n_rows, tn),)                              # ragged tail masked by Pallas

    # Double-buffered VMEM need (output block lane-pads out_dim -> 128):
    vmem_need = 2 * (tn * _LANE * jnp.dtype(out_dtype).itemsize
                     + _SUBLANE * tn * x.dtype.itemsize) + (2 << 20)
    vmem_limit = max(32 << 20, int(vmem_need))   # safe on v5e/v6e/v7x

    kernel = partial(_fourier_kernel, n_pass=n_pass, chunk=_CHUNK)

    out = pl.pallas_call(
        kernel,
        out_shape=jax.ShapeDtypeStruct((n_rows, out_dim), out_dtype),
        grid_spec=pltpu.PrefetchScalarGridSpec(
            num_scalar_prefetch=0,
            grid=grid,
            in_specs=[
                pl.BlockSpec(w.shape, lambda i: (0, 0)),           # row weights (resident)
                pl.BlockSpec(b.shape, lambda i: (0, 0)),           # row phases  (resident)
                pl.BlockSpec((input_dim, tn), lambda i: (0, i)),   # x column tile
            ],
            out_specs=pl.BlockSpec((tn, out_dim), lambda i: (i, 0)),
        ),
        compiler_params=pltpu.CompilerParams(
            dimension_semantics=("parallel",),
            vmem_limit_bytes=vmem_limit),
    )(w, b, x_t)

    return out.reshape(*lead_shape, out_dim)


def fourier_embed_ref(x, *, num_freqs=6, logspace=True, include_input=True,
                      include_pi=True):
    """Pure-JAX reference (mirrors the PyTorch forward)."""
    if num_freqs == 0:
        return x
    freqs = jnp.asarray(_make_frequencies(num_freqs, logspace, include_pi)).astype(x.dtype)
    embed = (x[..., None] * freqs).reshape(*x.shape[:-1], -1)
    if include_input:
        return jnp.concatenate((x, jnp.sin(embed), jnp.cos(embed)), axis=-1)
    return jnp.concatenate((jnp.sin(embed), jnp.cos(embed)), axis=-1)


if __name__ == "__main__":
    # Point-cloud-like input: [batch=2, points=300, input_dim=3]
    # (600 flattened rows -> ragged tile, exercises the masked writeback).
    x = jax.random.normal(jax.random.PRNGKey(0), (2, 300, 3), dtype=jnp.float32)
    out = jax.block_until_ready(fourier_embed(x, num_freqs=6, logspace=True,
                                              include_input=True, include_pi=True))
    ref = fourier_embed_ref(x, num_freqs=6, logspace=True,
                            include_input=True, include_pi=True)
    assert out.shape == (2, 300, 3 * (6 * 2 + 1)), out.shape
    assert jnp.allclose(out, ref, atol=1e-3, rtol=1e-3), \
        float(jnp.max(jnp.abs(out - ref)))

    # Alternate config: linear frequencies, no input passthrough, no pi.
    x2 = jax.random.normal(jax.random.PRNGKey(1), (130, 3), dtype=jnp.float32)
    out2 = jax.block_until_ready(fourier_embed(x2, num_freqs=4, logspace=False,
                                               include_input=False, include_pi=False))
    ref2 = fourier_embed_ref(x2, num_freqs=4, logspace=False,
                             include_input=False, include_pi=False)
    assert out2.shape == (130, 3 * 8), out2.shape
    assert jnp.allclose(out2, ref2, atol=1e-3, rtol=1e-3), \
        float(jnp.max(jnp.abs(out2 - ref2)))

    print("KERNEL_OK")
</pallas_src>

<mosaic_0001>
module attributes {stable_mosaic.version = 11 : i64} {
  func.func @_fourier_kernel(%arg0: i32, %arg1: memref<40x3xf32, #tpu.memory_space<vmem>>, %arg2: memref<40x1xf32, #tpu.memory_space<vmem>>, %arg3: memref<3x1024xf32, #tpu.memory_space<vmem>>, %arg4: memref<1024x39xf32, #tpu.memory_space<vmem>>) attributes {dimension_semantics = [#tpu.dimension_semantics<parallel>], iteration_bounds = array<i64: 1>, scalar_prefetch = 0 : i64, scratch_operands = 0 : i64, tpu.core_type = #tpu.core_type<tc>, window_params = [{pipeline_mode = #tpu.pipeline_mode<synchronous>, transform_indices = @transform_0, window_bounds = array<i64: 40, 3>}, {pipeline_mode = #tpu.pipeline_mode<synchronous>, transform_indices = @transform_1, window_bounds = array<i64: 40, 1>}, {transform_indices = @transform_2, window_bounds = array<i64: 3, 1024>}, {transform_indices = @transform_3, window_bounds = array<i64: 1024, 39>}]} {
    %c0 = arith.constant 0 : index
    %c0_0 = arith.constant 0 : index
    %0 = vector.load %arg1[%c0, %c0_0] : memref<40x3xf32, #tpu.memory_space<vmem>>, vector<40x3xf32>
    %c0_1 = arith.constant 0 : index
    %c0_2 = arith.constant 0 : index
    %1 = vector.load %arg2[%c0_1, %c0_2] : memref<40x1xf32, #tpu.memory_space<vmem>>, vector<40x1xf32>
    %2 = tpu.iota {dimensions = array<i32: 0>} : vector<40x1xi32>
    %c3_i32 = arith.constant 3 : i32
    %3 = vector.broadcast %c3_i32 : i32 to vector<40x1xi32>
    %4 = arith.cmpi slt, %2, %3 : vector<40x1xi32>
    %c0_i32 = arith.constant 0 : i32
    %c2_i32 = arith.constant 2 : i32
    %5 = arith.addi %c0_i32, %c2_i32 : i32
    %c1_i32 = arith.constant 1 : i32
    scf.for %arg5 = %c0_i32 to %5 step %c1_i32  : i32 {
      %c1_i32_4 = arith.constant 1 : i32
      %6 = arith.muli %arg5, %c1_i32_4 : i32
      %c0_i32_5 = arith.constant 0 : i32
      %7 = arith.addi %c0_i32_5, %6 : i32
      %c512_i32 = arith.constant 512 : i32
      %8 = arith.muli %7, %c512_i32 : i32
      %9 = tpu.assume_multiple %8, 512 : i32
      %c0_6 = arith.constant 0 : index
      %10 = arith.index_cast %9 : i32 to index
      %11 = vector.load %arg3[%c0_6, %10] : memref<3x1024xf32, #tpu.memory_space<vmem>>, vector<3x512xf32>
      %12 = vector.extract_strided_slice %11 {offsets = [0, 0], sizes = [1, 512], strides = [1, 1]} : vector<3x512xf32> to vector<1x512xf32>
      %13 = vector.extract_strided_slice %0 {offsets = [0, 0], sizes = [40, 1], strides = [1, 1]} : vector<40x3xf32> to vector<40x1xf32>
      %14 = vector.broadcast %12 : vector<1x512xf32> to vector<40x512xf32>
      %15 = vector.broadcast %13 : vector<40x1xf32> to vector<40x512xf32>
      %16 = arith.mulf %14, %15 : vector<40x512xf32>
      %17 = vector.extract_strided_slice %11 {offsets = [1, 0], sizes = [1, 512], strides = [1, 1]} : vector<3x512xf32> to vector<1x512xf32>
      %18 = vector.extract_strided_slice %0 {offsets = [0, 1], sizes = [40, 1], strides = [1, 1]} : vector<40x3xf32> to vector<40x1xf32>
      %19 = vector.broadcast %17 : vector<1x512xf32> to vector<40x512xf32>
      %20 = vector.broadcast %18 : vector<40x1xf32> to vector<40x512xf32>
      %21 = arith.mulf %19, %20 : vector<40x512xf32>
      %22 = arith.addf %16, %21 : vector<40x512xf32>
      %23 = vector.extract_strided_slice %11 {offsets = [2, 0], sizes = [1, 512], strides = [1, 1]} : vector<3x512xf32> to vector<1x512xf32>
      %24 = vector.extract_strided_slice %0 {offsets = [0, 2], sizes = [40, 1], strides = [1, 1]} : vector<40x3xf32> to vector<40x1xf32>
      %25 = vector.broadcast %23 : vector<1x512xf32> to vector<40x512xf32>
      %26 = vector.broadcast %24 : vector<40x1xf32> to vector<40x512xf32>
      %27 = arith.mulf %25, %26 : vector<40x512xf32>
      %28 = arith.addf %22, %27 : vector<40x512xf32>
      %29 = vector.broadcast %1 : vector<40x1xf32> to vector<40x512xf32>
      %30 = arith.addf %28, %29 : vector<40x512xf32>
      %31 = math.sin %30 : vector<40x512xf32>
      %32 = vector.shape_cast %4 : vector<40x1xi1> to vector<40x1xi1>
      %33 = vector.broadcast %32 : vector<40x1xi1> to vector<40x512xi1>
      %34 = arith.select %33, %28, %31 : vector<40x512xi1>, vector<40x512xf32>
      %35 = tpu.transpose %34, [1, 0] : vector<40x512xf32> -> vector<512x40xf32>
      %36 = vector.extract_strided_slice %35 {offsets = [0, 0], sizes = [512, 39], strides = [1, 1]} : vector<512x40xf32> to vector<512x39xf32>
      %37 = arith.index_cast %9 : i32 to index
      %c0_7 = arith.constant 0 : index
      %38 = vector.load %arg4[%37, %c0_7] : memref<1024x39xf32, #tpu.memory_space<vmem>>, vector<512x39xf32>
      tpu.vector_store %arg4[%37, %c0_7], %36 {strides = array<i32>} : memref<1024x39xf32, #tpu.memory_space<vmem>>, vector<512x39xf32>,
    }
    %c2_i32_3 = arith.constant 2 : i32
    return
  }
  func.func @transform_0(%arg0: i32) -> (i32, i32) {
    %c0_i32 = arith.constant 0 : i32
    %c0_i32_0 = arith.constant 0 : i32
    %c0_i32_1 = arith.constant 0 : i32
    return %c0_i32, %c0_i32_0 : i32, i32
  }
  func.func @transform_1(%arg0: i32) -> (i32, i32) {
    %c0_i32 = arith.constant 0 : i32
    %c0_i32_0 = arith.constant 0 : i32
    %c0_i32_1 = arith.constant 0 : i32
    return %c0_i32, %c0_i32_0 : i32, i32
  }
  func.func @transform_2(%arg0: i32) -> (i32, i32) {
    %c0_i32 = arith.constant 0 : i32
    %c0_i32_0 = arith.constant 0 : i32
    return %c0_i32, %arg0 : i32, i32
  }
  func.func @transform_3(%arg0: i32) -> (i32, i32) {
    %c0_i32 = arith.constant 0 : i32
    %c0_i32_0 = arith.constant 0 : i32
    return %arg0, %c0_i32 : i32, i32
  }
}

</mosaic_0001>

<bundles_post_ra>
// kernel: tpu_custom_call.1
= control target key start
LH: loop header
LB: loop body
LE: loop exit
PB: predicated region body
PF: predicated region fallthrough
CT: control target
= control target key end

     0   :  { %v24_v3 = vlaneseq  ;;  %s3379_s4 = smov 0   ;;  %s6261_s0 = inlined_call_operand.vmem [shape: f32[40,3], index: 0, kind: input, shape index: {}]   ;;  %s6262_s1 = inlined_call_operand.vmem [shape: f32[40,1], index: 1, kind: input, shape index: {}]   ;;  %s6263_s2 = inlined_call_operand.vmem [shape: f32[3,600], index: 2, kind: input, shape index: {}]   ;;  %s6264_s3 = inlined_call_operand.vmem [shape: f32[600,39], index: 3, kind: output, shape index: {}]  }
   0x1   :  { %v3329_v0 = vld [vmem:[%s6261_s0] sm:$0xff]  ;;  %v3334_v1 = vld [vmem:[%s6261_s0 + $0x8] sm:$0xff]  ;;  %v3339_v2 = vld [vmem:[%s6261_s0 + $0x10] sm:$0xff] }
   0x2   :  { %6323 = vst [vmem:[#allocation3_spill] sm:$0xff] %v3329_v0  ;;  %6324 = vst [vmem:[#allocation4_spill] sm:$0xff] %v3334_v1  ;;  %v3344_v4 = vld [vmem:[%s6261_s0 + $0x18] sm:$0xff]  ;;  %v3349_v5 = vld [vmem:[%s6261_s0 + $0x20] sm:$0xff]  ;;  %v3371_v10 = vshrl.u32 %v24_v3, 7 }
   0x3   :  { %6325 = vst [vmem:[#allocation5_spill] sm:$0xff] %v3339_v2  ;;  %6326 = vst [vmem:[#allocation6_spill] sm:$0xff] %v3344_v4  ;;  %v3354_v6 = vld [vmem:[%s6262_s1] sm:$0xff]  ;;  %v3359_v7 = vld [vmem:[%s6262_s1 + $0x8] sm:$0xff] }
   0x4   :  { %6327 = vst [vmem:[#allocation7_spill] sm:$0xff] %v3349_v5  ;;  %6328 = vst [vmem:[#allocation8_spill] sm:$0xff] %v3354_v6  ;;  %v3364_v8 = vld [vmem:[%s6262_s1 + $0x10] sm:$0xff]  ;;  %v3369_v9 = vld [vmem:[%s6262_s1 + $0x18] sm:$0xff]  ;;  %vm30_vm0 = vcmp.lt.s32.totalorder %v3371_v10, 3 }
   0x5   :  { %6329 = vst [vmem:[#allocation9_spill] sm:$0xff] %v3359_v7  ;;  %6330 = vst [vmem:[#allocation10_spill] sm:$0xff] %v3364_v8  ;;  %v3376_v11 = vld [vmem:[%s6262_s1 + $0x20] sm:$0xff] }
   0x6   :  { %6331 = vst [vmem:[#allocation11_spill] sm:$0xff] %v3369_v9  ;;  %6332 = vst [vmem:[#allocation12_spill] sm:$0xff] %v3371_v10 }
   0x7   :  { %6333 = vst [vmem:[#allocation13_spill] sm:$0xff] %v3376_v11 }
   0x8 LB: > { %v3297_v12 = vmov 2   ;;  %v3298_v13 = vmov 1   ;;  %s3018_s1 = sshll.u32 %s3295_s4, 9  ;;  %v3299_v18 = vmov 0   ;;  %s40_s4 = sadd.s32 1, %s3295_s4   ;;  %s3295_s4 = sphi %s3379_s4, %s40_s4  }
   0x9   : > { %v6338_v1 = vld [vmem:[#allocation4_spill] sm:$0xff]  ;;  %v6339_v0 = vld [vmem:[#allocation3_spill] sm:$0xff]  ;;  %3199 = vset.pattern.permute.xlu1 %v3297_v12  ;;  %3198 = vset.pattern.permute.xlu0 %v3298_v13  ;;  %s42_s5 = sshra.s32 %s3018_s1, 7  ;;  %s5845_s10 = scalar_lea.vmem [#allocation2], %s3018_s1 }
   0xa   : > { %v6336_v4 = vld [vmem:[#allocation6_spill] sm:$0xff]  ;;  %v6337_v2 = vld [vmem:[#allocation5_spill] sm:$0xff]  ;;  %264 = vperm.xlu1 %3199, %v6339_v0   ;;  %168 = vperm.xlu0 %3198, %v6339_v0   ;;  %s3019_s6 = sshll.u32 %s42_s5, 2  ;;  %p37_p0 = scmp.ge.s32.totalorder %s40_s4, 2  }
   0xb   : > { %v6335_v5 = vld [vmem:[#allocation7_spill] sm:$0xff]  ;;  %s3398_s9 = scalar_lea.vmem %s6263_s2, %s3019_s6  ;;  %v6342_v6 = vld [vmem:[#allocation8_spill] sm:$0xff] }
   0xc   : > { %v47_v19 = vld [vmem:[%s3398_s9 + $0x8] sm:$0x77]  ;;  %v6343_v7 = vld [vmem:[#allocation9_spill] sm:$0xff]  ;;  %v6345_v8 = vld [vmem:[#allocation10_spill] sm:$0xff] }
   0xd   : > { %v6334_v10 = vld [vmem:[#allocation12_spill] sm:$0xff]  ;;  %v6344_v9 = vld [vmem:[#allocation11_spill] sm:$0xff] }
   0xe   : > { %v133_v14 = vsub.s32 1, %v6334_v10  ;;  %v137_v15 = vsub.s32 5, %v6334_v10  ;;  %v3392_v16 = vsub.s32 0, %v6334_v10  ;;  %v56_v17 = vsub.s32 4, %v6334_v10  ;;  %180 = vperm.xlu0 %3198, %v6336_v4   ;;  %3200 = vset.pattern.permute.xlu1 %v3299_v18  ;;  %v6346_v11 = vld [vmem:[#allocation13_spill] sm:$0xff] }
   0xf   : > { %93 = vperm.xlu1 %3200, %v6338_v1   ;;  %v3404_v22 = vsub.s32 2, %v6334_v10  ;;  %v233_v23 = vsub.s32 6, %v6334_v10  ;;  %v3446_v34 = vld [vmem:[%s3398_s9] sm:$0x77] }
  0x10   : > { %v142_v20 = vrot.slane %v47_v19, %v133_v14  ;;  %v146_v21 = vrot.slane %v47_v19, %v137_v15  ;;  %v61_v24 = vrot.slane %v47_v19, %v3392_v16  ;;  %v65_v25 = vrot.slane %v47_v19, %v56_v17 }
  0x11   : > { %v238_v30 = vrot.slane %v47_v19, %v3404_v22  ;;  %v242_v31 = vrot.slane %v47_v19, %v233_v23  ;;  %v134_v35 = vrot.slane %v3446_v34, %v133_v14  ;;  %v138_v36 = vrot.slane %v3446_v34, %v137_v15 }
  0x12   : > { %v3410_v26 = vrot.slane %v142_v20, %v133_v14  ;;  %v3412_v27 = vrot.slane %v146_v21, %v133_v14  ;;  %184 = vperm.xlu0 %3198, %v6335_v5   ;;  %v3416_v28 = vrot.slane %v61_v24, %v3392_v16  ;;  %v3419_v29 = vrot.slane %v65_v25, %v3392_v16 }
  0x13   : > { %3201 = vset.pattern.permute.xlu1 %v3298_v13  ;;  %v3426_v32 = vrot.slane %v238_v30, %v3404_v22  ;;  %v3429_v33 = vrot.slane %v242_v31, %v3404_v22  ;;  %v3462_v41 = vrot.slane %v134_v35, %v133_v14  ;;  %v3464_v42 = vrot.slane %v138_v36, %v133_v14 }
  0x14   : > { %172 = vperm.xlu1 %3201, %v6338_v1   ;;  %v53_v59 = vrot.slane %v3446_v34, %v3392_v16  ;;  %v57_v60 = vrot.slane %v3446_v34, %v56_v17 }
  0x15   : > { %6340 = vst [vmem:[#allocation14_spill] sm:$0xff] %v3426_v32  ;;  %6341 = vst [vmem:[#allocation15_spill] sm:$0xff] %v3429_v33 }
  0x16   : > { %3206 = vset.pattern.permute.xlu0 %v3299_v18  ;;  %v3509_v17 = vrot.slane %v53_v59, %v3392_v16  ;;  %v77_v19 = vrot.slane %v57_v60, %v3392_v16  ;;  %v234_v59 = vrot.slane %v3446_v34, %v233_v23 }
  0x17   : > { %88 = vperm.xlu0 %3206, %v6339_v0  }
  0x18   : > { %176 = vperm.xlu1 %3201, %v6337_v2   ;;  %v254_v23 = vrot.slane %v234_v59, %v3404_v22 }
  0x1b   : > { %98 = vperm.xlu0 %3206, %v6337_v2  }
  0x1c   : > { %3202 = vset.pattern.permute.xlu1 %v3297_v12 }
  0x1d   : > { %268 = vperm.xlu1 %3202, %v6338_v1  }
  0x1f   : > { %325 = vperm.xlu0 %3206, %v6342_v6  }
  0x21   : > { %3203 = vset.pattern.permute.xlu1 %v3299_v18 }
  0x22   : > { %103 = vperm.xlu1 %3203, %v6336_v4  }
  0x23   : > { %330 = vperm.xlu0 %3206, %v6343_v7   ;;  %v6282_v7 = vmov 2475754826  }
  0x26   : > { %3204 = vset.pattern.permute.xlu1 %v3297_v12 }
  0x27   : > { %272 = vperm.xlu1 %3204, %v6337_v2   ;;  %340 = vperm.xlu0 %3206, %v6344_v9  }
  0x2b   : > { %3205 = vset.pattern.permute.xlu1 %v3299_v18 }
  0x2c   : > { %108 = vperm.xlu1 %3205, %v6335_v5  }
  0x30   : > { %3207 = vset.pattern.permute.xlu1 %v3297_v12 }
  0x31   : > { %276 = vperm.xlu1 %3207, %v6336_v4  }
  0x35   : > { %280 = vperm.xlu1 %3207, %v6335_v5  }
  0x39   : > { %3208 = vset.pattern.permute.xlu1 %v3299_v18 }
  0x3a   : > { %335 = vperm.xlu1 %3208, %v6345_v8  }
  0x3e   : > { %345 = vperm.xlu1 %3208, %v6346_v11  }
  0x85   : > { %v3450_v37 = vpop.permute.xlu1 %264  ;;  %v3452_v38 = vpop.permute.xlu0 %168 }
  0x86   : > { %6347 = vst [vmem:[#allocation16_spill] sm:$0xff] %v3450_v37  ;;  %v3456_v39 = vmul.f32 %v3452_v38, %v3410_v26  ;;  %v3460_v40 = vmul.f32 %v3452_v38, %v3412_v27 }
  0x88   : > { %6348 = vst [vmem:[#allocation17_spill] sm:$0xff] %v3456_v39  ;;  %6349 = vst [vmem:[#allocation18_spill] sm:$0xff] %v3460_v40 }
  0x89   : > { %v181_v43 = vpop.permute.xlu0 %180 }
  0x8a   : > { %v199_v44 = vmul.f32 %v181_v43, %v3462_v41  ;;  %v200_v45 = vmul.f32 %v181_v43, %v3464_v42  ;;  %v201_v46 = vmul.f32 %v181_v43, %v3410_v26  ;;  %v202_v47 = vmul.f32 %v181_v43, %v3412_v27  ;;  %v3470_v48 = vpop.permute.xlu1 %93 }
  0x8b   : > { %v117_v49 = vmul.f32 %v3470_v48, %v3416_v28  ;;  %v118_v50 = vmul.f32 %v3470_v48, %v3419_v29 }
  0x8d   : > { %v185_v51 = vpop.permute.xlu0 %184 }
  0x8e   : > { %v3477_v52 = vmul.f32 %v185_v51, %v3462_v41  ;;  %v3480_v53 = vmul.f32 %v185_v51, %v3464_v42  ;;  %v3483_v54 = vmul.f32 %v185_v51, %v3410_v26  ;;  %v3486_v55 = vmul.f32 %v185_v51, %v3412_v27 }
  0x8f   : > { %v173_v56 = vpop.permute.xlu1 %172 }
  0x90   : > { %v193_v57 = vmul.f32 %v173_v56, %v3410_v26  ;;  %v194_v58 = vmul.f32 %v173_v56, %v3412_v27 }
  0x92   : > { %v213_v61 = vadd.f32 %v193_v57, %v117_v49  ;;  %v214_v62 = vadd.f32 %v194_v58, %v118_v50  ;;  %v3495_v63 = vpop.permute.xlu0 %88  ;;  %v230_v58 = vrot.slane %v3446_v34, %v3404_v22 }
  0x93   : > { %v3499_v3 = vmul.f32 %v3495_v63, %v3416_v28  ;;  %v3503_v12 = vmul.f32 %v3495_v63, %v3419_v29  ;;  %v177_v13 = vpop.permute.xlu1 %176 }
  0x94   : > { %v195_v14 = vmul.f32 %v177_v13, %v3462_v41  ;;  %v197_v15 = vmul.f32 %v177_v13, %v3410_v26  ;;  %v198_v18 = vmul.f32 %v177_v13, %v3412_v27  ;;  %v196_v20 = vmul.f32 %v177_v13, %v3464_v42 }
  0x95   : > { %6350 = vst [vmem:[#allocation19_spill] sm:$0xff] %v3499_v3  ;;  %6351 = vst [vmem:[#allocation20_spill] sm:$0xff] %v3503_v12 }
  0x96   : > { %v99_v21 = vpop.permute.xlu0 %98 }
  0x97   : > { %v119_v24 = vmul.f32 %v99_v21, %v3509_v17  ;;  %v120_v25 = vmul.f32 %v99_v21, %v77_v19  ;;  %v121_v30 = vmul.f32 %v99_v21, %v3416_v28  ;;  %v122_v31 = vmul.f32 %v99_v21, %v3419_v29 }
  0x98   : > { %v269_v35 = vpop.permute.xlu1 %268 }
  0x99   : > { %v215_v36 = vadd.f32 %v195_v14, %v119_v24  ;;  %v216_v26 = vadd.f32 %v196_v20, %v120_v25  ;;  %v217_v43 = vadd.f32 %v197_v15, %v121_v30  ;;  %v218_v27 = vadd.f32 %v198_v18, %v122_v31 }
  0x9a   : > { %v289_v49 = vmul.f32 %v269_v35, %v3426_v32  ;;  %v290_v50 = vmul.f32 %v269_v35, %v3429_v33  ;;  %v3518_v16 = vpop.permute.xlu0 %325  ;;  %v3533_v31 = vrot.slane %v230_v58, %v3404_v22 }
  0x9b   : > { %6352 = vst [vmem:[#allocation21_spill] sm:$0xff] %v3518_v16 }
  0x9c   : > { %v309_v51 = vadd.f32 %v289_v49, %v213_v61  ;;  %v310_v57 = vadd.f32 %v290_v50, %v214_v62 }
  0x9d   : > { %v104_v60 = vpop.permute.xlu1 %103 }
  0x9e   : > { %v123_v13 = vmul.f32 %v104_v60, %v3509_v17  ;;  %v124_v14 = vmul.f32 %v104_v60, %v77_v19  ;;  %v125_v15 = vmul.f32 %v104_v60, %v3416_v28  ;;  %v126_v18 = vmul.f32 %v104_v60, %v3419_v29  ;;  %v331_v20 = vpop.permute.xlu0 %330 }
  0x9f   : > { %v3528_v21 = vadd.f32 %v331_v20, %v309_v51  ;;  %v3530_v61 = vadd.f32 %v331_v20, %v310_v57 }
  0xa0   : > { %v219_v62 = vadd.f32 %v199_v44, %v123_v13  ;;  %v220_v24 = vadd.f32 %v200_v45, %v124_v14  ;;  %v221_v25 = vadd.f32 %v201_v46, %v125_v15  ;;  %v222_v30 = vadd.f32 %v202_v47, %v126_v18 }
  0xa1   : > { %6353 = vst [vmem:[#allocation22_spill] sm:$0xff] %v3528_v21  ;;  %6354 = vst [vmem:[#allocation23_spill] sm:$0xff] %v3530_v61  ;;  %v191_v46 = vmul.f32 %v173_v56, %v3462_v41  ;;  %v192_v47 = vmul.f32 %v173_v56, %v3464_v42  ;;  %v188_v56 = vmul.f32 %v3452_v38, %v3464_v42 }
  0xa2   : > { %v273_v34 = vpop.permute.xlu1 %272 }
  0xa3   : > { %v291_v49 = vmul.f32 %v273_v34, %v3533_v31  ;;  %v292_v50 = vmul.f32 %v273_v34, %v254_v23  ;;  %v293_v60 = vmul.f32 %v273_v34, %v3426_v32  ;;  %v294_v51 = vmul.f32 %v273_v34, %v3429_v33 }
  0xa5   : > { %v3539_v0 = vadd.f32 %v291_v49, %v215_v36  ;;  %v3541_v57 = vadd.f32 %v292_v50, %v216_v26  ;;  %v313_v44 = vadd.f32 %v293_v60, %v217_v43  ;;  %v314_v45 = vadd.f32 %v294_v51, %v218_v27 }
  0xa6   : > { %v115_v36 = vmul.f32 %v3470_v48, %v3509_v17  ;;  %v116_v26 = vmul.f32 %v3470_v48, %v77_v19  ;;  %v287_v43 = vmul.f32 %v269_v35, %v3533_v31  ;;  %v288_v27 = vmul.f32 %v269_v35, %v254_v23 }
  0xa7   : > { %v109_v58 = vpop.permute.xlu1 %108  ;;  %v112_v49 = vmul.f32 %v3495_v63, %v77_v19 }
  0xa8   : > { %v127_v22 = vmul.f32 %v109_v58, %v3509_v17  ;;  %v128_v59 = vmul.f32 %v109_v58, %v77_v19  ;;  %v129_v13 = vmul.f32 %v109_v58, %v3416_v28  ;;  %v130_v14 = vmul.f32 %v109_v58, %v3419_v29 }
  0xa9   : > { %v211_v15 = vadd.f32 %v191_v46, %v115_v36  ;;  %v212_v18 = vadd.f32 %v192_v47, %v116_v26  ;;  %v208_v26 = vadd.f32 %v188_v56, %v112_v49  ;;  %v995_v56 = vand.u32 2139095040, %v3528_v21 }
  0xaa   : > { %v223_v28 = vadd.f32 %v3477_v52, %v127_v22  ;;  %v224_v29 = vadd.f32 %v3480_v53, %v128_v59  ;;  %v225_v51 = vadd.f32 %v3483_v54, %v129_v13  ;;  %v226_v48 = vadd.f32 %v3486_v55, %v130_v14 }
  0xab   : > { %v307_v50 = vadd.f32 %v287_v43, %v211_v15  ;;  %v308_v60 = vadd.f32 %v288_v27, %v212_v18  ;;  %v1099_v49 = vand.u32 2139095040, %v3530_v61  ;;  %v6367_v21 = vmov 683565275  }
  0xac   : > { %v277_v34 = vpop.permute.xlu1 %276 }
  0xad   : > { %v295_v35 = vmul.f32 %v277_v34, %v3533_v31  ;;  %v296_v46 = vmul.f32 %v277_v34, %v254_v23  ;;  %v297_v47 = vmul.f32 %v277_v34, %v3426_v32  ;;  %v298_v58 = vmul.f32 %v277_v34, %v3429_v33 }
  0xae   : > { %v3562_v42 = vadd.f32 %v331_v20, %v307_v50  ;;  %v3564_v19 = vadd.f32 %v331_v20, %v308_v60 }
  0xaf   : > { %v315_v22 = vadd.f32 %v295_v35, %v219_v62  ;;  %v316_v53 = vadd.f32 %v296_v46, %v220_v24  ;;  %v317_v59 = vadd.f32 %v297_v47, %v221_v25  ;;  %v318_v36 = vadd.f32 %v298_v58, %v222_v30 }
  0xb0   : > { %v281_v52 = vpop.permute.xlu1 %280  ;;  %v787_v62 = vand.u32 2139095040, %v3562_v42  ;;  %v284_v25 = vmul.f32 %v3450_v37, %v254_v23  ;;  %v891_v30 = vand.u32 2139095040, %v3564_v19  ;;  %v111_v35 = vmul.f32 %v3495_v63, %v3509_v17 }
  0xb1   : > { %v299_v54 = vmul.f32 %v281_v52, %v3533_v31  ;;  %v300_v13 = vmul.f32 %v281_v52, %v254_v23  ;;  %v301_v55 = vmul.f32 %v281_v52, %v3426_v32  ;;  %v302_v14 = vmul.f32 %v281_v52, %v3429_v33  ;;  %v341_v52 = vpop.permute.xlu0 %340 }
  0xb2   : > { %v892_v60 = vshrl.u32 %v891_v30, 23  ;;  %v1100_v23 = vshrl.u32 %v1099_v49, 23 }
  0xb3   : > { %v3569_v43 = vadd.f32 %v299_v54, %v223_v28  ;;  %v3571_v27 = vadd.f32 %v300_v13, %v224_v29  ;;  %v3573_v15 = vadd.f32 %v301_v55, %v225_v51  ;;  %v3575_v20 = vadd.f32 %v302_v14, %v226_v48 }
  0xb4   : > { %v3586_v28 = vadd.f32 %v284_v25, %v208_v26  ;;  %v788_v29 = vshrl.u32 %v787_v62, 23  ;;  %v996_v51 = vshrl.u32 %v995_v56, 23  ;;  %v3040_v46 = vadd.s32 4294967169, %v892_v60 }
  0xb5   : > { %6355 = vst [vmem:[#allocation24_spill] sm:$0xff] %v3573_v15  ;;  %6356 = vst [vmem:[#allocation25_spill] sm:$0xff] %v3575_v20  ;;  %v336_v24 = vpop.permute.xlu1 %335  ;;  %v3048_v58 = vadd.s32 4294967169, %v1100_v23  ;;  %v3597_v13 = vadd.f32 %v341_v52, %v315_v22  ;;  %v3599_v26 = vadd.f32 %v341_v52, %v316_v53  ;;  %v3607_v22 = vadd.f32 %v341_v52, %v318_v36 }
  0xb6   : > { %v3580_v18 = vadd.f32 %v336_v24, %v313_v44  ;;  %v3582_v34 = vadd.f32 %v336_v24, %v314_v45  ;;  %v3590_v50 = vadd.f32 %v3518_v16, %v3586_v28  ;;  %v3036_v48 = vadd.s32 4294967169, %v788_v29 }
  0xb7   : > { %v187_v45 = vmul.f32 %v3452_v38, %v3462_v41  ;;  %v3044_v47 = vadd.s32 4294967169, %v996_v51  ;;  %v898_v14 = vadd.s32 1, %v3040_v46  ;;  %v1106_v30 = vadd.s32 1, %v3048_v58  ;;  %6359 = vst [vmem:[#allocation28_spill] sm:$0xff] %v3607_v22 }
  0xb8   : > { %6357 = vst [vmem:[#allocation26_spill] sm:$0xff] %v3580_v18  ;;  %6358 = vst [vmem:[#allocation27_spill] sm:$0xff] %v3582_v34  ;;  %v475_v44 = vand.u32 2139095040, %v3590_v50  ;;  %v794_v54 = vadd.s32 1, %v3036_v48  ;;  %v283_v38 = vmul.f32 %v3450_v37, %v3533_v31  ;;  %v1619_v41 = vand.u32 2139095040, %v3597_v13 }
  0xb9   : > { %v207_v62 = vadd.f32 %v187_v45, %v111_v35  ;;  %v1002_v25 = vadd.s32 1, %v3044_v47  ;;  %vm899_vm2 = vcmp.gt.s32.totalorder %v898_v14, 0  ;;  %v1723_v17 = vand.u32 2139095040, %v3599_v26 }
  0xba   : > { %v476_v55 = vshrl.u32 %v475_v44, 23  ;;  %vm795_vm1 = vcmp.gt.s32.totalorder %v794_v54, 0  ;;  %vm1107_vm4 = vcmp.gt.s32.totalorder %v1106_v30, 0  ;;  %v6266_v53 = vand.u32 2147483647, %v3590_v50 }
  0xbb   : > { %v3605_v56 = vadd.f32 %v283_v38, %v207_v62  ;;  %vm1003_vm3 = vcmp.gt.s32.totalorder %v1002_v25, 0  ;;  %v796_v49 = vsel %vm795_vm1, %v794_v54, 0  ;;  %v3611_v29 = vadd.f32 %v336_v24, %v3539_v0 }
  0xbc   : > { %v3024_v63 = vadd.s32 4294967169, %v476_v55  ;;  %v3614_v31 = vadd.f32 %v336_v24, %v3541_v57  ;;  %v900_v60 = vsel %vm899_vm2, %v898_v14, 0  ;;  %v1620_v51 = vshrl.u32 %v1619_v41, 23 }
  0xbd   : > { %v3618_v48 = vadd.f32 %v3518_v16, %v3605_v56  ;;  %v1004_v44 = vsel %vm1003_vm3, %v1002_v25, 0  ;;  %v1108_v45 = vsel %vm1107_vm4, %v1106_v30, 0  ;;  %v3620_v36 = vadd.f32 %v341_v52, %v317_v59 }
  0xbe   : > { %v482_v23 = vadd.s32 1, %v3024_v63  ;;  %v1724_v35 = vshrl.u32 %v1723_v17, 23  ;;  %v3622_v46 = vand.u32 31, %v796_v49  ;;  %v1931_v0 = vand.u32 2139095040, %v3607_v22 }
  0xbf   : > { %6360 = vst [vmem:[#allocation29_spill] sm:$0xff] %v3620_v36  ;;  %v479_v57 = vand.u32 8388607, %v6266_v53  ;;  %v3627_v24 = vand.u32 31, %v900_v60  ;;  %v1203_v47 = vand.u32 2139095040, %v3611_v29  ;;  %v1307_v58 = vand.u32 2139095040, %v3614_v31 }
  0xc0   : > { %vm483_vm5 = vcmp.gt.s32.totalorder %v482_v23, 0  ;;  %v3631_v55 = vand.u32 31, %v1004_v44  ;;  %v3633_v59 = vand.u32 31, %v1108_v45  ;;  %v3068_v52 = vadd.s32 4294967169, %v1620_v51 }
  0xc1   : > { %v484_v54 = vsel %vm483_vm5, %v482_v23, 0  ;;  %v3635_v62 = vshrl.u32 %v796_v49, 5  ;;  %v3637_v25 = vshrl.u32 %v900_v60, 5  ;;  %v3072_v30 = vadd.s32 4294967169, %v1724_v35 }
  0xc2   : > { %6361 = vst [vmem:[#allocation30_spill] sm:$0xff] %v3631_v55  ;;  %6362 = vst [vmem:[#allocation31_spill] sm:$0xff] %v3633_v59  ;;  %v486_v14 = vand.u32 31, %v484_v54  ;;  %v1827_v38 = vand.u32 2139095040, %v3620_v36  ;;  %v3640_v41 = vshrl.u32 %v1004_v44, 5  ;;  %v3642_v63 = vshrl.u32 %v1108_v45, 5 }
  0xc3   : > { %v1932_v17 = vshrl.u32 %v1931_v0, 23  ;;  %v3645_v23 = vsub.s32 32, %v3622_v46  ;;  %v1204_v1 = vshrl.u32 %v1203_v47, 23  ;;  %v1308_v2 = vshrl.u32 %v1307_v58, 23 }
  0xc4   : > { %6363 = vst [vmem:[#allocation32_spill] sm:$0xff] %v3640_v41  ;;  %6364 = vst [vmem:[#allocation33_spill] sm:$0xff] %v3642_v63  ;;  %v487_v53 = vsub.s32 32, %v486_v14  ;;  %v371_v51 = vand.u32 2139095040, %v3618_v48  ;;  %v3649_v49 = vsub.s32 32, %v3627_v24  ;;  %v3652_v60 = vsub.s32 32, %v3631_v55 }
  0xc5   : > { %v3655_v44 = vsub.s32 32, %v3633_v59  ;;  %v3657_v45 = vadd.s32 1, %v3068_v52  ;;  %v3659_v35 = vadd.s32 1, %v3072_v30  ;;  %v1828_v0 = vshrl.u32 %v1827_v38, 23 }
  0xc6   : > { %6365 = vst [vmem:[#allocation34_spill] sm:$0xff] %v3652_v60  ;;  %v480_v4 = vor.u32 8388608, %v479_v57  ;;  %v3080_v58 = vadd.s32 4294967169, %v1932_v17  ;;  %v1411_v5 = vand.u32 2139095040, %v3580_v18  ;;  %v1515_v6 = vand.u32 2139095040, %v3582_v34 }
  0xc7   : > { %6366 = vst [vmem:[#allocation35_spill] sm:$0xff] %v3655_v44  ;;  %v490_v8 = vshrl.u32 %v6282_v7, %v487_v53  ;;  %v3052_v9 = vadd.s32 4294967169, %v1204_v1  ;;  %v3056_v11 = vadd.s32 4294967169, %v1308_v2  ;;  %v6279_v36 = vmov 683565275  }
  0xc8   : > { %v489_v52 = vshll.u32 %v6279_v36, %v486_v14  ;;  %v372_v22 = vshrl.u32 %v371_v51, 23  ;;  %vm1627_vm6 = vcmp.gt.s32.totalorder %v3657_v45, 0  ;;  %v485_v30 = vshrl.u32 %v484_v54, 5 }
  0xc9   : > { %v492_v57 = vshll.u32 %v6282_v7, %v486_v14  ;;  %v6289_v38 = vmov 2131351028   ;;  %vm1731_vm7 = vcmp.gt.s32.totalorder %v3659_v35, 0  ;;  %v6294_v34 = vmov 2102212464  }
  0xca   : > { %v493_v17 = vshrl.u32 %v6289_v38, %v487_v53  ;;  %v495_v47 = vshll.u32 %v6289_v38, %v486_v14  ;;  %v491_v18 = vor.u32 %v490_v8, %v489_v52  ;;  %v496_v1 = vshrl.u32 %v6294_v34, %v487_v53 }
  0xcb   : > { %v498_v2 = vshll.u32 %v6294_v34, %v486_v14  ;;  %v6299_v36 = vmov 920167782   ;;  %v6301_v7 = vmov 1326507024   ;;  %v520_v60 = vshll.u32 %v480_v4, 8 }
  0xcc   : > { %v499_v51 = vshrl.u32 %v6299_v36, %v487_v53  ;;  %v494_v41 = vor.u32 %v493_v17, %v492_v57  ;;  %v501_v54 = vshll.u32 %v6299_v36, %v486_v14  ;;  %v502_v55 = vshrl.u32 %v6301_v7, %v487_v53 }
  0xcd   : > { %v488_v38 = vshrl.u32 %v6367_v21, %v487_v53  ;;  %v497_v63 = vor.u32 %v496_v1, %v495_v47  ;;  %v3020_v8 = vadd.s32 4294967169, %v372_v22  ;;  %vm504_vm8 = vcmp.lt.s32.totalorder %v485_v30, 1 }
  0xce   : > { %v500_v59 = vor.u32 %v499_v51, %v498_v2  ;;  %v503_v52 = vor.u32 %v502_v55, %v501_v54  ;;  %vm506_vm9 = vcmp.lt.s32.totalorder %v485_v30, 3  ;;  %vm507_vm10 = vcmp.lt.s32.totalorder %v485_v30, 4 }
  0xcf   : > { %v509_v34 = vsel %vm507_vm10, %v497_v63, 2102212464  ;;  %v512_v44 = vsel %vm504_vm8, %v491_v18, %v494_v41  ;;  %v516_v20 = vsel %vm504_vm8, %v494_v41, %v497_v63  ;;  %vm505_vm11 = vcmp.lt.s32.totalorder %v485_v30, 2 }
  0xd0   : > { %v513_v61 = vsel %vm507_vm10, %v500_v59, 920167782  ;;  %v508_v57 = vsel %vm504_vm8, %v488_v38, %v491_v18  ;;  %v517_v17 = vsel %vm507_vm10, %v503_v52, 1326507024  ;;  %v510_v36 = vsel %vm506_vm9, %v494_v41, %v509_v34 }
  0xd1   : > { %v514_v14 = vsel %vm506_vm9, %v497_v63, %v513_v61  ;;  %v518_v7 = vsel %vm506_vm9, %v500_v59, %v517_v17  ;;  %v378_v53 = vadd.s32 1, %v3020_v8  ;;  %v1210_v47 = vadd.s32 1, %v3052_v9 }
  0xd2   : > { %v515_v4 = vsel %vm505_vm11, %v512_v44, %v514_v14  ;;  %v519_v22 = vsel %vm505_vm11, %v516_v20, %v518_v7  ;;  %v3683_v2 = vadd.s32 1, %v3056_v11  ;;  %v3688_v61 = vadd.s32 4294967169, %v1828_v0 }
  0xd3   : > { %v3679_v55 = vmul.u32.u64.low %v520_v60, %v515_v4  ;;  %v3680_v1 = vmul.u32.u64.high %v520_v60, %v515_v4, %v3679_v55  ;;  %v3685_v51 = vmul.u32.u64.low %v520_v60, %v519_v22  ;;  %v3686_v54 = vmul.u32.u64.high %v520_v60, %v519_v22, %v3685_v51 }
  0xd4   : > { %vm379_vm12 = vcmp.gt.s32.totalorder %v378_v53, 0  ;;  %6368 = vst [vmem:[#allocation36_spill] sm:$0xff] %v3688_v61  ;;  %v3690_v18 = vshrl.u32 %v1411_v5, 23  ;;  %v511_v34 = vsel %vm505_vm11, %v508_v57, %v510_v36  ;;  %v3696_v7 = vsel %vm1627_vm6, %v3657_v45, 0 }
  0xd5   : > { %v380_v59 = vsel %vm379_vm12, %v378_v53, 0  ;;  %v3698_v9 = vadd.s32 1, %v3080_v58  ;;  %v3700_v11 = vshrl.u32 %v1515_v6, 23  ;;  %v3705_v41 = vsel %vm1731_vm7, %v3659_v35, 0 }
  0xd6   : > { %6369 = vst [vmem:[#allocation37_spill] sm:$0xff] %v3690_v18  ;;  %v382_v20 = vand.u32 31, %v380_v59  ;;  %vm1211_vm13 = vcmp.gt.s32.totalorder %v1210_v47, 0  ;;  %v530_v5 = vadd.s32 1, %v3680_v1  ;;  %v6372_v36 = vand.u32 2147483647, %v3618_v48 }
  0xd7   : > { %6370 = vst [vmem:[#allocation38_spill] sm:$0xff] %v3698_v9  ;;  %6371 = vst [vmem:[#allocation39_spill] sm:$0xff] %v3700_v11  ;;  %vm1315_vm14 = vcmp.gt.s32.totalorder %v3683_v2, 0  ;;  %v527_v44 = vmul.u32 %v520_v60, %v511_v34  ;;  %vm529_vm15 = vc.u32 %v3686_v54, %v3679_v55  ;;  %v381_v6 = vshrl.u32 %v380_v59, 5 }
  0xd8   : > { %v375_v63 = vand.u32 8388607, %v6372_v36  ;;  %v383_v45 = vsub.s32 32, %v382_v20  ;;  %v531_v0 = vsel %vm529_vm15, %v530_v5, %v3680_v1  ;;  %v385_v58 = vshll.u32 %v6367_v21, %v382_v20 }
  0xd9   : > { %v6373_v35 = vmov 2475754826   ;;  %v6374_v38 = vmov 2131351028   ;;  %v532_v52 = vadd.s32 %v531_v0, %v527_v44  ;;  %v6375_v17 = vmov 2102212464  }
  0xda   : > { %v388_v30 = vshll.u32 %v6373_v35, %v382_v20  ;;  %v391_v8 = vshll.u32 %v6374_v38, %v382_v20  ;;  %v386_v57 = vshrl.u32 %v6373_v35, %v383_v45  ;;  %v389_v14 = vshrl.u32 %v6374_v38, %v383_v45 }
  0xdb   : > { %v394_v60 = vshll.u32 %v6375_v17, %v382_v20  ;;  %v392_v4 = vshrl.u32 %v6375_v17, %v383_v45  ;;  %v6376_v53 = vmov 920167782   ;;  %v6377_v1 = vmov 1326507024  }
  0xdc   : > { %v395_v22 = vshrl.u32 %v6376_v53, %v383_v45  ;;  %v397_v51 = vshll.u32 %v6376_v53, %v382_v20  ;;  %v398_v34 = vshrl.u32 %v6377_v1, %v383_v45  ;;  %v3725_v59 = vsel %vm1211_vm13, %v1210_v47, 0 }
  0xdd   : > { %v533_v5 = vadd.s32 536870912, %v532_v52  ;;  %v387_v36 = vor.u32 %v386_v57, %v385_v58  ;;  %v390_v44 = vor.u32 %v389_v14, %v388_v30  ;;  %v376_v0 = vor.u32 8388608, %v375_v63  ;;  %v3736_v14 = vpop.permute.xlu1 %345 }
  0xde   : > { %v393_v32 = vor.u32 %v392_v4, %v391_v8  ;;  %v396_v16 = vor.u32 %v395_v22, %v394_v60  ;;  %v399_v15 = vor.u32 %v398_v34, %v397_v51  ;;  %v384_v3 = vshrl.u32 %v6367_v21, %v383_v45  ;;  %6378 = vst [vmem:[#allocation40_spill] sm:$0xff] %v3736_v14 }
  0xdf   : > { %v3727_v39 = vshrl.u32 %v533_v5, 30  ;;  %vm400_vm1 = vcmp.lt.s32.totalorder %v381_v6, 1  ;;  %vm403_vm2 = vcmp.lt.s32.totalorder %v381_v6, 4  ;;  %vm402_vm3 = vcmp.lt.s32.totalorder %v381_v6, 3 }
  0xe0   : > { %v405_v20 = vsel %vm403_vm2, %v393_v32, 2102212464  ;;  %v408_v37 = vsel %vm400_vm1, %v387_v36, %v390_v44  ;;  %v409_v33 = vsel %vm403_vm2, %v396_v16, 920167782  ;;  %vm401_vm4 = vcmp.lt.s32.totalorder %v381_v6, 2 }
  0xe1   : > { %v535_v47 = vshll.u32 %v3727_v39, 30  ;;  %v410_v58 = vsel %vm402_vm3, %v393_v32, %v409_v33  ;;  %v412_v63 = vsel %vm400_vm1, %v390_v44, %v393_v32  ;;  %v413_v8 = vsel %vm403_vm2, %v399_v15, 1326507024 }
  0xe2   : > { %v411_v30 = vsel %vm401_vm4, %v408_v37, %v410_v58  ;;  %v416_v57 = vshll.u32 %v376_v0, 8  ;;  %v6309_v45 = vand.u32 2147483647, %v3564_v19  ;;  %v404_v4 = vsel %vm400_vm1, %v384_v3, %v387_v36 }
  0xe3   : > { %v3738_v60 = vsub.s32 %v532_v52, %v535_v47  ;;  %v406_v22 = vsel %vm402_vm3, %v390_v44, %v405_v20  ;;  %v414_v51 = vsel %vm402_vm3, %v396_v16, %v413_v8  ;;  %v3746_v32 = vsel %vm1315_vm14, %v3683_v2, 0 }
  0xe4   : > { %v415_v33 = vsel %vm401_vm4, %v412_v63, %v414_v51  ;;  %v3749_v37 = vmul.u32.u64.low %v416_v57, %v411_v30  ;;  %v3750_v15 = vmul.u32.u64.high %v416_v57, %v411_v30, %v3749_v37  ;;  %v906_v3 = vshrl.u32 %v6373_v35, %v3649_v49 }
  0xe5   : > { %v538_v52 = vsub.s32 0, %v3738_v60  ;;  %v3754_v34 = vmul.u32.u64.low %v416_v57, %v415_v33  ;;  %v3755_v5 = vmul.u32.u64.high %v416_v57, %v415_v33, %v3754_v34  ;;  %v3760_v16 = vand.u32 31, %v3725_v59 }
  0xe6   : > { %v3764_v2 = vadd.f32 %v3736_v14, %v3571_v27  ;;  %v407_v36 = vsel %vm401_vm4, %v404_v4, %v406_v22  ;;  %v909_v44 = vshrl.u32 %v6374_v38, %v3649_v49  ;;  %v3770_v0 = vand.u32 31, %v3746_v32 }
  0xe7   : > { %v3025_v20 = vmin.u32 %v538_v52, %v3738_v60  ;;  %v895_v47 = vand.u32 8388607, %v6309_v45  ;;  %v905_v58 = vshll.u32 %v6367_v21, %v3627_v24  ;;  %v426_v63 = vadd.s32 1, %v3750_v15 }
  0xe8   : > { %6379 = vst [vmem:[#allocation41_spill] sm:$0xff] %v3764_v2  ;;  %v908_v27 = vshll.u32 %v6373_v35, %v3627_v24  ;;  %v912_v6 = vshrl.u32 %v6375_v17, %v3649_v49  ;;  %v915_v30 = vshrl.u32 %v6376_v53, %v3649_v49  ;;  %vm474_vm5 = vcmp.lt.s32.totalorder %v3590_v50, 0 }
  0xe9   : > { %v528_v8 = vadd.s32 %v3679_v55, %v3686_v54  ;;  %v540_v4 = vclz %v3025_v20  ;;  %v423_v22 = vmul.u32 %v416_v57, %v407_v36  ;;  %v907_v51 = vor.u32 %v906_v3, %v905_v58 }
  0xea   : > { %vm425_vm6 = vc.u32 %v3755_v5, %v3749_v37  ;;  %v910_v33 = vor.u32 %v909_v44, %v908_v27  ;;  %v911_v52 = vshll.u32 %v6374_v38, %v3627_v24  ;;  %v914_v34 = vshll.u32 %v6375_v17, %v3627_v24 }
  0xeb   : > { %v3026_v45 = vadd.s32 4294967294, %v540_v4  ;;  %v427_v40 = vsel %vm425_vm6, %v426_v63, %v3750_v15  ;;  %v917_v12 = vshll.u32 %v6376_v53, %v3627_v24  ;;  %v918_v55 = vshrl.u32 %v6377_v1, %v3649_v49 }
  0xec   : > { %v6380_v54 = vand.u32 2147483647, %v3590_v50  ;;  %v558_v3 = vsub.s32 4, %v3727_v39  ;;  %v428_v36 = vadd.s32 %v427_v40, %v423_v22  ;;  %v913_v44 = vor.u32 %v912_v6, %v911_v52 }
  0xed   : > { %v916_v20 = vor.u32 %v915_v30, %v914_v34  ;;  %vm3027_vm8 = vcmp.lt.s32.totalorder %v3026_v45, 0  ;;  %v896_v58 = vor.u32 8388608, %v895_v47  ;;  %v919_v15 = vor.u32 %v918_v55, %v917_v12 }
  0xee   : > { %vm3800_vm7 = vcmp.le.f32.partialorder %v6380_v54, 0.7853982  ;;  %vm920_vm9 = vcmp.lt.s32.totalorder %v3637_v25, 1  ;;  %v543_v24 = vsel %vm3027_vm8, 0, %v3026_v45  ;;  %v429_v63 = vadd.s32 536870912, %v428_v36 }
  0xef   : > { %vm922_vm10 = vcmp.lt.s32.totalorder %v3637_v25, 3  ;;  %vm923_vm11 = vcmp.lt.s32.totalorder %v3637_v25, 4  ;;  %v544_v27 = vsub.s32 32, %v543_v24  ;;  %v545_v4 = vshll.u32 %v3738_v60, %v543_v24 }
  0xf0   : > { %v548_v54 = vsub.s32 4294967266, %v543_v24  ;;  %v928_v40 = vsel %vm920_vm9, %v907_v51, %v910_v33  ;;  %v430_v6 = vshrl.u32 %v429_v63, 30  ;;  %v929_v47 = vsel %vm923_vm11, %v916_v20, 920167782 }
  0xf1   : > { %v932_v12 = vsel %vm920_vm9, %v910_v33, %v913_v44  ;;  %v933_v45 = vsel %vm923_vm11, %v919_v15, 1326507024  ;;  %v546_v30 = vshrl.u32 %v528_v8, %v544_v27  ;;  %vm370_vm12 = vcmp.lt.s32.totalorder %v3618_v48, 0 }
  0xf2   : > { %v549_v22 = vadd.s32 127, %v548_v54  ;;  %v930_v60 = vsel %vm922_vm10, %v913_v44, %v929_v47  ;;  %v934_v52 = vsel %vm922_vm10, %v916_v20, %v933_v45  ;;  %v559_v34 = vsel %vm474_vm5, %v558_v3, %v3727_v39 }
  0xf3   : > { %v431_v55 = vshll.u32 %v430_v6, 30  ;;  %vm921_vm13 = vcmp.lt.s32.totalorder %v3637_v25, 2  ;;  %v925_v15 = vsel %vm923_vm11, %v913_v44, 2102212464  ;;  %v547_v8 = vor.u32 %v546_v30, %v545_v4 }
  0xf4   : > { %v550_v24 = vshll.u32 %v549_v22, 23  ;;  %v904_v63 = vshrl.u32 %v6367_v21, %v3649_v49  ;;  %v935_v27 = vsel %vm921_vm13, %v932_v12, %v934_v52  ;;  %v2139_v20 = vand.u32 2139095040, %v3764_v2 }
  0xf5   : > { %v3833_v54 = vsub.s32 %v428_v36, %v431_v55  ;;  %v931_v39 = vsel %vm921_vm13, %v928_v40, %v930_v60  ;;  %v936_v3 = vshll.u32 %v896_v58, 8  ;;  %v561_v44 = vsel %vm3800_vm7, 0, %v559_v34 }
  0xf6   : > { %v551_v47 = vor.u32 4788187, %v550_v24  ;;  %v924_v4 = vsel %vm920_vm9, %v904_v63, %v907_v51  ;;  %v926_v49 = vsel %vm922_vm10, %v910_v33, %v925_v15  ;;  %v454_v45 = vsub.s32 4, %v430_v6 }
  0xf7   : > { %v434_v12 = vsub.s32 0, %v3833_v54  ;;  %v3844_v30 = vmul.u32.u64.low %v936_v3, %v935_v27  ;;  %v3845_v36 = vmul.u32.u64.high %v936_v3, %v935_v27, %v3844_v30  ;;  %v554_v52 = vcvt.s32.f32 %v547_v8 }
  0xf8   : > { %v552_v22 = vand.u32 2147483647, %v551_v47  ;;  %v3847_v40 = vmul.u32.u64.low %v936_v3, %v931_v39  ;;  %v3848_v58 = vmul.u32.u64.high %v936_v3, %v931_v39, %v3847_v40  ;;  %v3852_v60 = vshrl.u32 %v3746_v32, 5 }
  0xf9   : > { %v3856_v51 = vadd.f32 %v3736_v14, %v3569_v43  ;;  %v565_v33 = vadd.s32 3, %v561_v44  ;;  %v3021_v34 = vmin.u32 %v434_v12, %v3833_v54  ;;  %v3860_v55 = vsub.s32 32, %v3760_v16 }
  0xfa   : > { %v555_v15 = vmul.f32 %v554_v52, %v552_v22  ;;  %v927_v8 = vsel %vm921_vm13, %v924_v4, %v926_v49  ;;  %v6310_v24 = vand.u32 2147483647, %v3562_v42  ;;  %v3866_v63 = vsub.s32 32, %v3770_v0 }
  0xfb   : > { %v3868_v32 = vshrl.u32 %v2139_v20, 23  ;;  %v436_v27 = vclz %v3021_v34  ;;  %v3872_v43 = vsel %vm370_vm12, %v454_v45, %v430_v6  ;;  %v6383_v47 = vand.u32 2147483647, %v3618_v48 }
  0xfc   : > { %v556_v39 = vxor.u32 2147483648, %v555_v15  ;;  %vm945_vm15 = vc.u32 %v3845_v36, %v3847_v40  ;;  %v946_v25 = vadd.s32 1, %v3848_v58  ;;  %v3883_v4 = vand.u32 3, %v565_v33 }
  0xfd   : > { %vm3876_vm14 = vcmp.le.f32.partialorder %v6383_v47, 0.7853982  ;;  %v424_v20 = vadd.s32 %v3749_v37, %v3755_v5  ;;  %v3022_v49 = vadd.s32 4294967294, %v436_v27  ;;  %v943_v6 = vmul.u32 %v936_v3, %v927_v8 }
  0xfe   : > { %v557_v12 = vsel %vm474_vm5, %v556_v39, %v555_v15  ;;  %v947_v30 = vsel %vm945_vm15, %v946_v25, %v3848_v58  ;;  %v791_v22 = vand.u32 8388607, %v6310_v24  ;;  %v802_v5 = vshrl.u32 %v6373_v35, %v3645_v23 }
  0xff   : > { %v560_v52 = vsel %vm3800_vm7, %v3590_v50, %v557_v12  ;;  %vm3023_vm1 = vcmp.lt.s32.totalorder %v3022_v49, 0  ;;  %v948_v37 = vadd.s32 %v947_v30, %v943_v6  ;;  %v804_v33 = vshll.u32 %v6373_v35, %v3622_v46 }
 0x100   : > { %3209 = vcosq.f32 %v560_v52  ;;  %v439_v3 = vsel %vm3023_vm1, 0, %v3022_v49  ;;  %v805_v58 = vshrl.u32 %v6374_v38, %v3645_v23  ;;  %v808_v57 = vshrl.u32 %v6375_v17, %v3645_v23 }
 0x101   : > { %3211 = vsinq.f32 %v560_v52  ;;  %v440_v34 = vsub.s32 32, %v439_v3  ;;  %v444_v15 = vsub.s32 4294967266, %v439_v3  ;;  %v949_v8 = vadd.s32 536870912, %v948_v37 }
 0x102   : > { %v810_v27 = vshll.u32 %v6375_v17, %v3622_v46  ;;  %v811_v39 = vshrl.u32 %v6376_v53, %v3645_v23  ;;  %v814_v47 = vshrl.u32 %v6377_v1, %v3645_v23  ;;  %v441_v25 = vshll.u32 %v3833_v54, %v439_v3 }
 0x103   : > { %v442_v49 = vshrl.u32 %v424_v20, %v440_v34  ;;  %v445_v6 = vadd.s32 127, %v444_v15  ;;  %v807_v12 = vshll.u32 %v6374_v38, %v3622_v46  ;;  %vm890_vm2 = vcmp.lt.s32.totalorder %v3564_v19, 0 }
 0x104   : > { %v950_v30 = vshrl.u32 %v949_v8, 30  ;;  %v801_v52 = vshll.u32 %v6367_v21, %v3622_v46  ;;  %v812_v24 = vor.u32 %v811_v39, %v810_v27  ;;  %v813_v45 = vshll.u32 %v6376_v53, %v3622_v46 }
 0x105   : > { %v443_v14 = vor.u32 %v442_v49, %v441_v25  ;;  %v446_v2 = vshll.u32 %v445_v6, 23  ;;  %v806_v11 = vor.u32 %v805_v58, %v804_v33  ;;  %v809_v18 = vor.u32 %v808_v57, %v807_v12 }
 0x106   : > { %v951_v54 = vshll.u32 %v950_v30, 30  ;;  %v800_v20 = vshrl.u32 %v6367_v21, %v3645_v23  ;;  %v803_v3 = vor.u32 %v802_v5, %v801_v52  ;;  %v815_v34 = vor.u32 %v814_v47, %v813_v45 }
 0x107   : > { %vm571_vm3 = vcmp.eq.s32.totalorder %v3883_v4, 2  ;;  %v447_v15 = vor.u32 4788187, %v446_v2  ;;  %v6386_v8 = vand.u32 2147483647, %v3564_v19  ;;  %v792_v46 = vor.u32 8388608, %v791_v22 }
 0x108   : > { %vm816_vm5 = vcmp.lt.s32.totalorder %v3635_v62, 1  ;;  %vm819_vm6 = vcmp.lt.s32.totalorder %v3635_v62, 4  ;;  %vm568_vm7 = vcmp.eq.s32.totalorder %v3883_v4, 0  ;;  %v3932_v33 = vsub.s32 %v948_v37, %v951_v54 }
 0x109   : > { %vm3925_vm4 = vcmp.le.f32.partialorder %v6386_v8, 0.7853982  ;;  %v974_v23 = vsub.s32 4, %v950_v30  ;;  %vm817_vm8 = vcmp.lt.s32.totalorder %v3635_v62, 2  ;;  %v825_v45 = vsel %vm819_vm6, %v812_v24, 920167782 }
 0x10a   : > { %vm567_vm9 = vcmp.lt.s32.totalorder %v3883_v4, 2  ;;  %v448_v2 = vand.u32 2147483647, %v447_v15  ;;  %v450_v5 = vcvt.s32.f32 %v443_v14  ;;  %v821_v58 = vsel %vm819_vm6, %v809_v18, 2102212464 }
 0x10b   : > { %v828_v22 = vsel %vm816_vm5, %v806_v11, %v809_v18  ;;  %vm564_vm10 = vweird.f32 %v3590_v50  ;;  %v954_v57 = vsub.s32 0, %v3932_v33  ;;  %vm818_vm11 = vcmp.lt.s32.totalorder %v3635_v62, 3 }
 0x10c   : > { %v824_v37 = vsel %vm816_vm5, %v803_v3, %v806_v11  ;;  %v829_v39 = vsel %vm819_vm6, %v815_v34, 1326507024  ;;  %v451_v47 = vmul.f32 %v450_v5, %v448_v2  ;;  %v826_v25 = vsel %vm818_vm11, %v809_v18, %v825_v45 }
 0x10d   : > { %v830_v49 = vsel %vm818_vm11, %v812_v24, %v829_v39  ;;  %v832_v6 = vshll.u32 %v792_v46, 8  ;;  %v3041_v14 = vmin.u32 %v954_v57, %v3932_v33  ;;  %v820_v12 = vsel %vm816_vm5, %v800_v20, %v803_v3  ;;  %v3210_v15 = vpop.eup %3209 }
 0x10e   : > { %v822_v52 = vsel %vm818_vm11, %v806_v11, %v821_v58  ;;  %v831_v54 = vsel %vm817_vm8, %v828_v22, %v830_v49  ;;  %v452_v8 = vxor.u32 2147483648, %v451_v47  ;;  %v975_v9 = vsel %vm890_vm2, %v974_v23, %v950_v30  ;;  %v3212_v18 = vpop.eup %3211 }
 0x10f   : > { %v3950_v61 = vmul.u32.u64.low %v832_v6, %v831_v54  ;;  %v3951_v34 = vmul.u32.u64.high %v832_v6, %v831_v54, %v3950_v61  ;;  %v572_v24 = vxor.u32 2147483648, %v3210_v15  ;;  %v956_v46 = vclz %v3041_v14 }
 0x110   : > { %v827_v45 = vsel %vm817_vm8, %v824_v37, %v826_v25  ;;  %v1304_v20 = vand.u32 2147483647, %v3614_v31  ;;  %v569_v11 = vxor.u32 2147483648, %v3212_v18  ;;  %v453_v3 = vsel %vm370_vm12, %v452_v8, %v451_v47 }
 0x111   : > { %v6389_v2 = vsel %vm3876_vm14, 0, %v3872_v43  ;;  %v823_v61 = vsel %vm817_vm8, %v820_v12, %v822_v52  ;;  %v573_v23 = vsel %vm571_vm3, %v572_v24, %v3212_v18  ;;  %v456_v5 = vsel %vm3876_vm14, %v3618_v48, %v453_v3 }
 0x112   : > { %v461_v30 = vadd.s32 3, %v6389_v2  ;;  %v3042_v58 = vadd.s32 4294967294, %v956_v46  ;;  %v977_v22 = vsel %vm3925_vm4, 0, %v975_v9  ;;  %v570_v57 = vsel %vm568_vm7, %v3210_v15, %v569_v11 }
 0x113   : > { %3213 = vcosq.f32 %v456_v5  ;;  %v3973_v43 = vmul.u32.u64.low %v832_v6, %v827_v45  ;;  %v3974_v37 = vmul.u32.u64.high %v832_v6, %v827_v45, %v3973_v43  ;;  %v574_v62 = vsel %vm567_vm9, %v570_v57, %v573_v23 }
 0x114   : > { %3215 = vsinq.f32 %v456_v5  ;;  %vm3043_vm12 = vcmp.lt.s32.totalorder %v3042_v58, 0  ;;  %v3981_v44 = vand.u32 8388607, %v1304_v20  ;;  %v575_v9 = vsel %vm564_vm10, nan, %v574_v62 }
 0x115   : > { %v3985_v39 = vand.u32 3, %v461_v30  ;;  %v944_v47 = vadd.s32 %v3847_v40, %v3845_v36  ;;  %v959_v25 = vsel %vm3043_vm12, 0, %v3042_v58  ;;  %v2459_v4 = vsel %vm30_vm0, %v3586_v28, %v575_v9 }
 0x116   : > { %v960_v49 = vsub.s32 32, %v959_v25  ;;  %v964_v14 = vsub.s32 4294967266, %v959_v25  ;;  %vm841_vm13 = vc.u32 %v3951_v34, %v3973_v43  ;;  %v3995_v12 = vadd.s32 4294967169, %v3868_v32  ;;  %2510 = vxpose.xlu1.b32.start [1/5] (short) %v2459_v4, 128 }
 0x117   : > { %v3997_v50 = vadd.s32 3, %v977_v22  ;;  %v839_v52 = vmul.u32 %v832_v6, %v823_v61  ;;  %v842_v54 = vadd.s32 1, %v3974_v37  ;;  %v961_v36 = vshll.u32 %v3932_v33, %v959_v25 }
 0x118   : > { %v962_v40 = vshrl.u32 %v944_v47, %v960_v49  ;;  %v965_v15 = vadd.s32 127, %v964_v14  ;;  %v1312_v28 = vor.u32 8388608, %v3981_v44  ;;  %v1322_v18 = vshrl.u32 %v6373_v35, %v3866_v63 }
 0x119   : > { %v843_v8 = vsel %vm841_vm13, %v842_v54, %v3974_v37  ;;  %v1325_v32 = vshrl.u32 %v6374_v38, %v3866_v63  ;;  %v1328_v24 = vshrl.u32 %v6375_v17, %v3866_v63  ;;  %vm467_vm14 = vcmp.eq.s32.totalorder %v3985_v39, 2 }
 0x11a   : > { %v963_v6 = vor.u32 %v962_v40, %v961_v36  ;;  %v966_v46 = vshll.u32 %v965_v15, 23  ;;  %v844_v33 = vadd.s32 %v843_v8, %v839_v52  ;;  %v1327_v45 = vshll.u32 %v6374_v38, %v3770_v0 }
 0x11b   : > { %vm464_vm15 = vcmp.eq.s32.totalorder %v3985_v39, 0  ;;  %v1321_v11 = vshll.u32 %v6367_v21, %v3770_v0  ;;  %v1324_v3 = vshll.u32 %v6373_v35, %v3770_v0  ;;  %v1330_v2 = vshll.u32 %v6375_v17, %v3770_v0 }
 0x11c   : > { %v1331_v30 = vshrl.u32 %v6376_v53, %v3866_v63  ;;  %vm463_vm1 = vcmp.lt.s32.totalorder %v3985_v39, 2  ;;  %v967_v61 = vor.u32 4788187, %v966_v46  ;;  %vm786_vm3 = vcmp.lt.s32.totalorder %v3562_v42, 0 }
 0x11d   : > { %v845_v23 = vadd.s32 536870912, %v844_v33  ;;  %v1329_v5 = vor.u32 %v1328_v24, %v1327_v45  ;;  %v1334_v58 = vshrl.u32 %v6377_v1, %v3866_v63  ;;  %vm460_vm5 = vweird.f32 %v3618_v48 }
 0x11e   : > { %v1320_v22 = vshrl.u32 %v6367_v21, %v3866_v63  ;;  %v1323_v57 = vor.u32 %v1322_v18, %v1321_v11  ;;  %v1332_v37 = vor.u32 %v1331_v30, %v1330_v2  ;;  %v1333_v62 = vshll.u32 %v6376_v53, %v3770_v0 }
 0x11f   : > { %v968_v9 = vand.u32 2147483647, %v967_v61  ;;  %v970_v47 = vcvt.s32.f32 %v963_v6  ;;  %v846_v25 = vshrl.u32 %v845_v23, 30  ;;  %v1326_v4 = vor.u32 %v1325_v32, %v1324_v3 }
 0x120   : > { %v6390_v49 = vand.u32 2147483647, %v3562_v42  ;;  %v1335_v52 = vor.u32 %v1334_v58, %v1333_v62  ;;  %vm1336_vm7 = vcmp.lt.s32.totalorder %v3852_v60, 1  ;;  %vm1337_vm8 = vcmp.lt.s32.totalorder %v3852_v60, 2  ;;  %v3214_v63 = vpop.eup %3213 }
 0x121   : > { %vm1339_vm9 = vcmp.lt.s32.totalorder %v3852_v60, 4  ;;  %v971_v54 = vmul.f32 %v970_v47, %v968_v9  ;;  %v847_v0 = vshll.u32 %v846_v25, 30  ;;  %v3216_v15 = vpop.eup %3215  ;;  %v468_v8 = vxor.u32 2147483648, %v3214_v63 }
 0x122   : > { %vm4032_vm6 = vcmp.le.f32.partialorder %v6390_v49, 0.7853982  ;;  %v1341_v36 = vsel %vm1339_vm9, %v1329_v5, 2102212464  ;;  %v1345_v40 = vsel %vm1339_vm9, %v1332_v37, 920167782  ;;  %v1340_v32 = vsel %vm1336_vm7, %v1320_v22, %v1323_v57 }
 0x123   : > { %v870_v18 = vsub.s32 4, %v846_v25  ;;  %vm1338_vm10 = vcmp.lt.s32.totalorder %v3852_v60, 3  ;;  %v465_v24 = vxor.u32 2147483648, %v3216_v15  ;;  %v972_v6 = vxor.u32 2147483648, %v971_v54 }
 0x124   : > { %v4046_v46 = vsub.s32 %v844_v33, %v847_v0  ;;  %v1344_v45 = vsel %vm1336_vm7, %v1323_v57, %v1326_v4  ;;  %v469_v11 = vsel %vm467_vm14, %v468_v8, %v3216_v15  ;;  %v1342_v3 = vsel %vm1338_vm10, %v1326_v4, %v1341_v36 }
 0x125   : > { %v1346_v2 = vsel %vm1338_vm10, %v1329_v5, %v1345_v40  ;;  %v1349_v30 = vsel %vm1339_vm9, %v1335_v52, 1326507024  ;;  %v466_v61 = vsel %vm464_vm15, %v3214_v63, %v465_v24  ;;  %v973_v33 = vsel %vm890_vm2, %v972_v6, %v971_v54 }
 0x126   : > { %v850_v23 = vsub.s32 0, %v4046_v46  ;;  %v1348_v58 = vsel %vm1336_vm7, %v1326_v4, %v1329_v5  ;;  %v470_v22 = vsel %vm463_vm1, %v466_v61, %v469_v11  ;;  %v976_v57 = vsel %vm3925_vm4, %v3564_v19, %v973_v33 }
 0x127   : > { %v871_v62 = vsel %vm786_vm3, %v870_v18, %v846_v25  ;;  %v1350_v9 = vsel %vm1338_vm10, %v1332_v37, %v1349_v30  ;;  %v471_v47 = vsel %vm460_vm5, nan, %v470_v22  ;;  %3217 = vcosq.f32 %v976_v57 }
 0x128   : > { %v3037_v49 = vmin.u32 %v850_v23, %v4046_v46  ;;  %v1347_v39 = vsel %vm1337_vm8, %v1344_v45, %v1346_v2  ;;  %v2458_v27 = vsel %vm30_vm0, %v3605_v56, %v471_v47  ;;  %3219 = vsinq.f32 %v976_v57 }
 0x129   : > { %v1351_v5 = vsel %vm1337_vm8, %v1348_v58, %v1350_v9  ;;  %v1352_v37 = vshll.u32 %v1312_v28, 8  ;;  %2478 = vxpose.xlu0.b32.start [1/5] (short) %v2458_v27, 128  ;;  %v4087_v48 = vand.u32 3, %v3997_v50  ;;  %v873_v4 = vsel %vm4032_vm6, 0, %v871_v62 }
 0x12a   : > { %v852_v25 = vclz %v3037_v49  ;;  %v1343_v52 = vsel %vm1337_vm8, %v1340_v32, %v1342_v3  ;;  %v4101_v44 = vand.u32 31, %v3696_v7  ;;  %v4104_v50 = vshrl.u32 %v3705_v41, 5 }
 0x12b   : > { %v4093_v63 = vmul.u32.u64.low %v1352_v37, %v1351_v5  ;;  %v4094_v56 = vmul.u32.u64.high %v1352_v37, %v1351_v5, %v4093_v63  ;;  %v4096_v54 = vmul.u32.u64.low %v1352_v37, %v1347_v39  ;;  %v4097_v0 = vmul.u32.u64.high %v1352_v37, %v1347_v39, %v4096_v54 }
 0x12c   : > { %v3038_v28 = vadd.s32 4294967294, %v852_v25  ;;  %v1200_v36 = vand.u32 2147483647, %v3611_v29  ;;  %v4108_v40 = vand.u32 31, %v3705_v41  ;;  %v4111_v60 = vshrl.u32 %v3725_v59, 5 }
 0x12d   : > { %v2035_v15 = vand.u32 2139095040, %v3856_v51  ;;  %v4115_v8 = vadd.s32 1, %v3995_v12  ;;  %v840_v18 = vadd.s32 %v3973_v43, %v3951_v34  ;;  %v4119_v32 = vadd.s32 3, %v873_v4 }
 0x12e   : > { %vm3039_vm2 = vcmp.lt.s32.totalorder %v3038_v28, 0  ;;  %v1359_v24 = vmul.u32 %v1352_v37, %v1343_v52  ;;  %vm987_vm4 = vcmp.eq.s32.totalorder %v4087_v48, 2  ;;  %vm1361_vm11 = vc.u32 %v4094_v56, %v4096_v54 }
 0x12f   : > { %v855_v6 = vsel %vm3039_vm2, 0, %v3038_v28  ;;  %v1362_v41 = vadd.s32 1, %v4097_v0  ;;  %v1216_v59 = vshrl.u32 %v6367_v21, %v3860_v55  ;;  %vm984_vm12 = vcmp.eq.s32.totalorder %v4087_v48, 0 }
 0x130   : > { %v856_v12 = vsub.s32 32, %v855_v6  ;;  %v860_v45 = vsub.s32 4294967266, %v855_v6  ;;  %v1207_v34 = vand.u32 8388607, %v1200_v36  ;;  %v1217_v43 = vshll.u32 %v6367_v21, %v3760_v16 }
 0x131   : > { %vm983_vm13 = vcmp.lt.s32.totalorder %v4087_v48, 2  ;;  %v1363_v11 = vsel %vm1361_vm11, %v1362_v41, %v4097_v0  ;;  %v1218_v3 = vshrl.u32 %v6373_v35, %v3860_v55  ;;  %v1220_v2 = vshll.u32 %v6373_v35, %v3760_v16 }
 0x132   : > { %v1221_v30 = vshrl.u32 %v6374_v38, %v3860_v55  ;;  %vm980_vm14 = vweird.f32 %v3564_v19  ;;  %v857_v61 = vshll.u32 %v4046_v46, %v855_v6  ;;  %v858_v33 = vshrl.u32 %v840_v18, %v856_v12 }
 0x133   : > { %v861_v23 = vadd.s32 127, %v860_v45  ;;  %v1364_v58 = vadd.s32 %v1363_v11, %v1359_v24  ;;  %v1224_v22 = vshrl.u32 %v6375_v17, %v3860_v55  ;;  %v1226_v57 = vshll.u32 %v6375_v17, %v3760_v16 }
 0x134   : > { %v1227_v62 = vshrl.u32 %v6376_v53, %v3860_v55  ;;  %v1230_v9 = vshrl.u32 %v6377_v1, %v3860_v55  ;;  %v859_v47 = vor.u32 %v858_v33, %v857_v61  ;;  %v1208_v27 = vor.u32 8388608, %v1207_v34  ;;  %v3218_v46 = vpop.eup %3217 }
 0x135   : > { %v862_v49 = vshll.u32 %v861_v23, 23  ;;  %v1365_v39 = vadd.s32 536870912, %v1364_v58  ;;  %v1219_v5 = vor.u32 %v1218_v3, %v1217_v43  ;;  %v1223_v37 = vshll.u32 %v6374_v38, %v3760_v16  ;;  %v3220_v52 = vpop.eup %3219 }
 0x136   : > { %v1228_v25 = vor.u32 %v1227_v62, %v1226_v57  ;;  %v1229_v4 = vshll.u32 %v6376_v53, %v3760_v16  ;;  %v988_v63 = vxor.u32 2147483648, %v3218_v46  ;;  %v1222_v18 = vor.u32 %v1221_v30, %v1220_v2 }
 0x137   : > { %v863_v0 = vor.u32 4788187, %v862_v49  ;;  %v1366_v28 = vshrl.u32 %v1365_v39, 30  ;;  %v985_v24 = vxor.u32 2147483648, %v3220_v52  ;;  %v866_v55 = vcvt.s32.f32 %v859_v47 }
 0x138   : > { %v1225_v6 = vor.u32 %v1224_v22, %v1223_v37  ;;  %v1231_v41 = vor.u32 %v1230_v9, %v1229_v4  ;;  %v989_v12 = vsel %vm987_vm4, %v988_v63, %v3220_v52  ;;  %vm1235_vm15 = vcmp.lt.s32.totalorder %v4111_v60, 4 }
 0x139   : > { %v864_v45 = vand.u32 2147483647, %v863_v0  ;;  %v1367_v34 = vshll.u32 %v1366_v28, 30  ;;  %v986_v43 = vsel %vm984_vm12, %v3218_v46, %v985_v24  ;;  %vm1232_vm1 = vcmp.lt.s32.totalorder %v4111_v60, 1 }
 0x13a   : > { %vm1234_vm5 = vcmp.lt.s32.totalorder %v4111_v60, 3  ;;  %v1241_v16 = vsel %vm1235_vm15, %v1228_v25, 920167782  ;;  %v990_v11 = vsel %vm983_vm13, %v986_v43, %v989_v12  ;;  %v1240_v30 = vsel %vm1232_vm1, %v1219_v5, %v1222_v18 }
 0x13b   : > { %v867_v3 = vmul.f32 %v866_v55, %v864_v45  ;;  %v4165_v2 = vsub.s32 %v1364_v58, %v1367_v34  ;;  %v991_v61 = vsel %vm980_vm14, nan, %v990_v11  ;;  %vm1233_vm7 = vcmp.lt.s32.totalorder %v4111_v60, 2 }
 0x13c   : > { %v1237_v33 = vsel %vm1235_vm15, %v1225_v6, 2102212464  ;;  %v1242_v23 = vsel %vm1234_vm5, %v1225_v6, %v1241_v16  ;;  %2511 = vxpose.xlu1.b32.cont [2/5] (short) %v991_v61, 128  ;;  %v1390_v58 = vsub.s32 4, %v1366_v28  ;;  %v1236_v57 = vsel %vm1232_vm1, %v1216_v59, %v1219_v5 }
 0x13d   : > { %v868_v48 = vxor.u32 2147483648, %v867_v3  ;;  %v1370_v22 = vsub.s32 0, %v4165_v2  ;;  %v1243_v19 = vsel %vm1233_vm7, %v1240_v30, %v1242_v23  ;;  %v1244_v62 = vsel %vm1232_vm1, %v1222_v18, %v1225_v6 }
 0x13e   : > { %v1245_v9 = vsel %vm1235_vm15, %v1231_v41, 1326507024  ;;  %v1248_v47 = vshll.u32 %v1208_v27, 8  ;;  %v1238_v46 = vsel %vm1234_vm5, %v1222_v18, %v1237_v33  ;;  %v4202_v52 = vsub.s32 32, %v4101_v44 }
 0x13f   : > { %v869_v49 = vsel %vm786_vm3, %v868_v48, %v867_v3  ;;  %v3057_v39 = vmin.u32 %v1370_v22, %v4165_v2  ;;  %v1246_v59 = vsel %vm1234_vm5, %v1228_v25, %v1245_v9  ;;  %v2036_v63 = vshrl.u32 %v2035_v15, 23 }
 0x140   : > { %v872_v5 = vsel %vm4032_vm6, %v3562_v42, %v869_v49  ;;  %v1247_v37 = vsel %vm1233_vm7, %v1244_v62, %v1246_v59  ;;  %v4197_v4 = vmul.u32.u64.low %v1248_v47, %v1243_v19  ;;  %v4198_v27 = vmul.u32.u64.high %v1248_v47, %v1243_v19, %v4197_v4 }
 0x141   : > { %3221 = vcosq.f32 %v872_v5  ;;  %v1372_v0 = vclz %v3057_v39  ;;  %vm2147_vm3 = vcmp.gt.s32.totalorder %v4115_v8, 0  ;;  %v1735_v18 = vsub.s32 32, %v4108_v40 }
 0x142   : > { %3223 = vsinq.f32 %v872_v5  ;;  %v4207_v14 = vmul.u32.u64.low %v1248_v47, %v1247_v37  ;;  %v4208_v25 = vmul.u32.u64.high %v1248_v47, %v1247_v37, %v4207_v14  ;;  %vm1306_vm6 = vcmp.lt.s32.totalorder %v3614_v31, 0 }
 0x143   : > { %v3058_v24 = vadd.s32 4294967294, %v1372_v0  ;;  %v1239_v55 = vsel %vm1233_vm7, %v1236_v57, %v1238_v46  ;;  %v4215_v6 = vand.u32 3, %v4119_v32  ;;  %v4219_v15 = vsel %vm1306_vm6, %v1390_v58, %v1366_v28 }
 0x144   : > { %v1258_v41 = vadd.s32 1, %v4198_v27  ;;  %v1720_v12 = vand.u32 2147483647, %v3599_v26  ;;  %v4223_v45 = vadd.s32 4294967169, %v2036_v63  ;;  %v4226_v34 = vsel %vm2147_vm3, %v4115_v8, 0 }
 0x145   : > { %vm4230_vm8 = vcmp.le.f32.partialorder %v1304_v20, 0.7853982  ;;  %vm3059_vm9 = vcmp.lt.s32.totalorder %v3058_v24, 0  ;;  %v1360_v32 = vadd.s32 %v4096_v54, %v4094_v56  ;;  %v1255_v43 = vmul.u32 %v1248_v47, %v1239_v55 }
 0x146   : > { %v1375_v28 = vsel %vm3059_vm9, 0, %v3058_v24  ;;  %vm1257_vm10 = vc.u32 %v4208_v25, %v4197_v4  ;;  %v1393_v8 = vsel %vm4230_vm8, 0, %v4219_v15  ;;  %vm883_vm2 = vcmp.eq.s32.totalorder %v4215_v6, 2 }
 0x147   : > { %v1376_v16 = vsub.s32 32, %v1375_v28  ;;  %v1380_v11 = vsub.s32 4294967266, %v1375_v28  ;;  %v1259_v20 = vsel %vm1257_vm10, %v1258_v41, %v4198_v27  ;;  %v1377_v3 = vshll.u32 %v4165_v2, %v1375_v28 }
 0x148   : > { %v1260_v30 = vadd.s32 %v1259_v20, %v1255_v43  ;;  %v4246_v56 = vand.u32 8388607, %v1720_v12  ;;  %v1738_v54 = vshrl.u32 %v6373_v35, %v1735_v18  ;;  %vm880_vm4 = vcmp.eq.s32.totalorder %v4215_v6, 0 }
 0x149   : > { %v1378_v61 = vshrl.u32 %v1360_v32, %v1376_v16  ;;  %v1381_v33 = vadd.s32 127, %v1380_v11  ;;  %v1741_v23 = vshrl.u32 %v6374_v38, %v1735_v18  ;;  %v1744_v48 = vshrl.u32 %v6375_v17, %v1735_v18 }
 0x14a   : > { %vm879_vm11 = vcmp.lt.s32.totalorder %v4215_v6, 2  ;;  %v1261_v22 = vadd.s32 536870912, %v1260_v30  ;;  %v1736_v2 = vshrl.u32 %v6367_v21, %v1735_v18  ;;  %v1737_v58 = vshll.u32 %v6367_v21, %v4108_v40 }
 0x14b   : > { %v1747_v57 = vshrl.u32 %v6376_v53, %v1735_v18  ;;  %vm876_vm12 = vweird.f32 %v3562_v42  ;;  %v1379_v19 = vor.u32 %v1378_v61, %v1377_v3  ;;  %v1382_v62 = vshll.u32 %v1381_v33, 23 }
 0x14c   : > { %vm1202_vm13 = vcmp.lt.s32.totalorder %v3611_v29, 0  ;;  %v1740_v9 = vshll.u32 %v6373_v35, %v4108_v40  ;;  %v1743_v47 = vshll.u32 %v6374_v38, %v4108_v40  ;;  %v1262_v49 = vshrl.u32 %v1261_v22, 30 }
 0x14d   : > { %v1728_v39 = vor.u32 8388608, %v4246_v56  ;;  %v1739_v46 = vor.u32 %v1738_v54, %v1737_v58  ;;  %v1746_v59 = vshll.u32 %v6375_v17, %v4108_v40  ;;  %v1383_v5 = vor.u32 4788187, %v1382_v62 }
 0x14e   : > { %v1742_v37 = vor.u32 %v1741_v23, %v1740_v9  ;;  %v1745_v27 = vor.u32 %v1744_v48, %v1743_v47  ;;  %v1750_v63 = vshrl.u32 %v6377_v1, %v1735_v18  ;;  %v3222_v0 = vpop.eup %3221  ;;  %vm4269_vm14 = vcmp.le.f32.partialorder %v1200_v36, 0.7853982 }
 0x14f   : > { %v1263_v24 = vshll.u32 %v1262_v49, 30  ;;  %v1748_v55 = vor.u32 %v1747_v57, %v1746_v59  ;;  %v1749_v41 = vshll.u32 %v6376_v53, %v4108_v40  ;;  %vm1752_vm15 = vcmp.lt.s32.totalorder %v4104_v50, 1  ;;  %v3224_v32 = vpop.eup %3223 }
 0x150   : > { %v884_v28 = vxor.u32 2147483648, %v3222_v0  ;;  %v1384_v43 = vand.u32 2147483647, %v1383_v5  ;;  %v1386_v16 = vcvt.s32.f32 %v1379_v19  ;;  %vm1753_vm1 = vcmp.lt.s32.totalorder %v4104_v50, 2 }
 0x151   : > { %v881_v18 = vxor.u32 2147483648, %v3224_v32  ;;  %v4277_v11 = vsub.s32 %v1260_v30, %v1263_v24  ;;  %v1286_v36 = vsub.s32 4, %v1262_v49  ;;  %vm1754_vm5 = vcmp.lt.s32.totalorder %v4104_v50, 3 }
 0x152   : > { %v885_v20 = vsel %vm883_vm2, %v884_v28, %v3224_v32  ;;  %v1387_v3 = vmul.f32 %v1386_v16, %v1384_v43  ;;  %v1751_v56 = vor.u32 %v1750_v63, %v1749_v41  ;;  %vm1755_vm7 = vcmp.lt.s32.totalorder %v4104_v50, 4 }
 0x153   : > { %v882_v40 = vsel %vm880_vm4, %v3222_v0, %v881_v18  ;;  %v1266_v54 = vsub.s32 0, %v4277_v11  ;;  %v1756_v61 = vsel %vm1752_vm15, %v1736_v2, %v1739_v46  ;;  %v1757_v30 = vsel %vm1755_vm7, %v1745_v27, 2102212464 }
 0x154   : > { %v886_v33 = vsel %vm879_vm11, %v882_v40, %v885_v20  ;;  %v1388_v23 = vxor.u32 2147483648, %v1387_v3  ;;  %v1760_v48 = vsel %vm1752_vm15, %v1739_v46, %v1742_v37  ;;  %v1761_v22 = vsel %vm1755_vm7, %v1748_v55, 920167782 }
 0x155   : > { %v887_v58 = vsel %vm876_vm12, nan, %v886_v33  ;;  %v3053_v57 = vmin.u32 %v1266_v54, %v4277_v11  ;;  %v1287_v2 = vsel %vm1202_vm13, %v1286_v36, %v1262_v49  ;;  %v1762_v19 = vsel %vm1754_vm5, %v1745_v27, %v1761_v22 }
 0x156   : > { %2479 = vxpose.xlu0.b32.cont [2/5] (short) %v887_v58, 128  ;;  %v1389_v6 = vsel %vm1306_vm6, %v1388_v23, %v1387_v3  ;;  %v1758_v62 = vsel %vm1754_vm5, %v1742_v37, %v1757_v30  ;;  %v1764_v9 = vsel %vm1752_vm15, %v1742_v37, %v1745_v27  ;;  %v1765_v42 = vsel %vm1755_vm7, %v1751_v56, 1326507024 }
 0x157   : > { %v1392_v47 = vsel %vm4230_vm8, %v3614_v31, %v1389_v6  ;;  %v1397_v49 = vadd.s32 3, %v1393_v8  ;;  %v1268_v46 = vclz %v3053_v57  ;;  %v1763_v59 = vsel %vm1753_vm1, %v1760_v48, %v1762_v19 }
 0x158   : > { %3225 = vcosq.f32 %v1392_v47  ;;  %v1289_v5 = vsel %vm4269_vm14, 0, %v1287_v2  ;;  %v1766_v37 = vsel %vm1754_vm5, %v1748_v55, %v1765_v42  ;;  %v1768_v27 = vshll.u32 %v1728_v39, 8 }
 0x159   : > { %3227 = vsinq.f32 %v1392_v47  ;;  %v3054_v63 = vadd.s32 4294967294, %v1268_v46  ;;  %v1759_v60 = vsel %vm1753_vm1, %v1756_v61, %v1758_v62  ;;  %v1767_v15 = vsel %vm1753_vm1, %v1764_v9, %v1766_v37 }
 0x15a   : > { %v4328_v8 = vmul.u32.u64.low %v1768_v27, %v1767_v15  ;;  %v4329_v0 = vmul.u32.u64.high %v1768_v27, %v1767_v15, %v4328_v8  ;;  %v4331_v24 = vmul.u32.u64.low %v1768_v27, %v1763_v59  ;;  %v4332_v41 = vmul.u32.u64.high %v1768_v27, %v1763_v59, %v4331_v24 }
 0x15b   : > { %v4336_v32 = vshrl.u32 %v3696_v7, 5  ;;  %v4338_v55 = vand.u32 3, %v1397_v49  ;;  %vm3055_vm3 = vcmp.lt.s32.totalorder %v3054_v63, 0  ;;  %v1616_v39 = vand.u32 2147483647, %v3597_v13 }
 0x15c   : > { %v4342_v28 = vadd.s32 1, %v4223_v45  ;;  %v4345_v50 = vand.u32 31, %v4226_v34  ;;  %v1256_v43 = vadd.s32 %v4197_v4, %v4208_v25  ;;  %v1271_v16 = vsel %vm3055_vm3, 0, %v3054_v63 }
 0x15d   : > { %v1272_v18 = vsub.s32 32, %v1271_v16  ;;  %v1276_v36 = vsub.s32 4294967266, %v1271_v16  ;;  %v4349_v20 = vadd.s32 3, %v1289_v5  ;;  %v1775_v7 = vmul.u32 %v1768_v27, %v1759_v60 }
 0x15e   : > { %vm1777_vm6 = vc.u32 %v4329_v0, %v4331_v24  ;;  %v1778_v3 = vadd.s32 1, %v4332_v41  ;;  %v1632_v45 = vshrl.u32 %v6367_v21, %v4202_v52  ;;  %v1634_v56 = vshrl.u32 %v6373_v35, %v4202_v52 }
 0x15f   : > { %vm1403_vm8 = vcmp.eq.s32.totalorder %v4338_v55, 2  ;;  %v1273_v4 = vshll.u32 %v4277_v11, %v1271_v16  ;;  %v1274_v25 = vshrl.u32 %v1256_v43, %v1272_v18  ;;  %v1277_v40 = vadd.s32 127, %v1276_v36 }
 0x160   : > { %v1623_v54 = vand.u32 8388607, %v1616_v39  ;;  %vm1400_vm9 = vcmp.eq.s32.totalorder %v4338_v55, 0  ;;  %v1779_v61 = vsel %vm1777_vm6, %v1778_v3, %v4332_v41  ;;  %v1633_v30 = vshll.u32 %v6367_v21, %v4101_v44 }
 0x161   : > { %v1637_v33 = vshrl.u32 %v6374_v38, %v4202_v52  ;;  %v1640_v23 = vshrl.u32 %v6375_v17, %v4202_v52  ;;  %vm1399_vm10 = vcmp.lt.s32.totalorder %v4338_v55, 2  ;;  %v1275_v11 = vor.u32 %v1274_v25, %v1273_v4 }
 0x162   : > { %v1278_v48 = vshll.u32 %v1277_v40, 23  ;;  %v1780_v22 = vadd.s32 %v1779_v61, %v1775_v7  ;;  %v1639_v58 = vshll.u32 %v6374_v38, %v4101_v44  ;;  %vm1396_vm2 = vweird.f32 %v3614_v31 }
 0x163   : > { %v1635_v57 = vor.u32 %v1634_v56, %v1633_v30  ;;  %v1636_v2 = vshll.u32 %v6373_v35, %v4101_v44  ;;  %v1642_v19 = vshll.u32 %v6375_v17, %v4101_v44  ;;  %v1643_v6 = vshrl.u32 %v6376_v53, %v4202_v52 }
 0x164   : > { %v1279_v62 = vor.u32 4788187, %v1278_v48  ;;  %v1781_v9 = vadd.s32 536870912, %v1780_v22  ;;  %v1624_v42 = vor.u32 8388608, %v1623_v54  ;;  %v1641_v47 = vor.u32 %v1640_v23, %v1639_v58 }
 0x165   : > { %vm2043_vm4 = vcmp.gt.s32.totalorder %v4342_v28, 0  ;;  %vm1722_vm11 = vcmp.lt.s32.totalorder %v3599_v26, 0  ;;  %v1638_v49 = vor.u32 %v1637_v33, %v1636_v2  ;;  %v1644_v46 = vor.u32 %v1643_v6, %v1642_v19  ;;  %v3226_v37 = vpop.eup %3225 }
 0x166   : > { %v1645_v59 = vshll.u32 %v6376_v53, %v4101_v44  ;;  %v1646_v5 = vshrl.u32 %v6377_v1, %v4202_v52  ;;  %v1280_v27 = vand.u32 2147483647, %v1279_v62  ;;  %v1282_v63 = vcvt.s32.f32 %v1275_v11  ;;  %v3228_v15 = vpop.eup %3227  ;;  %v6397_v62 = vld [vmem:[#allocation36_spill] sm:$0xff] }
 0x167   : > { %v1782_v60 = vshrl.u32 %v1781_v9, 30  ;;  %vm1648_vm12 = vcmp.lt.s32.totalorder %v4336_v32, 1  ;;  %v1404_v8 = vxor.u32 2147483648, %v3226_v37  ;;  %vm1649_vm15 = vcmp.lt.s32.totalorder %v4336_v32, 2 }
 0x168   : > { %vm1650_vm1 = vcmp.lt.s32.totalorder %v4336_v32, 3  ;;  %vm1651_vm5 = vcmp.lt.s32.totalorder %v4336_v32, 4  ;;  %v1401_v41 = vxor.u32 2147483648, %v3228_v15  ;;  %v1283_v43 = vmul.f32 %v1282_v63, %v1280_v27  ;;  %v6401_v27 = vld [vmem:[#allocation37_spill] sm:$0xff] }
 0x169   : > { %v1783_v44 = vshll.u32 %v1782_v60, 30  ;;  %v1653_v52 = vsel %vm1651_vm5, %v1641_v47, 2102212464  ;;  %v1405_v16 = vsel %vm1403_vm8, %v1404_v8, %v3228_v15  ;;  %v1647_v18 = vor.u32 %v1646_v5, %v1645_v59 }
 0x16a   : > { %v1656_v36 = vsel %vm1648_vm12, %v1635_v57, %v1638_v49  ;;  %v1657_v7 = vsel %vm1651_vm5, %v1644_v46, 920167782  ;;  %v1402_v3 = vsel %vm1400_vm9, %v3226_v37, %v1401_v41  ;;  %v1284_v56 = vxor.u32 2147483648, %v1283_v43 }
 0x16b   : > { %v4400_v4 = vsub.s32 %v1780_v22, %v1783_v44  ;;  %v1806_v25 = vsub.s32 4, %v1782_v60  ;;  %v1406_v40 = vsel %vm1399_vm10, %v1402_v3, %v1405_v16  ;;  %v1652_v54 = vsel %vm1648_vm12, %v1632_v45, %v1635_v57 }
 0x16c   : > { %v1654_v61 = vsel %vm1650_vm1, %v1638_v49, %v1653_v52  ;;  %v1658_v30 = vsel %vm1650_vm1, %v1641_v47, %v1657_v7  ;;  %v1407_v33 = vsel %vm1396_vm2, nan, %v1406_v40  ;;  %v1285_v23 = vsel %vm1202_vm13, %v1284_v56, %v1283_v43  ;;  %v6403_v56 = vld [vmem:[#allocation41_spill] sm:$0xff] }
 0x16d   : > { %v1786_v11 = vsub.s32 0, %v4400_v4  ;;  %v1660_v55 = vsel %vm1648_vm12, %v1638_v49, %v1641_v47  ;;  %2512 = vxpose.xlu1.b32.cont [3/5] (short) %v1407_v33, 128  ;;  %v1288_v45 = vsel %vm4269_vm14, %v3611_v29, %v1285_v23  ;;  %v1659_v48 = vsel %vm1649_vm15, %v1656_v36, %v1658_v30 }
 0x16e   : > { %v1661_v31 = vsel %vm1651_vm5, %v1647_v18, 1326507024  ;;  %v1664_v22 = vshll.u32 %v1624_v42, 8  ;;  %3229 = vcosq.f32 %v1288_v45  ;;  %v1807_v57 = vsel %vm1722_vm11, %v1806_v25, %v1782_v60  ;;  %v6398_v42 = vld [vmem:[#allocation38_spill] sm:$0xff] }
 0x16f   : > { %v3073_v58 = vmin.u32 %v1786_v11, %v4400_v4  ;;  %v1662_v2 = vsel %vm1650_vm1, %v1644_v46, %v1661_v31  ;;  %3231 = vsinq.f32 %v1288_v45  ;;  %v4436_v9 = vadd.s32 1, %v6397_v62 }
 0x170   : > { %v1663_v14 = vsel %vm1649_vm15, %v1660_v55, %v1662_v2  ;;  %v4431_v19 = vmul.u32.u64.low %v1664_v22, %v1659_v48  ;;  %v4432_v6 = vmul.u32.u64.high %v1664_v22, %v1659_v48, %v4431_v19  ;;  %vm1939_vm13 = vcmp.gt.s32.totalorder %v6398_v42, 0 }
 0x171   : > { %v4442_v47 = vsel %vm2043_vm4, %v4342_v28, 0  ;;  %v1788_v49 = vclz %v3073_v58  ;;  %v4445_v46 = vand.u32 3, %v4349_v20  ;;  %vm4449_vm14 = vcmp.le.f32.partialorder %v1720_v12, 0.7853982  ;;  %v6402_v12 = vld [vmem:[#allocation39_spill] sm:$0xff] }
 0x172   : > { %v4453_v5 = vmul.u32.u64.low %v1664_v22, %v1663_v14  ;;  %v4454_v37 = vmul.u32.u64.high %v1664_v22, %v1663_v14, %v4453_v5  ;;  %v4457_v63 = vadd.s32 4294967169, %v6401_v27  ;;  %v1809_v28 = vsel %vm4449_vm14, 0, %v1807_v57 }
 0x173   : > { %v3074_v60 = vadd.s32 4294967294, %v1788_v49  ;;  %v1655_v20 = vsel %vm1649_vm15, %v1652_v54, %v1654_v61  ;;  %v4464_v15 = vsel %vm1939_vm13, %v6398_v42, 0  ;;  %v4467_v8 = vadd.s32 4294967169, %v6402_v12 }
 0x174   : > { %v2151_v41 = vsub.s32 32, %v4345_v50  ;;  %v1674_v43 = vadd.s32 1, %v4432_v6  ;;  %v4472_v44 = vand.u32 31, %v4442_v47  ;;  %v4475_v52 = vshrl.u32 %v4226_v34, 5 }
 0x175   : > { %v1776_v32 = vadd.s32 %v4331_v24, %v4329_v0  ;;  %vm3075_vm7 = vcmp.lt.s32.totalorder %v3074_v60, 0  ;;  %vm1299_vm3 = vcmp.eq.s32.totalorder %v4445_v46, 2  ;;  %v4480_v18 = vadd.s32 3, %v1809_v28 }
 0x176   : > { %v1791_v16 = vsel %vm3075_vm7, 0, %v3074_v60  ;;  %v1671_v36 = vmul.u32 %v1664_v22, %v1655_v20  ;;  %vm1673_vm6 = vc.u32 %v4454_v37, %v4431_v19  ;;  %vm1296_vm8 = vcmp.eq.s32.totalorder %v4445_v46, 0 }
 0x177   : > { %v1792_v7 = vsub.s32 32, %v1791_v16  ;;  %v1796_v3 = vsub.s32 4294967266, %v1791_v16  ;;  %v1675_v34 = vsel %vm1673_vm6, %v1674_v43, %v4432_v6  ;;  %v2136_v25 = vand.u32 2147483647, %v6403_v56 }
 0x178   : > { %vm1295_vm9 = vcmp.lt.s32.totalorder %v4445_v46, 2  ;;  %v1676_v0 = vadd.s32 %v1675_v34, %v1671_v36  ;;  %v4489_v24 = vshrl.u32 %v6367_v21, %v2151_v41  ;;  %v2153_v40 = vshll.u32 %v6367_v21, %v4345_v50 }
 0x179   : > { %v2154_v54 = vshrl.u32 %v6373_v35, %v2151_v41  ;;  %vm1292_vm10 = vweird.f32 %v3611_v29  ;;  %v1793_v61 = vshll.u32 %v4400_v4, %v1791_v16  ;;  %v1794_v30 = vshrl.u32 %v1776_v32, %v1792_v7 }
 0x17a   : > { %v1797_v33 = vadd.s32 127, %v1796_v3  ;;  %v2157_v23 = vshrl.u32 %v6374_v38, %v2151_v41  ;;  %v1677_v11 = vadd.s32 536870912, %v1676_v0  ;;  %v2156_v55 = vshll.u32 %v6373_v35, %v4345_v50 }
 0x17b   : > { %v2160_v45 = vshrl.u32 %v6375_v17, %v2151_v41  ;;  %v2163_v48 = vshrl.u32 %v6376_v53, %v2151_v41  ;;  %v1795_v31 = vor.u32 %v1794_v30, %v1793_v61  ;;  %v2143_v58 = vand.u32 8388607, %v2136_v25  ;;  %v3230_v4 = vpop.eup %3229 }
 0x17c   : > { %v1798_v22 = vshll.u32 %v1797_v33, 23  ;;  %v2166_v57 = vshrl.u32 %v6377_v1, %v2151_v41  ;;  %v1678_v2 = vshrl.u32 %v1677_v11, 30  ;;  %v2155_v14 = vor.u32 %v2154_v54, %v2153_v40  ;;  %v3232_v42 = vpop.eup %3231 }
 0x17d   : > { %v2159_v6 = vshll.u32 %v6374_v38, %v4345_v50  ;;  %v2162_v62 = vshll.u32 %v6375_v17, %v4345_v50  ;;  %v1300_v49 = vxor.u32 2147483648, %v3230_v4  ;;  %v2158_v27 = vor.u32 %v2157_v23, %v2156_v55 }
 0x17e   : > { %v1799_v5 = vor.u32 4788187, %v1798_v22  ;;  %v2165_v60 = vshll.u32 %v6376_v53, %v4345_v50  ;;  %vm1835_vm2 = vcmp.gt.s32.totalorder %v4436_v9, 0  ;;  %v1297_v28 = vxor.u32 2147483648, %v3232_v42 }
 0x17f   : > { %v1679_v20 = vshll.u32 %v1678_v2, 30  ;;  %v2161_v12 = vor.u32 %v2160_v45, %v2159_v6  ;;  %v2164_v41 = vor.u32 %v2163_v48, %v2162_v62  ;;  %v1301_v43 = vsel %vm1299_vm3, %v1300_v49, %v3232_v42 }
 0x180   : > { %v1800_v32 = vand.u32 2147483647, %v1799_v5  ;;  %v1802_v16 = vcvt.s32.f32 %v1795_v31  ;;  %v2167_v36 = vor.u32 %v2166_v57, %v2165_v60  ;;  %v1298_v7 = vsel %vm1296_vm8, %v3230_v4, %v1297_v28 }
 0x181   : > { %v4515_v3 = vsub.s32 %v1676_v0, %v1679_v20  ;;  %v2144_v34 = vor.u32 8388608, %v2143_v58  ;;  %vm2168_vm4 = vcmp.lt.s32.totalorder %v4475_v52, 1  ;;  %v1302_v50 = vsel %vm1295_vm9, %v1298_v7, %v1301_v43 }
 0x182   : > { %v1803_v40 = vmul.f32 %v1802_v16, %v1800_v32  ;;  %vm2169_vm12 = vcmp.lt.s32.totalorder %v4475_v52, 2  ;;  %vm2170_vm15 = vcmp.lt.s32.totalorder %v4475_v52, 3  ;;  %v1303_v54 = vsel %vm1292_vm10, nan, %v1302_v50 }
 0x183   : > { %v1682_v61 = vsub.s32 0, %v4515_v3  ;;  %vm2171_vm1 = vcmp.lt.s32.totalorder %v4475_v52, 4  ;;  %v2176_v0 = vsel %vm2168_vm4, %v2155_v14, %v2158_v27  ;;  %2480 = vxpose.xlu0.b32.cont [3/5] (short) %v1303_v54, 128  ;;  %v2180_v46 = vsel %vm2168_vm4, %v2158_v27, %v2161_v12 }
 0x184   : > { %v1804_v30 = vxor.u32 2147483648, %v1803_v40  ;;  %v2177_v33 = vsel %vm2171_vm1, %v2164_v41, 920167782  ;;  %v2181_v23 = vsel %vm2171_vm1, %v2167_v36, 1326507024  ;;  %v2184_v58 = vshll.u32 %v2144_v34, 8 }
 0x185   : > { %v3069_v11 = vmin.u32 %v1682_v61, %v4515_v3  ;;  %v2173_v55 = vsel %vm2171_vm1, %v2161_v12, 2102212464  ;;  %v2178_v29 = vsel %vm2170_vm15, %v2161_v12, %v2177_v33  ;;  %v2182_v45 = vsel %vm2170_vm15, %v2164_v41, %v2181_v23 }
 0x186   : > { %v1805_v48 = vsel %vm1722_vm11, %v1804_v30, %v1803_v40  ;;  %v2179_v31 = vsel %vm2169_vm12, %v2176_v0, %v2178_v29  ;;  %v2183_v22 = vsel %vm2169_vm12, %v2180_v46, %v2182_v45  ;;  %v1702_v6 = vsub.s32 4, %v1678_v2 }
 0x187   : > { %v1808_v57 = vsel %vm4449_vm14, %v3599_v26, %v1805_v48  ;;  %v1684_v4 = vclz %v3069_v11  ;;  %v2172_v62 = vsel %vm2168_vm4, %v4489_v24, %v2155_v14  ;;  %v2174_v42 = vsel %vm2170_vm15, %v2158_v27, %v2173_v55 }
 0x188   : > { %3233 = vcosq.f32 %v1808_v57  ;;  %v4549_v49 = vmul.u32.u64.low %v2184_v58, %v2183_v22  ;;  %v4550_v5 = vmul.u32.u64.high %v2184_v58, %v2183_v22, %v4549_v49  ;;  %v4559_v59 = vsel %vm1835_vm2, %v4436_v9, 0 }
 0x189   : > { %3235 = vsinq.f32 %v1808_v57  ;;  %v3070_v60 = vadd.s32 4294967294, %v1684_v4  ;;  %v4552_v28 = vmul.u32.u64.low %v2184_v58, %v2179_v31  ;;  %v4553_v20 = vmul.u32.u64.high %v2184_v58, %v2179_v31, %v4552_v28 }
 0x18a   : > { %v4562_v24 = vand.u32 31, %v4464_v15  ;;  %v4565_v14 = vadd.s32 1, %v4457_v63  ;;  %vm1618_vm11 = vcmp.lt.s32.totalorder %v3597_v13, 0  ;;  %v4569_v27 = vand.u32 3, %v4480_v18  ;;  %v6407_v63 = vld [vmem:[#allocation18_spill] sm:$0xff] }
 0x18b   : > { %vm3071_vm5 = vcmp.lt.s32.totalorder %v3070_v60, 0  ;;  %v4573_v12 = vsel %vm1618_vm11, %v1702_v6, %v1678_v2  ;;  %v2175_v9 = vsel %vm2169_vm12, %v2172_v62, %v2174_v42  ;;  %v2047_v41 = vsub.s32 32, %v4472_v44 }
 0x18c   : > { %vm4580_vm13 = vcmp.le.f32.partialorder %v1616_v39, 0.7853982  ;;  %v1687_v43 = vsel %vm3071_vm5, 0, %v3070_v60  ;;  %vm2193_vm14 = vc.u32 %v4550_v5, %v4552_v28  ;;  %v1672_v18 = vadd.s32 %v4431_v19, %v4454_v37 }
 0x18d   : > { %v1688_v2 = vsub.s32 32, %v1687_v43  ;;  %v1692_v32 = vsub.s32 4294967266, %v1687_v43  ;;  %v2194_v52 = vadd.s32 1, %v4553_v20  ;;  %v4590_v16 = vadd.s32 1, %v4467_v8 }
 0x18e   : > { %v4593_v36 = vshrl.u32 %v4442_v47, 5  ;;  %v1705_v39 = vsel %vm4580_vm13, 0, %v4573_v12  ;;  %v2191_v7 = vmul.u32 %v2184_v58, %v2175_v9  ;;  %vm1819_vm7 = vcmp.eq.s32.totalorder %v4569_v27, 2 }
 0x18f   : > { %v1689_v34 = vshll.u32 %v4515_v3, %v1687_v43  ;;  %v1690_v19 = vshrl.u32 %v1672_v18, %v1688_v2  ;;  %v1693_v37 = vadd.s32 127, %v1692_v32  ;;  %v2195_v50 = vsel %vm2193_vm14, %v2194_v52, %v4553_v20 }
 0x190   : > { %vm1816_vm3 = vcmp.eq.s32.totalorder %v4569_v27, 0  ;;  %v2196_v8 = vadd.s32 %v2195_v50, %v2191_v7  ;;  %v2032_v40 = vand.u32 2147483647, %v3856_v51  ;;  %v2050_v47 = vshrl.u32 %v6373_v35, %v2047_v41 }
 0x191   : > { %v2053_v54 = vshrl.u32 %v6374_v38, %v2047_v41  ;;  %vm1815_vm6 = vcmp.lt.s32.totalorder %v4569_v27, 2  ;;  %v1691_v61 = vor.u32 %v1690_v19, %v1689_v34  ;;  %v1694_v0 = vshll.u32 %v1693_v37, 23 }
 0x192   : > { %v2058_v3 = vshll.u32 %v6375_v17, %v4472_v44  ;;  %v2059_v30 = vshrl.u32 %v6376_v53, %v2047_v41  ;;  %vm1812_vm8 = vweird.f32 %v3599_v26  ;;  %v2197_v33 = vadd.s32 536870912, %v2196_v8 }
 0x193   : > { %v2048_v46 = vshrl.u32 %v6367_v21, %v2047_v41  ;;  %v2049_v23 = vshll.u32 %v6367_v21, %v4472_v44  ;;  %v2056_v11 = vshrl.u32 %v6375_v17, %v2047_v41  ;;  %vm1419_vm9 = vcmp.gt.s32.totalorder %v4565_v14, 0 }
 0x194   : > { %v1695_v55 = vor.u32 4788187, %v1694_v0  ;;  %v2052_v29 = vshll.u32 %v6373_v35, %v4472_v44  ;;  %v2060_v45 = vor.u32 %v2059_v30, %v2058_v3  ;;  %v2062_v48 = vshrl.u32 %v6377_v1, %v2047_v41 }
 0x195   : > { %v4618_v31 = vshrl.u32 %v2197_v33, 30  ;;  %v2039_v22 = vand.u32 8388607, %v2032_v40  ;;  %v2051_v58 = vor.u32 %v2050_v47, %v2049_v23  ;;  %v2055_v57 = vshll.u32 %v6374_v38, %v4472_v44  ;;  %v3234_v4 = vpop.eup %3233 }
 0x196   : > { %v1696_v6 = vand.u32 2147483647, %v1695_v55  ;;  %v1698_v62 = vcvt.s32.f32 %v1691_v61  ;;  %v2054_v42 = vor.u32 %v2053_v54, %v2052_v29  ;;  %v2061_v49 = vshll.u32 %v6376_v53, %v4472_v44  ;;  %v3236_v60 = vpop.eup %3235 }
 0x197   : > { %vm1523_vm10 = vcmp.gt.s32.totalorder %v4590_v16, 0  ;;  %v1820_v20 = vxor.u32 2147483648, %v3234_v4  ;;  %v2199_v9 = vshll.u32 %v4618_v31, 30  ;;  %v2057_v41 = vor.u32 %v2056_v11, %v2055_v57 }
 0x198   : > { %vm2067_vm2 = vcmp.lt.s32.totalorder %v4593_v36, 4  ;;  %v1817_v43 = vxor.u32 2147483648, %v3236_v60  ;;  %v1699_v18 = vmul.f32 %v1698_v62, %v1696_v6  ;;  %v2063_v2 = vor.u32 %v2062_v48, %v2061_v49 }
 0x199   : > { %v2073_v32 = vsel %vm2067_vm2, %v2060_v45, 920167782  ;;  %v1821_v52 = vsel %vm1819_vm7, %v1820_v20, %v3236_v60  ;;  %v4633_v7 = vsub.s32 %v2196_v8, %v2199_v9  ;;  %v2040_v44 = vor.u32 8388608, %v2039_v22  ;;  %v6406_v60 = vld [vmem:[#allocation20_spill] sm:$0xff]  ;;  %v6410_v9 = vld [vmem:[#allocation19_spill] sm:$0xff] }
 0x19a   : > { %vm2064_vm4 = vcmp.lt.s32.totalorder %v4593_v36, 1  ;;  %v1818_v34 = vsel %vm1816_vm3, %v3234_v4, %v1817_v43  ;;  %v1700_v19 = vxor.u32 2147483648, %v1699_v18  ;;  %vm2065_vm12 = vcmp.lt.s32.totalorder %v4593_v36, 2 }
 0x19b   : > { %vm2066_vm15 = vcmp.lt.s32.totalorder %v4593_v36, 3  ;;  %v1822_v37 = vsel %vm1815_vm6, %v1818_v34, %v1821_v52  ;;  %v2202_v50 = vsub.s32 0, %v4633_v7  ;;  %v2072_v8 = vsel %vm2064_vm4, %v2051_v58, %v2054_v42 }
 0x19c   : > { %v2074_v47 = vsel %vm2066_vm15, %v2057_v41, %v2073_v32  ;;  %v1823_v54 = vsel %vm1812_vm8, nan, %v1822_v37  ;;  %v1701_v61 = vsel %vm1618_vm11, %v1700_v19, %v1699_v18  ;;  %v2076_v0 = vsel %vm2064_vm4, %v2054_v42, %v2057_v41  ;;  %v6412_v18 = vld [vmem:[#allocation24_spill] sm:$0xff] }
 0x19d   : > { %v2077_v27 = vsel %vm2067_vm2, %v2063_v2, 1326507024  ;;  %2513 = vxpose.xlu1.b32.cont [4/5] (short) %v1823_v54, 128  ;;  %v1704_v3 = vsel %vm4580_vm13, %v3597_v13, %v1701_v61  ;;  %v3089_v30 = vmin.u32 %v2202_v50, %v4633_v7  ;;  %v2069_v26 = vsel %vm2067_vm2, %v2057_v41, 2102212464  ;;  %v6411_v41 = vld [vmem:[#allocation17_spill] sm:$0xff]  ;;  %v6413_v2 = vld [vmem:[#allocation40_spill] sm:$0xff] }
 0x19e   : > { %v2078_v33 = vsel %vm2066_vm15, %v2060_v45, %v2077_v27  ;;  %3237 = vcosq.f32 %v1704_v3  ;;  %v2075_v23 = vsel %vm2065_vm12, %v2072_v8, %v2074_v47  ;;  %v2080_v55 = vshll.u32 %v2040_v44, 8  ;;  %v6415_v54 = vld [vmem:[#allocation21_spill] sm:$0xff] }
 0x19f   : > { %v2079_v11 = vsel %vm2065_vm12, %v2076_v0, %v2078_v33  ;;  %v4670_v29 = vsel %vm1419_vm9, %v4565_v14, 0  ;;  %3239 = vsinq.f32 %v1704_v3  ;;  %v1709_v48 = vadd.s32 3, %v1705_v39  ;;  %v6416_v0 = vld [vmem:[#allocation14_spill] sm:$0xff] }
 0x1a0   : > { %v2204_v45 = vclz %v3089_v30  ;;  %v2068_v22 = vsel %vm2064_vm4, %v2048_v46, %v2051_v58  ;;  %v2070_v57 = vsel %vm2066_vm15, %v2054_v42, %v2069_v26  ;;  %v210_v20 = vadd.f32 %v6407_v63, %v6406_v60  ;;  %v6408_v46 = vld [vmem:[#allocation15_spill] sm:$0xff]  ;;  %v6409_v58 = vld [vmem:[#allocation16_spill] sm:$0xff] }
 0x1a1   : > { %v4680_v4 = vmul.u32.u64.low %v2080_v55, %v2079_v11  ;;  %v4681_v6 = vmul.u32.u64.high %v2080_v55, %v2079_v11, %v4680_v4  ;;  %v4683_v49 = vmul.u32.u64.low %v2080_v55, %v2075_v23  ;;  %v4684_v14 = vmul.u32.u64.high %v2080_v55, %v2075_v23, %v4683_v49 }
 0x1a2   : > { %v3090_v62 = vadd.s32 4294967294, %v2204_v45  ;;  %v4692_v12 = vsel %vm1523_vm10, %v4590_v16, 0  ;;  %v2222_v39 = vsub.s32 4, %v4618_v31  ;;  %v286_v42 = vmul.f32 %v6409_v58, %v6408_v46 }
 0x1a3   : > { %v209_v43 = vadd.f32 %v6411_v41, %v6410_v9  ;;  %v4701_v32 = vadd.f32 %v6413_v2, %v6412_v18  ;;  %vm2138_vm1 = vcmp.lt.s32.totalorder %v6403_v56, 0  ;;  %v2071_v52 = vsel %vm2065_vm12, %v2068_v22, %v2070_v57 }
 0x1a4   : > { %vm3091_vm11 = vcmp.lt.s32.totalorder %v3090_v62, 0  ;;  %v1710_v16 = vand.u32 3, %v1709_v48  ;;  %vm2089_vm5 = vc.u32 %v4681_v6, %v4683_v49  ;;  %v4708_v34 = vadd.f32 %v286_v42, %v210_v20 }
 0x1a5   : > { %6414 = vst [vmem:[#allocation36_spill] sm:$0xff] %v4701_v32  ;;  %v2207_v44 = vsel %vm3091_vm11, 0, %v3090_v62  ;;  %v2192_v19 = vadd.s32 %v4552_v28, %v4550_v5  ;;  %v2090_v8 = vadd.s32 1, %v4684_v14  ;;  %v2223_v47 = vsel %vm2138_vm1, %v2222_v39, %v4618_v31 }
 0x1a6   : > { %v2208_v37 = vsub.s32 32, %v2207_v44  ;;  %v2212_v50 = vsub.s32 4294967266, %v2207_v44  ;;  %v2087_v36 = vmul.u32 %v2080_v55, %v2071_v52  ;;  %v4718_v61 = vadd.f32 %v6415_v54, %v4708_v34  ;;  %v6417_v55 = vld [vmem:[#allocation25_spill] sm:$0xff] }
 0x1a7   : > { %v285_v27 = vmul.f32 %v6409_v58, %v6416_v0  ;;  %v2209_v3 = vshll.u32 %v4633_v7, %v2207_v44  ;;  %v2091_v28 = vsel %vm2089_vm5, %v2090_v8, %v4684_v14  ;;  %v4729_v11 = vshrl.u32 %v4670_v29, 5 }
 0x1a8   : > { %v2210_v30 = vshrl.u32 %v2192_v19, %v2208_v37  ;;  %v2213_v5 = vadd.s32 127, %v2212_v50  ;;  %v2092_v26 = vadd.s32 %v2091_v28, %v2087_v36  ;;  %v680_v33 = vand.u32 2147483647, %v4718_v61 }
 0x1a9   : > { %v683_v23 = vand.u32 2139095040, %v4718_v61  ;;  %v4726_v31 = vadd.f32 %v285_v27, %v209_v43  ;;  %v4733_v48 = vadd.f32 %v6413_v2, %v6417_v55  ;;  %vm4737_vm13 = vcmp.le.f32.partialorder %v2136_v25, 0.7853982 }
 0x1aa   : > { %v2211_v45 = vor.u32 %v2210_v30, %v2209_v3  ;;  %v2214_v7 = vshll.u32 %v2213_v5, 23  ;;  %v2093_v57 = vadd.s32 536870912, %v2092_v26  ;;  %vm1708_vm14 = vweird.f32 %v3597_v13  ;;  %v6420_v13 = vld [vmem:[#allocation23_spill] sm:$0xff] }
 0x1ab   : > { %v684_v4 = vshrl.u32 %v683_v23, 23  ;;  %v4743_v62 = vadd.f32 %v6415_v54, %v4726_v31  ;;  %v3238_v14 = vpop.eup %3237  ;;  %vm1712_vm7 = vcmp.eq.s32.totalorder %v1710_v16, 0  ;;  %v2225_v63 = vsel %vm4737_vm13, 0, %v2223_v47 }
 0x1ac   : > { %v2215_v60 = vor.u32 4788187, %v2214_v7  ;;  %v3240_v20 = vpop.eup %3239  ;;  %v1716_v39 = vxor.u32 2147483648, %v3238_v14  ;;  %v2094_v25 = vshrl.u32 %v2093_v57, 30  ;;  %v687_v58 = vand.u32 8388607, %v680_v33 }
 0x1ad   : > { %v3032_v46 = vadd.s32 4294967169, %v684_v4  ;;  %v1713_v42 = vxor.u32 2147483648, %v3240_v20  ;;  %vm1715_vm3 = vcmp.eq.s32.totalorder %v1710_v16, 2  ;;  %v2218_v41 = vcvt.s32.f32 %v2211_v45 }
 0x1ae   : > { %v2216_v9 = vand.u32 2147483647, %v2215_v60  ;;  %v1717_v43 = vsel %vm1715_vm3, %v1716_v39, %v3240_v20  ;;  %v2095_v18 = vshll.u32 %v2094_v25, 30  ;;  %v579_v52 = vand.u32 2139095040, %v4743_v62 }
 0x1af   : > { %v690_v2 = vadd.s32 1, %v3032_v46  ;;  %vm1711_vm6 = vcmp.lt.s32.totalorder %v1710_v16, 2  ;;  %v1714_v44 = vsel %vm1712_vm7, %v3238_v14, %v1713_v42  ;;  %v2229_v37 = vadd.s32 3, %v2225_v63 }
 0x1b0   : > { %v2219_v19 = vmul.f32 %v2218_v41, %v2216_v9  ;;  %v1718_v50 = vsel %vm1711_vm6, %v1714_v44, %v1717_v43  ;;  %v4752_v8 = vsub.s32 %v2092_v26, %v2095_v18  ;;  %v688_v47 = vor.u32 8388608, %v687_v58 }
 0x1b1   : > { %vm691_vm8 = vcmp.gt.s32.totalorder %v690_v2, 0  ;;  %v1719_v36 = vsel %vm1708_vm14, nan, %v1718_v50  ;;  %v2118_v0 = vsub.s32 4, %v2094_v25  ;;  %vm2034_vm9 = vcmp.lt.s32.totalorder %v3856_v51, 0 }
 0x1b2   : > { %v2220_v54 = vxor.u32 2147483648, %v2219_v19  ;;  %v692_v27 = vsel %vm691_vm8, %v690_v2, 0  ;;  %2481 = vxpose.xlu0.b32.cont [4/5] (short) %v1719_v36, 128  ;;  %v2098_v3 = vsub.s32 0, %v4752_v8  ;;  %v580_v30 = vshrl.u32 %v579_v52, 23 }
 0x1b3   : > { %v694_v16 = vand.u32 31, %v692_v27  ;;  %v4760_v28 = vand.u32 3, %v2229_v37  ;;  %v2088_v26 = vadd.s32 %v4683_v49, %v4681_v6  ;;  %v1096_v23 = vand.u32 2147483647, %v6420_v13 }
 0x1b4   : > { %v2221_v5 = vsel %vm2138_vm1, %v2220_v54, %v2219_v19  ;;  %v3085_v45 = vmin.u32 %v2098_v3, %v4752_v8  ;;  %v576_v57 = vand.u32 2147483647, %v4743_v62  ;;  %v4772_v4 = vsel %vm2034_vm9, %v2118_v0, %v2094_v25 }
 0x1b5   : > { %v2224_v55 = vsel %vm4737_vm13, %v6403_v56, %v2221_v5  ;;  %v695_v7 = vsub.s32 32, %v694_v16  ;;  %v693_v14 = vshrl.u32 %v692_v27, 5  ;;  %v4774_v60 = vshll.u32 %v688_v47, 8 }
 0x1b6   : > { %3241 = vcosq.f32 %v2224_v55  ;;  %v2100_v6 = vclz %v3085_v45  ;;  %v697_v49 = vshll.u32 %v6367_v21, %v694_v16  ;;  %v3028_v63 = vadd.s32 4294967169, %v580_v30 }
 0x1b7   : > { %3243 = vsinq.f32 %v2224_v55  ;;  %vm4779_vm10 = vcmp.le.f32.partialorder %v2032_v40, 0.7853982  ;;  %v698_v20 = vshrl.u32 %v6373_v35, %v695_v7  ;;  %v700_v39 = vshll.u32 %v6373_v35, %v694_v16 }
 0x1b8   : > { %v701_v25 = vshrl.u32 %v6374_v38, %v695_v7  ;;  %v703_v46 = vshll.u32 %v6374_v38, %v694_v16  ;;  %v3086_v58 = vadd.s32 4294967294, %v2100_v6  ;;  %v704_v42 = vshrl.u32 %v6375_v17, %v695_v7 }
 0x1b9   : > { %v706_v9 = vshll.u32 %v6375_v17, %v694_v16  ;;  %v707_v41 = vshrl.u32 %v6376_v53, %v695_v7  ;;  %v699_v43 = vor.u32 %v698_v20, %v697_v49  ;;  %v709_v18 = vshll.u32 %v6376_v53, %v694_v16 }
 0x1ba   : > { %v702_v40 = vor.u32 %v701_v25, %v700_v39  ;;  %v710_v2 = vshrl.u32 %v6377_v1, %v695_v7  ;;  %vm3087_vm2 = vcmp.lt.s32.totalorder %v3086_v58, 0  ;;  %v696_v52 = vshrl.u32 %v6367_v21, %v695_v7 }
 0x1bb   : > { %v705_v44 = vor.u32 %v704_v42, %v703_v46  ;;  %v708_v19 = vor.u32 %v707_v41, %v706_v9  ;;  %v2103_v37 = vsel %vm3087_vm2, 0, %v3086_v58  ;;  %vm712_vm4 = vcmp.lt.s32.totalorder %v693_v14, 1 }
 0x1bc   : > { %v711_v50 = vor.u32 %v710_v2, %v709_v18  ;;  %vm713_vm12 = vcmp.lt.s32.totalorder %v693_v14, 2  ;;  %v2104_v47 = vsub.s32 32, %v2103_v37  ;;  %v2108_v36 = vsub.s32 4294967266, %v2103_v37 }
 0x1bd   : > { %vm714_vm15 = vcmp.lt.s32.totalorder %v693_v14, 3  ;;  %vm715_vm1 = vcmp.lt.s32.totalorder %v693_v14, 4  ;;  %vm2232_vm11 = vcmp.eq.s32.totalorder %v4760_v28, 0  ;;  %v2105_v54 = vshll.u32 %v4752_v8, %v2103_v37 }
 0x1be   : > { %v717_v0 = vsel %vm715_vm1, %v705_v44, 2102212464  ;;  %v720_v27 = vsel %vm712_vm4, %v699_v43, %v702_v40  ;;  %v721_v3 = vsel %vm715_vm1, %v708_v19, 920167782  ;;  %vm2231_vm5 = vcmp.lt.s32.totalorder %v4760_v28, 2 }
 0x1bf   : > { %v2106_v16 = vshrl.u32 %v2088_v26, %v2104_v47  ;;  %v2109_v30 = vadd.s32 127, %v2108_v36  ;;  %v716_v5 = vsel %vm712_vm4, %v696_v52, %v699_v43  ;;  %v722_v55 = vsel %vm714_vm15, %v705_v44, %v721_v3 }
 0x1c0   : > { %vm2228_vm13 = vweird.f32 %v6403_v56  ;;  %v718_v45 = vsel %vm714_vm15, %v702_v40, %v717_v0  ;;  %v723_v7 = vsel %vm713_vm12, %v720_v27, %v722_v55  ;;  %v724_v8 = vsel %vm712_vm4, %v702_v40, %v705_v44 }
 0x1c1   : > { %v725_v6 = vsel %vm715_vm1, %v711_v50, 1326507024  ;;  %v2107_v49 = vor.u32 %v2106_v16, %v2105_v54  ;;  %v2110_v20 = vshll.u32 %v2109_v30, 23  ;;  %v2121_v26 = vsel %vm4779_vm10, 0, %v4772_v4 }
 0x1c2   : > { %v726_v39 = vsel %vm714_vm15, %v708_v19, %v725_v6  ;;  %v4809_v46 = vmul.u32.u64.low %v4774_v60, %v723_v7  ;;  %v4810_v58 = vmul.u32.u64.high %v4774_v60, %v723_v7, %v4809_v46  ;;  %v583_v42 = vand.u32 8388607, %v576_v57 }
 0x1c3   : > { %v727_v25 = vsel %vm713_vm12, %v724_v8, %v726_v39  ;;  %v3242_v9 = vpop.eup %3241  ;;  %v2111_v41 = vor.u32 4788187, %v2110_v20  ;;  %v719_v43 = vsel %vm713_vm12, %v716_v5, %v718_v45  ;;  %vm2235_vm14 = vcmp.eq.s32.totalorder %v4760_v28, 2  ;;  %v6423_v5 = vld [vmem:[#allocation35_spill] sm:$0xff] }
 0x1c4   : > { %v4817_v40 = vmul.u32.u64.low %v4774_v60, %v727_v25  ;;  %v4818_v18 = vmul.u32.u64.high %v4774_v60, %v727_v25, %v4817_v40  ;;  %v3244_v4 = vpop.eup %3243  ;;  %v2236_v2 = vxor.u32 2147483648, %v3242_v9  ;;  %v586_v52 = vadd.s32 1, %v3028_v63  ;;  %v6424_v20 = vld [vmem:[#allocation31_spill] sm:$0xff] }
 0x1c5   : > { %v4823_v44 = vand.u32 8388607, %v1096_v23  ;;  %v2233_v19 = vxor.u32 2147483648, %v3244_v4  ;;  %v2112_v37 = vand.u32 2147483647, %v2111_v41  ;;  %v2114_v50 = vcvt.s32.f32 %v2107_v49 }
 0x1c6   : > { %v2125_v47 = vadd.s32 3, %v2121_v26  ;;  %v2237_v36 = vsel %vm2235_vm14, %v2236_v2, %v3244_v4  ;;  %v735_v14 = vmul.u32 %v4774_v60, %v719_v43  ;;  %v738_v54 = vadd.s32 1, %v4810_v58 }
 0x1c7   : > { %vm587_vm7 = vcmp.gt.s32.totalorder %v586_v52, 0  ;;  %v2234_v0 = vsel %vm2232_vm11, %v3242_v9, %v2233_v19  ;;  %v2115_v27 = vmul.f32 %v2114_v50, %v2112_v37  ;;  %vm737_vm3 = vc.u32 %v4818_v18, %v4809_v46 }
 0x1c8   : > { %v584_v63 = vor.u32 8388608, %v583_v42  ;;  %v2238_v3 = vsel %vm2231_vm5, %v2234_v0, %v2237_v36  ;;  %v739_v16 = vsel %vm737_vm3, %v738_v54, %v4810_v58  ;;  %v588_v30 = vsel %vm587_vm7, %v586_v52, 0 }
 0x1c9   : > { %v1114_v60 = vshrl.u32 %v6373_v35, %v6423_v5  ;;  %v4837_v55 = vand.u32 31, %v4670_v29  ;;  %v2239_v45 = vsel %vm2228_vm13, nan, %v2238_v3  ;;  %v2116_v7 = vxor.u32 2147483648, %v2115_v27 }
 0x1ca   : > { %v740_v8 = vadd.s32 %v739_v16, %v735_v14  ;;  %2514 = vxpose.xlu1.b32.end [5/5] (short) %v2239_v45, 128  ;;  %v4841_v6 = vand.u32 3, %v2125_v47  ;;  %v590_v49 = vand.u32 31, %v588_v30  ;;  %v4845_v28 = vshrl.u32 %v6367_v21, %v6423_v5 }
 0x1cb   : > { %v1113_v26 = vshll.u32 %v6367_v21, %v6424_v20  ;;  %v2117_v29 = vsel %vm2034_vm9, %v2116_v7, %v2115_v27  ;;  %v4851_v25 = vshll.u32 %v584_v63, 8  ;;  %v1104_v56 = vor.u32 8388608, %v4823_v44 }
 0x1cc   : > { %v741_v39 = vadd.s32 536870912, %v740_v8  ;;  %v2120_v58 = vsel %vm4779_vm10, %v3856_v51, %v2117_v29  ;;  %v589_v42 = vshrl.u32 %v588_v30, 5  ;;  %v591_v9 = vsub.s32 32, %v590_v49 }
 0x1cd   : > { %v4857_v41 = vor.u32 %v1114_v60, %v1113_v26  ;;  %3245 = vcosq.f32 %v2120_v58  ;;  %v593_v40 = vshll.u32 %v6367_v21, %v590_v49  ;;  %v596_v4 = vshll.u32 %v6373_v35, %v590_v49 }
 0x1ce   : > { %v742_v43 = vshrl.u32 %v741_v39, 30  ;;  %3247 = vsinq.f32 %v2120_v58  ;;  %v594_v2 = vshrl.u32 %v6373_v35, %v591_v9  ;;  %v597_v52 = vshrl.u32 %v6374_v38, %v591_v9 }
 0x1cf   : > { %v599_v19 = vshll.u32 %v6374_v38, %v590_v49  ;;  %v600_v22 = vshrl.u32 %v6375_v17, %v591_v9  ;;  %v602_v50 = vshll.u32 %v6375_v17, %v590_v49  ;;  %v603_v47 = vshrl.u32 %v6376_v53, %v591_v9 }
 0x1d0   : > { %v743_v37 = vshll.u32 %v742_v43, 30  ;;  %v595_v36 = vor.u32 %v594_v2, %v593_v40  ;;  %v598_v14 = vor.u32 %v597_v52, %v596_v4  ;;  %v605_v54 = vshll.u32 %v6376_v53, %v590_v49 }
 0x1d1   : > { %v606_v0 = vshrl.u32 %v6377_v1, %v591_v9  ;;  %vm682_vm6 = vcmp.lt.s32.totalorder %v4718_v61, 0  ;;  %v601_v63 = vor.u32 %v600_v22, %v599_v19  ;;  %v604_v3 = vor.u32 %v603_v47, %v602_v50 }
 0x1d2   : > { %v4870_v27 = vsub.s32 %v740_v8, %v743_v37  ;;  %v1116_v16 = vshll.u32 %v6373_v35, %v6424_v20  ;;  %v736_v30 = vadd.s32 %v4809_v46, %v4818_v18  ;;  %vm611_vm8 = vcmp.lt.s32.totalorder %v589_v42, 4 }
 0x1d3   : > { %v607_v60 = vor.u32 %v606_v0, %v605_v54  ;;  %v1117_v45 = vshrl.u32 %v6374_v38, %v6423_v5  ;;  %v592_v49 = vshrl.u32 %v6367_v21, %v591_v9  ;;  %vm608_vm9 = vcmp.lt.s32.totalorder %v589_v42, 1 }
 0x1d4   : > { %v746_v7 = vsub.s32 0, %v4870_v27  ;;  %v613_v8 = vsel %vm611_vm8, %v601_v63, 2102212464  ;;  %vm2131_vm10 = vcmp.eq.s32.totalorder %v4841_v6, 2  ;;  %vm609_vm2 = vcmp.lt.s32.totalorder %v589_v42, 2 }
 0x1d5   : > { %vm610_vm4 = vcmp.lt.s32.totalorder %v589_v42, 3  ;;  %v616_v26 = vsel %vm608_vm9, %v595_v36, %v598_v14  ;;  %v617_v29 = vsel %vm611_vm8, %v604_v3, 920167782  ;;  %vm2128_vm12 = vcmp.eq.s32.totalorder %v4841_v6, 0 }
 0x1d6   : > { %v3033_v46 = vmin.u32 %v746_v7, %v4870_v27  ;;  %v612_v18 = vsel %vm608_vm9, %v592_v49, %v595_v36  ;;  %v614_v39 = vsel %vm610_vm4, %v598_v14, %v613_v8  ;;  %v618_v58 = vsel %vm610_vm4, %v601_v63, %v617_v29 }
 0x1d7   : > { %vm2127_vm15 = vcmp.lt.s32.totalorder %v4841_v6, 2  ;;  %v766_v9 = vsub.s32 4, %v742_v43  ;;  %v619_v40 = vsel %vm609_vm2, %v616_v26, %v618_v58  ;;  %v620_v4 = vsel %vm608_vm9, %v598_v14, %v601_v63 }
 0x1d8   : > { %v621_v2 = vsel %vm611_vm8, %v607_v60, 1326507024  ;;  %vm2124_vm1 = vweird.f32 %v3856_v51  ;;  %v748_v52 = vclz %v3033_v46  ;;  %v4891_v19 = vor.u32 %v1117_v45, %v1116_v16 }
 0x1d9   : > { %v1119_v37 = vshll.u32 %v6374_v38, %v6424_v20  ;;  %v1120_v22 = vshrl.u32 %v6375_v17, %v6423_v5  ;;  %v615_v50 = vsel %vm609_vm2, %v612_v18, %v614_v39  ;;  %v622_v47 = vsel %vm610_vm4, %v604_v3, %v621_v2 }
 0x1da   : > { %v4900_v36 = vmul.u32.u64.low %v4851_v25, %v619_v40  ;;  %v4901_v14 = vmul.u32.u64.high %v4851_v25, %v619_v40, %v4900_v36  ;;  %v3034_v54 = vadd.s32 4294967294, %v748_v52  ;;  %v623_v0 = vsel %vm609_vm2, %v620_v4, %v622_v47  ;;  %v3246_v60 = vpop.eup %3245 }
 0x1db   : > { %v1122_v63 = vshll.u32 %v6375_v17, %v6424_v20  ;;  %v1123_v16 = vshrl.u32 %v6376_v53, %v6423_v5  ;;  %v4911_v45 = vsel %vm682_vm6, %v766_v9, %v742_v43  ;;  %v1126_v49 = vshrl.u32 %v6377_v1, %v6423_v5  ;;  %v3248_v42 = vpop.eup %3247 }
 0x1dc   : > { %v4914_v3 = vmul.u32.u64.low %v4851_v25, %v623_v0  ;;  %v4915_v7 = vmul.u32.u64.high %v4851_v25, %v623_v0, %v4914_v3  ;;  %v2132_v8 = vxor.u32 2147483648, %v3246_v60  ;;  %vm3035_vm11 = vcmp.lt.s32.totalorder %v3034_v54, 0 }
 0x1dd   : > { %v631_v26 = vmul.u32 %v4851_v25, %v615_v50  ;;  %v1121_v29 = vor.u32 %v1120_v22, %v1119_v37  ;;  %v2129_v46 = vxor.u32 2147483648, %v3248_v42  ;;  %vm4922_vm5 = vcmp.le.f32.partialorder %v680_v33, 0.7853982 }
 0x1de   : > { %v751_v43 = vsel %vm3035_vm11, 0, %v3034_v54  ;;  %v634_v39 = vadd.s32 1, %v4901_v14  ;;  %v1125_v58 = vshll.u32 %v6376_v53, %v6424_v20  ;;  %v2133_v5 = vsel %vm2131_vm10, %v2132_v8, %v3248_v42  ;;  %v6427_v54 = vld [vmem:[#allocation33_spill] sm:$0xff] }
 0x1df   : > { %v752_v9 = vsub.s32 32, %v751_v43  ;;  %v756_v40 = vsub.s32 4294967266, %v751_v43  ;;  %v1124_v25 = vor.u32 %v1123_v16, %v1122_v63  ;;  %v2130_v4 = vsel %vm2128_vm12, %v3246_v60, %v2129_v46 }
 0x1e0   : > { %v753_v33 = vshll.u32 %v4870_v27, %v751_v43  ;;  %vm633_vm13 = vc.u32 %v4915_v7, %v4900_v36  ;;  %v1127_v2 = vor.u32 %v1126_v49, %v1125_v58  ;;  %v2134_v52 = vsel %vm2127_vm15, %v2130_v4, %v2133_v5 }
 0x1e1   : > { %v754_v37 = vshrl.u32 %v736_v30, %v752_v9  ;;  %v757_v20 = vadd.s32 127, %v756_v40  ;;  %v635_v22 = vsel %vm633_vm13, %v634_v39, %v4901_v14  ;;  %v2135_v50 = vsel %vm2124_vm1, nan, %v2134_v52 }
 0x1e2   : > { %v636_v47 = vadd.s32 %v635_v22, %v631_v26  ;;  %vm1128_vm14 = vcmp.lt.s32.totalorder %v6427_v54, 1  ;;  %vm1129_vm7 = vcmp.lt.s32.totalorder %v6427_v54, 2  ;;  %2482 = vxpose.xlu0.b32.end [5/5] (short) %v2135_v50, 128  ;;  %vm1131_vm3 = vcmp.lt.s32.totalorder %v6427_v54, 4 }
 0x1e3   : > { %v755_v27 = vor.u32 %v754_v37, %v753_v33  ;;  %v758_v0 = vshll.u32 %v757_v20, 23  ;;  %v1136_v6 = vsel %vm1128_vm14, %v4857_v41, %v4891_v19  ;;  %vm1130_vm8 = vcmp.lt.s32.totalorder %v6427_v54, 3 }
 0x1e4   : > { %v637_v30 = vadd.s32 536870912, %v636_v47  ;;  %v1137_v51 = vsel %vm1131_vm3, %v1124_v25, 920167782  ;;  %v1140_v14 = vsel %vm1128_vm14, %v4891_v19, %v1121_v29  ;;  %v1133_v16 = vsel %vm1131_vm3, %v1121_v29, 2102212464 }
 0x1e5   : > { %v759_v63 = vor.u32 4788187, %v758_v0  ;;  %v1138_v60 = vsel %vm1130_vm8, %v1121_v29, %v1137_v51  ;;  %v1141_v3 = vsel %vm1131_vm3, %v1127_v2, 1326507024  ;;  %v1144_v26 = vshll.u32 %v1104_v56, 8 }
 0x1e6   : > { %v638_v49 = vshrl.u32 %v637_v30, 30  ;;  %v1139_v42 = vsel %vm1129_vm7, %v1136_v6, %v1138_v60  ;;  %v1142_v8 = vsel %vm1130_vm8, %v1124_v25, %v1141_v3  ;;  %v762_v43 = vcvt.s32.f32 %v755_v27  ;;  %v6428_v27 = vld [vmem:[#allocation22_spill] sm:$0xff] }
 0x1e7   : > { %v760_v46 = vand.u32 2147483647, %v759_v63  ;;  %v769_v39 = vsel %vm4922_vm5, 0, %v4911_v45  ;;  %v1143_v29 = vsel %vm1129_vm7, %v1140_v14, %v1142_v8  ;;  %v1132_v5 = vsel %vm1128_vm14, %v4845_v28, %v4857_v41 }
 0x1e8   : > { %v639_v58 = vshll.u32 %v638_v49, 30  ;;  %v4969_v9 = vmul.u32.u64.low %v1144_v26, %v1143_v29  ;;  %v4970_v40 = vmul.u32.u64.high %v1144_v26, %v1143_v29, %v4969_v9  ;;  %v1134_v56 = vsel %vm1130_vm8, %v4891_v19, %v1133_v16 }
 0x1e9   : > { %v763_v44 = vmul.f32 %v762_v43, %v760_v46  ;;  %v4975_v25 = vmul.u32.u64.low %v1144_v26, %v1139_v42  ;;  %v4976_v4 = vmul.u32.u64.high %v1144_v26, %v1139_v42, %v4975_v25  ;;  %v4980_v45 = vshrl.u32 %v4692_v12, 5  ;;  %v6431_v43 = vld [vmem:[#allocation34_spill] sm:$0xff] }
 0x1ea   : > { %v4983_v33 = vand.u32 31, %v4692_v12  ;;  %v4985_v2 = vsub.s32 %v636_v47, %v639_v58  ;;  %v662_v28 = vsub.s32 4, %v638_v49  ;;  %v4988_v41 = vsub.s32 32, %v4837_v55 }
 0x1eb   : > { %v2243_v52 = vand.u32 2139095040, %v4701_v32  ;;  %v2347_v19 = vand.u32 2139095040, %v4733_v48  ;;  %v764_v37 = vxor.u32 2147483648, %v763_v44  ;;  %v773_v20 = vadd.s32 3, %v769_v39 }
 0x1ec   : > { %v642_v22 = vsub.s32 0, %v4985_v2  ;;  %v1135_v50 = vsel %vm1129_vm7, %v1132_v5, %v1134_v56  ;;  %vm1153_vm9 = vc.u32 %v4970_v40, %v4975_v25  ;;  %vm578_vm10 = vcmp.lt.s32.totalorder %v4743_v62, 0 }
 0x1ed   : > { %v765_v12 = vsel %vm682_vm6, %v764_v37, %v763_v44  ;;  %v1154_v47 = vadd.s32 1, %v4976_v4  ;;  %v992_v0 = vand.u32 2147483647, %v6428_v27  ;;  %v5003_v6 = vsub.s32 32, %v4983_v33 }
 0x1ee   : > { %v768_v54 = vsel %vm4922_vm5, %v4718_v61, %v765_v12  ;;  %v3029_v30 = vmin.u32 %v642_v22, %v4985_v2  ;;  %v5011_v51 = vsel %vm578_vm10, %v662_v28, %v638_v49  ;;  %v5013_v14 = vshrl.u32 %v2347_v19, 23 }
 0x1ef   : > { %3249 = vcosq.f32 %v768_v54  ;;  %v1151_v63 = vmul.u32 %v1144_v26, %v1135_v50  ;;  %v1155_v16 = vsel %vm1153_vm9, %v1154_v47, %v4976_v4  ;;  %v5016_v60 = vand.u32 3, %v773_v20 }
 0x1f0   : > { %3251 = vsinq.f32 %v768_v54  ;;  %vm5020_vm6 = vcmp.le.f32.partialorder %v576_v57, 0.7853982  ;;  %v644_v3 = vclz %v3029_v30  ;;  %v632_v49 = vadd.s32 %v4900_v36, %v4915_v7  ;;  %v6432_v7 = vld [vmem:[#allocation30_spill] sm:$0xff] }
 0x1f1   : > { %v665_v42 = vsel %vm5020_vm6, 0, %v5011_v51  ;;  %v1156_v8 = vadd.s32 %v1155_v16, %v1151_v63  ;;  %v5031_v26 = vand.u32 8388607, %v992_v0  ;;  %v1010_v57 = vshrl.u32 %v6373_v35, %v6431_v43 }
 0x1f2   : > { %v3030_v46 = vadd.s32 4294967294, %v644_v3  ;;  %v1013_v39 = vshrl.u32 %v6374_v38, %v6431_v43  ;;  %v1016_v29 = vshrl.u32 %v6375_v17, %v6431_v43  ;;  %v1018_v58 = vshll.u32 %v6375_v17, %v6432_v7 }
 0x1f3   : > { %v1157_v36 = vadd.s32 536870912, %v1156_v8  ;;  %v1019_v5 = vshrl.u32 %v6376_v53, %v6431_v43  ;;  %v1022_v9 = vshrl.u32 %v6377_v1, %v6431_v43  ;;  %v1009_v44 = vshll.u32 %v6367_v21, %v6432_v7 }
 0x1f4   : > { %vm3031_vm2 = vcmp.lt.s32.totalorder %v3030_v46, 0  ;;  %v1012_v56 = vshll.u32 %v6373_v35, %v6432_v7  ;;  %v1015_v4 = vshll.u32 %v6374_v38, %v6432_v7  ;;  %v1021_v20 = vshll.u32 %v6376_v53, %v6432_v7  ;;  %v6433_v7 = vld [vmem:[#allocation32_spill] sm:$0xff] }
 0x1f5   : > { %v647_v28 = vsel %vm3031_vm2, 0, %v3030_v46  ;;  %v5051_v19 = vshrl.u32 %v1157_v36, 30  ;;  %v1020_v37 = vor.u32 %v1019_v5, %v1018_v58  ;;  %vm779_vm4 = vcmp.eq.s32.totalorder %v5016_v60, 2 }
 0x1f6   : > { %v648_v22 = vsub.s32 32, %v647_v28  ;;  %v652_v50 = vsub.s32 4294967266, %v647_v28  ;;  %v1008_v12 = vshrl.u32 %v6367_v21, %v6431_v43  ;;  %v1017_v47 = vor.u32 %v1016_v29, %v1015_v4 }
 0x1f7   : > { %vm776_vm12 = vcmp.eq.s32.totalorder %v5016_v60, 0  ;;  %v1159_v54 = vshll.u32 %v5051_v19, 30  ;;  %v1011_v30 = vor.u32 %v1010_v57, %v1009_v44  ;;  %v1014_v63 = vor.u32 %v1013_v39, %v1012_v56 }
 0x1f8   : > { %v1023_v16 = vor.u32 %v1022_v9, %v1021_v20  ;;  %vm775_vm15 = vcmp.lt.s32.totalorder %v5016_v60, 2  ;;  %v649_v3 = vshll.u32 %v4985_v2, %v647_v28  ;;  %v650_v46 = vshrl.u32 %v632_v49, %v648_v22 }
 0x1f9   : > { %v653_v36 = vadd.s32 127, %v652_v50  ;;  %vm1027_vm1 = vcmp.lt.s32.totalorder %v6433_v7, 4  ;;  %vm772_vm11 = vweird.f32 %v4718_v61  ;;  %v5064_v58 = vsub.s32 %v1156_v8, %v1159_v54 }
 0x1fa   : > { %v1000_v43 = vor.u32 8388608, %v5031_v26  ;;  %vm1024_vm5 = vcmp.lt.s32.totalorder %v6433_v7, 1  ;;  %v1033_v57 = vsel %vm1027_vm1, %v1020_v37, 920167782  ;;  %v651_v39 = vor.u32 %v650_v46, %v649_v3 }
 0x1fb   : > { %v654_v29 = vshll.u32 %v653_v36, 23  ;;  %vm1025_vm13 = vcmp.lt.s32.totalorder %v6433_v7, 2  ;;  %v1029_v2 = vsel %vm1027_vm1, %v1017_v47, 2102212464  ;;  %v1162_v49 = vsub.s32 0, %v5064_v58 }
 0x1fc   : > { %vm1026_vm14 = vcmp.lt.s32.totalorder %v6433_v7, 3  ;;  %v1028_v8 = vsel %vm1024_vm5, %v1008_v12, %v1011_v30  ;;  %v1036_v5 = vsel %vm1024_vm5, %v1014_v63, %v1017_v47  ;;  %v3250_v9 = vpop.eup %3249  ;;  %v1032_v44 = vsel %vm1024_vm5, %v1011_v30, %v1014_v63 }
 0x1fd   : > { %v655_v26 = vor.u32 4788187, %v654_v29  ;;  %v1034_v56 = vsel %vm1026_vm14, %v1017_v47, %v1033_v57  ;;  %v1037_v4 = vsel %vm1027_vm1, %v1023_v16, 1326507024  ;;  %v3252_v28 = vpop.eup %3251  ;;  %v780_v20 = vxor.u32 2147483648, %v3250_v9 }
 0x1fe   : > { %v3049_v22 = vmin.u32 %v1162_v49, %v5064_v58  ;;  %v1030_v50 = vsel %vm1026_vm14, %v1014_v63, %v1029_v2  ;;  %v1038_v54 = vsel %vm1026_vm14, %v1020_v37, %v1037_v4  ;;  %v777_v3 = vxor.u32 2147483648, %v3252_v28 }
 0x1ff   : > { %v656_v46 = vand.u32 2147483647, %v655_v26  ;;  %v658_v36 = vcvt.s32.f32 %v651_v39  ;;  %v1039_v12 = vsel %vm1025_vm13, %v1036_v5, %v1038_v54  ;;  %v781_v29 = vsel %vm779_vm4, %v780_v20, %v3252_v28 }
 0x200   : > { %v1164_v30 = vclz %v3049_v22  ;;  %v1035_v47 = vsel %vm1025_vm13, %v1032_v44, %v1034_v56  ;;  %v1040_v16 = vshll.u32 %v1000_v43, 8  ;;  %v778_v57 = vsel %vm776_vm12, %v3250_v9, %v777_v3 }
 0x201   : > { %v659_v49 = vmul.f32 %v658_v36, %v656_v46  ;;  %v1182_v37 = vsub.s32 4, %v5051_v19  ;;  %v1031_v63 = vsel %vm1025_vm13, %v1028_v8, %v1030_v50  ;;  %v782_v39 = vsel %vm775_vm15, %v778_v57, %v781_v29  ;;  %v6434_v50 = vld [vmem:[#allocation27_spill] sm:$0xff] }
 0x202   : > { %v3050_v2 = vadd.s32 4294967294, %v1164_v30  ;;  %v5091_v5 = vmul.u32.u64.low %v1040_v16, %v1039_v12  ;;  %v5092_v26 = vmul.u32.u64.high %v1040_v16, %v1039_v12, %v5091_v5  ;;  %v783_v44 = vsel %vm772_vm11, nan, %v782_v39 }
 0x203   : > { %v660_v43 = vxor.u32 2147483648, %v659_v49  ;;  %v5096_v56 = vmul.u32.u64.low %v1040_v16, %v1035_v47  ;;  %v5097_v4 = vmul.u32.u64.high %v1040_v16, %v1035_v47, %v5096_v56  ;;  %v2461_v7 = vsel %vm30_vm0, %v4708_v34, %v783_v44 }
 0x204   : > { %v669_v60 = vadd.s32 3, %v665_v42  ;;  %vm1098_vm7 = vcmp.lt.s32.totalorder %v6420_v13, 0  ;;  %vm3051_vm3 = vcmp.lt.s32.totalorder %v3050_v2, 0  ;;  %2574 = vxpose.xlu1.b32.start [1/5] (short) %v2461_v7, 128  ;;  %v1152_v8 = vadd.s32 %v4975_v25, %v4970_v40 }
 0x205   : > { %v661_v61 = vsel %vm578_vm10, %v660_v43, %v659_v49  ;;  %v1167_v9 = vsel %vm3051_vm3, 0, %v3050_v2  ;;  %v1183_v34 = vsel %vm1098_vm7, %v1182_v37, %v5051_v19  ;;  %v1047_v20 = vmul.u32 %v1040_v16, %v1031_v63 }
 0x206   : > { %v664_v51 = vsel %vm5020_vm6, %v4743_v62, %v661_v61  ;;  %v1168_v42 = vsub.s32 32, %v1167_v9  ;;  %v1172_v28 = vsub.s32 4294967266, %v1167_v9  ;;  %vm1049_vm8 = vc.u32 %v5092_v26, %v5096_v56 }
 0x207   : > { %3253 = vcosq.f32 %v664_v51  ;;  %v1050_v22 = vadd.s32 1, %v5097_v4  ;;  %v1512_v40 = vand.u32 2147483647, %v6434_v50  ;;  %v1169_v25 = vshll.u32 %v5064_v58, %v1167_v9 }
 0x208   : > { %3255 = vsinq.f32 %v664_v51  ;;  %v1170_v54 = vshrl.u32 %v1152_v8, %v1168_v42  ;;  %v1173_v19 = vadd.s32 127, %v1172_v28  ;;  %v5124_v3 = vadd.s32 4294967169, %v5013_v14 }
 0x209   : > { %v5126_v18 = vand.u32 3, %v669_v60  ;;  %vm5130_vm9 = vcmp.le.f32.partialorder %v1096_v23, 0.7853982  ;;  %v1051_v36 = vsel %vm1049_vm8, %v1050_v22, %v5097_v4  ;;  %v5139_v14 = vand.u32 8388607, %v1512_v40 }
 0x20a   : > { %v1171_v12 = vor.u32 %v1170_v54, %v1169_v25  ;;  %v1174_v29 = vshll.u32 %v1173_v19, 23  ;;  %v1185_v58 = vsel %vm5130_vm9, 0, %v1183_v34  ;;  %v1052_v30 = vadd.s32 %v1051_v36, %v1047_v20 }
 0x20b   : > { %v1529_v47 = vshll.u32 %v6367_v21, %v4983_v33  ;;  %v1530_v23 = vshrl.u32 %v6373_v35, %v5003_v6  ;;  %v1533_v16 = vshrl.u32 %v6374_v38, %v5003_v6  ;;  %v1532_v37 = vshll.u32 %v6373_v35, %v4983_v33 }
 0x20c   : > { %v1175_v57 = vor.u32 4788187, %v1174_v29  ;;  %v1053_v49 = vadd.s32 536870912, %v1052_v30  ;;  %v1536_v63 = vshrl.u32 %v6375_v17, %v5003_v6  ;;  %v1178_v39 = vcvt.s32.f32 %v1171_v12 }
 0x20d   : > { %v1535_v2 = vshll.u32 %v6374_v38, %v4983_v33  ;;  %v1538_v5 = vshll.u32 %v6375_v17, %v4983_v33  ;;  %v1539_v44 = vshrl.u32 %v6376_v53, %v5003_v6  ;;  %v1541_v7 = vshll.u32 %v6376_v53, %v4983_v33 }
 0x20e   : > { %v1176_v43 = vand.u32 2147483647, %v1175_v57  ;;  %v1054_v4 = vshrl.u32 %v1053_v49, 30  ;;  %v1542_v60 = vshrl.u32 %v6377_v1, %v5003_v6  ;;  %vm672_vm10 = vcmp.eq.s32.totalorder %v5126_v18, 0 }
 0x20f   : > { %vm994_vm6 = vcmp.lt.s32.totalorder %v6428_v27, 0  ;;  %v1531_v61 = vor.u32 %v1530_v23, %v1529_v47  ;;  %v1534_v8 = vor.u32 %v1533_v16, %v1532_v37  ;;  %v1540_v9 = vor.u32 %v1539_v44, %v1538_v5 }
 0x210   : > { %vm671_vm2 = vcmp.lt.s32.totalorder %v5126_v18, 2  ;;  %v1179_v34 = vmul.f32 %v1178_v39, %v1176_v43  ;;  %v1055_v51 = vshll.u32 %v1054_v4, 30  ;;  %v1537_v42 = vor.u32 %v1536_v63, %v1535_v2 }
 0x211   : > { %v1543_v28 = vor.u32 %v1542_v60, %v1541_v7  ;;  %vm668_vm4 = vweird.f32 %v4743_v62  ;;  %vm675_vm12 = vcmp.eq.s32.totalorder %v5126_v18, 2  ;;  %v1189_v33 = vadd.s32 3, %v1185_v58 }
 0x212   : > { %v1520_v20 = vor.u32 8388608, %v5139_v14  ;;  %v1528_v22 = vshrl.u32 %v6367_v21, %v5003_v6  ;;  %v1180_v25 = vxor.u32 2147483648, %v1179_v34  ;;  %v5169_v54 = vsub.s32 %v1052_v30, %v1055_v51 }
 0x213   : > { %vm1544_vm15 = vcmp.lt.s32.totalorder %v4980_v45, 1  ;;  %vm1547_vm1 = vcmp.lt.s32.totalorder %v4980_v45, 4  ;;  %v1078_v19 = vsub.s32 4, %v1054_v4  ;;  %vm1546_vm11 = vcmp.lt.s32.totalorder %v4980_v45, 3 }
 0x214   : > { %v1553_v36 = vsel %vm1547_vm1, %v1540_v9, 920167782  ;;  %v1557_v12 = vsel %vm1547_vm1, %v1543_v28, 1326507024  ;;  %v3254_v29 = vpop.eup %3253  ;;  %v1181_v58 = vsel %vm1098_vm7, %v1180_v25, %v1179_v34  ;;  %v1058_v14 = vsub.s32 0, %v5169_v54 }
 0x215   : > { %v1552_v6 = vsel %vm1544_vm15, %v1531_v61, %v1534_v8  ;;  %v1556_v30 = vsel %vm1544_vm15, %v1534_v8, %v1537_v42  ;;  %v3256_v47 = vpop.eup %3255  ;;  %v676_v23 = vxor.u32 2147483648, %v3254_v29  ;;  %v1184_v16 = vsel %vm5130_vm9, %v6420_v13, %v1181_v58 }
 0x216   : > { %v1549_v57 = vsel %vm1547_vm1, %v1537_v42, 2102212464  ;;  %v1558_v49 = vsel %vm1546_vm11, %v1540_v9, %v1557_v12  ;;  %v673_v37 = vxor.u32 2147483648, %v3256_v47  ;;  %3257 = vcosq.f32 %v1184_v16 }
 0x217   : > { %v3045_v63 = vmin.u32 %v1058_v14, %v5169_v54  ;;  %v1554_v39 = vsel %vm1546_vm11, %v1537_v42, %v1553_v36  ;;  %v677_v2 = vsel %vm675_vm12, %v676_v23, %v3256_v47  ;;  %3259 = vsinq.f32 %v1184_v16  ;;  %v6439_v36 = vld [vmem:[#allocation26_spill] sm:$0xff] }
 0x218   : > { %vm1545_vm5 = vcmp.lt.s32.totalorder %v4980_v45, 2  ;;  %v1548_v46 = vsel %vm1544_vm15, %v1528_v22, %v1531_v61  ;;  %v674_v5 = vsel %vm672_vm10, %v3254_v29, %v673_v37  ;;  %v1079_v43 = vsel %vm994_vm6, %v1078_v19, %v1054_v4 }
 0x219   : > { %v1060_v44 = vclz %v3045_v63  ;;  %v1559_v7 = vsel %vm1545_vm5, %v1556_v30, %v1558_v49  ;;  %v678_v60 = vsel %vm671_vm2, %v674_v5, %v677_v2  ;;  %v1550_v9 = vsel %vm1546_vm11, %v1534_v8, %v1549_v57 }
 0x21a   : > { %v1555_v34 = vsel %vm1545_vm5, %v1552_v6, %v1554_v39  ;;  %v1560_v61 = vshll.u32 %v1520_v20, 8  ;;  %v679_v51 = vsel %vm668_vm4, nan, %v678_v60  ;;  %v5208_v42 = vand.u32 3, %v1189_v33 }
 0x21b   : > { %vm5212_vm13 = vcmp.le.f32.partialorder %v992_v0, 0.7853982  ;;  %v3046_v18 = vadd.s32 4294967294, %v1060_v44  ;;  %v2460_v8 = vsel %vm30_vm0, %v4726_v31, %v679_v51  ;;  %v1551_v62 = vsel %vm1545_vm5, %v1548_v46, %v1550_v9 }
 0x21c   : > { %v1081_v28 = vsel %vm5212_vm13, 0, %v1079_v43  ;;  %v5221_v20 = vmul.u32.u64.low %v1560_v61, %v1559_v7  ;;  %v5222_v22 = vmul.u32.u64.high %v1560_v61, %v1559_v7, %v5221_v20  ;;  %2542 = vxpose.xlu0.b32.start [1/5] (short) %v2460_v8, 128  ;;  %v5232_v25 = vshrl.u32 %v2243_v52, 23 }
 0x21d   : > { %vm3047_vm14 = vcmp.lt.s32.totalorder %v3046_v18, 0  ;;  %v5226_v0 = vmul.u32.u64.low %v1560_v61, %v1555_v34  ;;  %v5227_v33 = vmul.u32.u64.high %v1560_v61, %v1555_v34, %v5226_v0  ;;  %v5235_v31 = vadd.s32 1, %v5124_v3 }
 0x21e   : > { %v1063_v19 = vsel %vm3047_vm14, 0, %v3046_v18  ;;  %v1408_v12 = vand.u32 2147483647, %v6439_v36  ;;  %vm1192_vm7 = vcmp.eq.s32.totalorder %v5208_v42, 0  ;;  %vm1195_vm3 = vcmp.eq.s32.totalorder %v5208_v42, 2 }
 0x21f   : > { %v1048_v45 = vadd.s32 %v5096_v56, %v5092_v26  ;;  %v1064_v29 = vsub.s32 32, %v1063_v19  ;;  %v1068_v58 = vsub.s32 4294967266, %v1063_v19  ;;  %vm1191_vm8 = vcmp.lt.s32.totalorder %v5208_v42, 2 }
 0x220   : > { %v5243_v14 = vadd.s32 3, %v1081_v28  ;;  %v1567_v52 = vmul.u32 %v1560_v61, %v1551_v62  ;;  %vm1569_vm9 = vc.u32 %v5222_v22, %v5226_v0  ;;  %v1426_v3 = vshrl.u32 %v6373_v35, %v4988_v41 }
 0x221   : > { %vm1188_vm10 = vweird.f32 %v6420_v13  ;;  %v1065_v6 = vshll.u32 %v5169_v54, %v1063_v19  ;;  %v1066_v30 = vshrl.u32 %v1048_v45, %v1064_v29  ;;  %v1069_v47 = vadd.s32 127, %v1068_v58 }
 0x222   : > { %v1570_v26 = vadd.s32 1, %v5227_v33  ;;  %v1415_v56 = vand.u32 8388607, %v1408_v12  ;;  %v1425_v23 = vshll.u32 %v6367_v21, %v4837_v55  ;;  %v1428_v16 = vshll.u32 %v6373_v35, %v4837_v55 }
 0x223   : > { %v1429_v57 = vshrl.u32 %v6374_v38, %v4988_v41  ;;  %v1067_v49 = vor.u32 %v1066_v30, %v1065_v6  ;;  %v1070_v37 = vshll.u32 %v1069_v47, 23  ;;  %v1435_v63 = vshrl.u32 %v6376_v53, %v4988_v41  ;;  %v3258_v39 = vpop.eup %3257 }
 0x224   : > { %v1571_v54 = vsel %vm1569_vm9, %v1570_v26, %v5227_v33  ;;  %v1427_v46 = vor.u32 %v1426_v3, %v1425_v23  ;;  %v1431_v5 = vshll.u32 %v6374_v38, %v4837_v55  ;;  %v1432_v44 = vshrl.u32 %v6375_v17, %v4988_v41  ;;  %v3260_v43 = vpop.eup %3259 }
 0x225   : > { %v1572_v2 = vadd.s32 %v1571_v54, %v1567_v52  ;;  %v1196_v7 = vxor.u32 2147483648, %v3258_v39  ;;  %v1071_v60 = vor.u32 4788187, %v1070_v37  ;;  %v1430_v9 = vor.u32 %v1429_v57, %v1428_v16 }
 0x226   : > { %v1434_v34 = vshll.u32 %v6375_v17, %v4837_v55  ;;  %v1193_v61 = vxor.u32 2147483648, %v3260_v43  ;;  %v1437_v18 = vshll.u32 %v6376_v53, %v4837_v55  ;;  %v1438_v8 = vshrl.u32 %v6377_v1, %v4988_v41 }
 0x227   : > { %v1573_v51 = vadd.s32 536870912, %v1572_v2  ;;  %v1197_v28 = vsel %vm1195_vm3, %v1196_v7, %v3260_v43  ;;  %v1072_v20 = vand.u32 2147483647, %v1071_v60  ;;  %v1074_v62 = vcvt.s32.f32 %v1067_v49  ;;  %v6440_v7 = vld [vmem:[#allocation28_spill] sm:$0xff] }
 0x228   : > { %v1436_v33 = vor.u32 %v1435_v63, %v1434_v34  ;;  %v1194_v19 = vsel %vm1192_vm7, %v3258_v39, %v1193_v61  ;;  %v1424_v29 = vshrl.u32 %v6367_v21, %v4988_v41  ;;  %v1433_v58 = vor.u32 %v1432_v44, %v1431_v5 }
 0x229   : > { %v1574_v45 = vshrl.u32 %v1573_v51, 30  ;;  %vm2355_vm2 = vcmp.gt.s32.totalorder %v5235_v31, 0  ;;  %v1198_v55 = vsel %vm1191_vm8, %v1194_v19, %v1197_v28  ;;  %v1075_v52 = vmul.f32 %v1074_v62, %v1072_v20 }
 0x22a   : > { %v1416_v3 = vor.u32 8388608, %v1415_v56  ;;  %v1439_v6 = vor.u32 %v1438_v8, %v1437_v18  ;;  %v1199_v30 = vsel %vm1188_vm10, nan, %v1198_v55  ;;  %vm1440_vm4 = vcmp.lt.s32.totalorder %v4729_v11, 1 }
 0x22b   : > { %v1575_v47 = vshll.u32 %v1574_v45, 30  ;;  %vm1443_vm12 = vcmp.lt.s32.totalorder %v4729_v11, 4  ;;  %2575 = vxpose.xlu1.b32.cont [2/5] (short) %v1199_v30, 128  ;;  %v1076_v26 = vxor.u32 2147483648, %v1075_v52  ;;  %vm1442_vm15 = vcmp.lt.s32.totalorder %v4729_v11, 3 }
 0x22c   : > { %v1448_v41 = vsel %vm1440_vm4, %v1427_v46, %v1430_v9  ;;  %v1449_v23 = vsel %vm1443_vm12, %v1436_v33, 920167782  ;;  %vm1441_vm1 = vcmp.lt.s32.totalorder %v4729_v11, 2  ;;  %v1452_v13 = vsel %vm1440_vm4, %v1430_v9, %v1433_v58 }
 0x22d   : > { %v5287_v16 = vsub.s32 %v1572_v2, %v1575_v47  ;;  %v1450_v42 = vsel %vm1442_vm15, %v1433_v58, %v1449_v23  ;;  %v1077_v56 = vsel %vm994_vm6, %v1076_v26, %v1075_v52  ;;  %v1444_v57 = vsel %vm1440_vm4, %v1424_v29, %v1427_v46 }
 0x22e   : > { %v1445_v49 = vsel %vm1443_vm12, %v1433_v58, 2102212464  ;;  %v1453_v37 = vsel %vm1443_vm12, %v1439_v6, 1326507024  ;;  %v1080_v54 = vsel %vm5212_vm13, %v6428_v27, %v1077_v56  ;;  %v1451_v39 = vsel %vm1441_vm1, %v1448_v41, %v1450_v42 }
 0x22f   : > { %v1578_v63 = vsub.s32 0, %v5287_v16  ;;  %v1454_v2 = vsel %vm1442_vm15, %v1436_v33, %v1453_v37  ;;  %3261 = vcosq.f32 %v1080_v54  ;;  %v1598_v5 = vsub.s32 4, %v1574_v45 }
 0x230   : > { %v1455_v44 = vsel %vm1441_vm1, %v1452_v13, %v1454_v2  ;;  %v1456_v46 = vshll.u32 %v1416_v3, 8  ;;  %3263 = vsinq.f32 %v1080_v54  ;;  %v1446_v4 = vsel %vm1442_vm15, %v1430_v9, %v1445_v49 }
 0x231   : > { %v3065_v43 = vmin.u32 %v1578_v63, %v5287_v16  ;;  %v1928_v60 = vand.u32 2147483647, %v6440_v7  ;;  %v5316_v8 = vshrl.u32 %v4559_v59, 5  ;;  %v5319_v28 = vand.u32 31, %v4559_v59 }
 0x232   : > { %v5308_v34 = vmul.u32.u64.low %v1456_v46, %v1455_v44  ;;  %v5309_v61 = vmul.u32.u64.high %v1456_v46, %v1455_v44, %v5308_v34  ;;  %v5311_v51 = vmul.u32.u64.low %v1456_v46, %v1451_v39  ;;  %v5312_v18 = vmul.u32.u64.high %v1456_v46, %v1451_v39, %v5311_v51 }
 0x233   : > { %v5322_v20 = vand.u32 3, %v5243_v14  ;;  %v1580_v62 = vclz %v3065_v43  ;;  %v5325_v9 = vshrl.u32 %v4464_v15, 5  ;;  %v5328_v33 = vsub.s32 32, %v4562_v24 }
 0x234   : > { %vm1514_vm6 = vcmp.lt.s32.totalorder %v6434_v50, 0  ;;  %v1447_v19 = vsel %vm1441_vm1, %v1444_v57, %v1446_v4  ;;  %v5334_v29 = vadd.s32 4294967169, %v5232_v25  ;;  %v5339_v59 = vsel %vm2355_vm2, %v5235_v31, 0 }
 0x235   : > { %v3066_v14 = vadd.s32 4294967294, %v1580_v62  ;;  %v5343_v15 = vsel %vm1514_vm6, %v1598_v5, %v1574_v45  ;;  %vm5347_vm11 = vcmp.le.f32.partialorder %v1512_v40, 0.7853982  ;;  %vm1465_vm5 = vc.u32 %v5309_v61, %v5311_v51 }
 0x236   : > { %v1466_v11 = vadd.s32 1, %v5312_v18  ;;  %v5356_v25 = vand.u32 8388607, %v1928_v60  ;;  %vm1091_vm13 = vcmp.eq.s32.totalorder %v5322_v20, 2  ;;  %v1568_v31 = vadd.s32 %v5226_v0, %v5222_v22 }
 0x237   : > { %vm3067_vm14 = vcmp.lt.s32.totalorder %v3066_v14, 0  ;;  %v1463_v45 = vmul.u32 %v1456_v46, %v1447_v19  ;;  %vm1088_vm7 = vcmp.eq.s32.totalorder %v5322_v20, 0  ;;  %v1601_v55 = vsel %vm5347_vm11, 0, %v5343_v15 }
 0x238   : > { %v1583_v40 = vsel %vm3067_vm14, 0, %v3066_v14  ;;  %v1467_v52 = vsel %vm1465_vm5, %v1466_v11, %v5312_v18  ;;  %v1946_v3 = vshrl.u32 %v6373_v35, %v5328_v33  ;;  %vm1087_vm3 = vcmp.lt.s32.totalorder %v5322_v20, 2 }
 0x239   : > { %v1584_v6 = vsub.s32 32, %v1583_v40  ;;  %v1588_v30 = vsub.s32 4294967266, %v1583_v40  ;;  %v1468_v47 = vadd.s32 %v1467_v52, %v1463_v45  ;;  %v1945_v22 = vshll.u32 %v6367_v21, %v4562_v24 }
 0x23a   : > { %vm1084_vm8 = vweird.f32 %v6428_v27  ;;  %v1936_v0 = vor.u32 8388608, %v5356_v25  ;;  %v1949_v26 = vshrl.u32 %v6374_v38, %v5328_v33  ;;  %v1952_v41 = vshrl.u32 %v6375_v17, %v5328_v33 }
 0x23b   : > { %v1955_v23 = vshrl.u32 %v6376_v53, %v5328_v33  ;;  %v1585_v42 = vshll.u32 %v5287_v16, %v1583_v40  ;;  %v1586_v13 = vshrl.u32 %v1568_v31, %v1584_v6  ;;  %v1589_v56 = vadd.s32 127, %v1588_v30 }
 0x23c   : > { %v1469_v57 = vadd.s32 536870912, %v1468_v47  ;;  %v1947_v49 = vor.u32 %v1946_v3, %v1945_v22  ;;  %v1948_v37 = vshll.u32 %v6373_v35, %v4562_v24  ;;  %v1954_v54 = vshll.u32 %v6375_v17, %v4562_v24  ;;  %v3262_v39 = vpop.eup %3261 }
 0x23d   : > { %v1958_v63 = vshrl.u32 %v6377_v1, %v5328_v33  ;;  %v1587_v2 = vor.u32 %v1586_v13, %v1585_v42  ;;  %v1590_v5 = vshll.u32 %v1589_v56, 23  ;;  %v1951_v16 = vshll.u32 %v6374_v38, %v4562_v24  ;;  %v3264_v46 = vpop.eup %3263 }
 0x23e   : > { %v1470_v44 = vshrl.u32 %v1469_v57, 30  ;;  %v1092_v43 = vxor.u32 2147483648, %v3262_v39  ;;  %v1950_v4 = vor.u32 %v1949_v26, %v1948_v37  ;;  %v1956_v34 = vor.u32 %v1955_v23, %v1954_v54 }
 0x23f   : > { %v1957_v18 = vshll.u32 %v6376_v53, %v4562_v24  ;;  %v1089_v62 = vxor.u32 2147483648, %v3264_v46  ;;  %v1591_v19 = vor.u32 4788187, %v1590_v5  ;;  %v1953_v15 = vor.u32 %v1952_v41, %v1951_v16 }
 0x240   : > { %v1471_v14 = vshll.u32 %v1470_v44, 30  ;;  %v1093_v11 = vsel %vm1091_vm13, %v1092_v43, %v3264_v46  ;;  %vm1960_vm9 = vcmp.lt.s32.totalorder %v5325_v9, 1  ;;  %vm1963_vm10 = vcmp.lt.s32.totalorder %v5325_v9, 4 }
 0x241   : > { %v1959_v25 = vor.u32 %v1958_v63, %v1957_v18  ;;  %v1090_v31 = vsel %vm1088_vm7, %v3262_v39, %v1089_v62  ;;  %v1592_v45 = vand.u32 2147483647, %v1591_v19  ;;  %v1594_v40 = vcvt.s32.f32 %v1587_v2  ;;  %v6445_v62 = vld [vmem:[#allocation29_spill] sm:$0xff] }
 0x242   : > { %v5396_v52 = vsub.s32 %v1468_v47, %v1471_v14  ;;  %v1094_v24 = vsel %vm1087_vm3, %v1090_v31, %v1093_v11  ;;  %vm1961_vm2 = vcmp.lt.s32.totalorder %v5325_v9, 2  ;;  %vm1962_vm4 = vcmp.lt.s32.totalorder %v5325_v9, 3  ;;  %v5456_v14 = vpop.trf.xlu1 }
 0x243   : > { %v1969_v3 = vsel %vm1963_vm10, %v1956_v34, 920167782  ;;  %v1095_v6 = vsel %vm1084_vm8, nan, %v1094_v24  ;;  %v1595_v30 = vmul.f32 %v1594_v40, %v1592_v45  ;;  %v1494_v26 = vsub.s32 4, %v1470_v44 }
 0x244   : > { %v1474_v22 = vsub.s32 0, %v5396_v52  ;;  %2543 = vxpose.xlu0.b32.cont [2/5] (short) %v1095_v6, 128  ;;  %v1968_v47 = vsel %vm1960_vm9, %v1947_v49, %v1950_v4  ;;  %v1970_v20 = vsel %vm1962_vm4, %v1953_v15, %v1969_v3  ;;  %v1972_v41 = vsel %vm1960_vm9, %v1950_v4, %v1953_v15 }
 0x245   : > { %v1973_v23 = vsel %vm1963_vm10, %v1959_v25, 1326507024  ;;  %v1596_v42 = vxor.u32 2147483648, %v1595_v30  ;;  %v1965_v13 = vsel %vm1963_vm10, %v1953_v15, 2102212464  ;;  %v1605_v57 = vadd.s32 3, %v1601_v55 }
 0x246   : > { %v3061_v27 = vmin.u32 %v1474_v22, %v5396_v52  ;;  %v1974_v56 = vsel %vm1962_vm4, %v1956_v34, %v1973_v23  ;;  %vm1410_vm12 = vcmp.lt.s32.totalorder %v6439_v36, 0  ;;  %v1944_v37 = vshrl.u32 %v6367_v21, %v5328_v33 }
 0x247   : > { %v1975_v54 = vsel %vm1961_vm2, %v1972_v41, %v1974_v56  ;;  %v1597_v63 = vsel %vm1514_vm6, %v1596_v42, %v1595_v30  ;;  %v1971_v2 = vsel %vm1961_vm2, %v1968_v47, %v1970_v20  ;;  %v1976_v5 = vshll.u32 %v1936_v0, 8  ;;  %v5479_v47 = vpop.trf.xlu1 }
 0x248   : > { %v1476_v39 = vclz %v3061_v27  ;;  %v1600_v55 = vsel %vm5347_vm11, %v6434_v50, %v1597_v63  ;;  %v1495_v16 = vsel %vm1410_vm12, %v1494_v26, %v1470_v44  ;;  %v1964_v33 = vsel %vm1960_vm9, %v1944_v37, %v1947_v49 }
 0x249   : > { %v1966_v46 = vsel %vm1962_vm4, %v1950_v4, %v1965_v13  ;;  %3265 = vcosq.f32 %v1600_v55  ;;  %v5438_v34 = vmul.u32.u64.low %v1976_v5, %v1975_v54  ;;  %v5439_v18 = vmul.u32.u64.high %v1976_v5, %v1975_v54, %v5438_v34 }
 0x24a   : > { %v3062_v43 = vadd.s32 4294967294, %v1476_v39  ;;  %3267 = vsinq.f32 %v1600_v55  ;;  %vm5443_vm15 = vcmp.le.f32.partialorder %v1408_v12, 0.7853982  ;;  %v1967_v4 = vsel %vm1961_vm2, %v1964_v33, %v1966_v46 }
 0x24b   : > { %v5447_v0 = vmul.u32.u64.low %v1976_v5, %v1971_v2  ;;  %v5448_v44 = vmul.u32.u64.high %v1976_v5, %v1971_v2, %v5447_v0  ;;  %v1497_v49 = vsel %vm5443_vm15, 0, %v1495_v16  ;;  %v6316_v19 = vand.u32 2147483647, %v6445_v62  ;;  %v5501_v55 = vpop.trf.xlu1 }
 0x24c   : > { %vm3063_vm1 = vcmp.lt.s32.totalorder %v3062_v43, 0  ;;  %v1839_v12 = vsub.s32 32, %v5319_v28  ;;  %v5460_v15 = vadd.s32 1, %v5334_v29  ;;  %v5462_v11 = vand.u32 3, %v1605_v57 }
 0x24d   : > { %v1479_v25 = vsel %vm3063_vm1, 0, %v3062_v43  ;;  %v5465_v31 = vand.u32 31, %v5339_v59  ;;  %v1464_v45 = vadd.s32 %v5311_v51, %v5309_v61  ;;  %v5469_v24 = vadd.s32 3, %v1497_v49 }
 0x24e   : > { %v1480_v9 = vsub.s32 32, %v1479_v25  ;;  %v1484_v40 = vsub.s32 4294967266, %v1479_v25  ;;  %v1983_v3 = vmul.u32 %v1976_v5, %v1967_v4  ;;  %vm1985_vm6 = vc.u32 %v5439_v18, %v5447_v0  ;;  %v5496_v54 = vpop.trf.xlu0 }
 0x24f   : > { %v1986_v29 = vadd.s32 1, %v5448_v44  ;;  %v1481_v6 = vshll.u32 %v5396_v52, %v1479_v25  ;;  %v5477_v26 = vand.u32 8388607, %v6316_v19  ;;  %vm1611_vm11 = vcmp.eq.s32.totalorder %v5462_v11, 2 }
 0x250   : > { %v1482_v30 = vshrl.u32 %v1464_v45, %v1480_v9  ;;  %v1485_v22 = vadd.s32 127, %v1484_v40  ;;  %v1845_v51 = vshrl.u32 %v6374_v38, %v1839_v12  ;;  %v1848_v20 = vshrl.u32 %v6375_v17, %v1839_v12 }
 0x251   : > { %v1987_v61 = vsel %vm1985_vm6, %v1986_v29, %v5448_v44  ;;  %v1851_v41 = vshrl.u32 %v6376_v53, %v1839_v12  ;;  %vm1608_vm5 = vcmp.eq.s32.totalorder %v5462_v11, 0  ;;  %v1850_v27 = vshll.u32 %v6375_v17, %v5319_v28 }
 0x252   : > { %v1483_v52 = vor.u32 %v1482_v30, %v1481_v6  ;;  %v1486_v23 = vshll.u32 %v1485_v22, 23  ;;  %v1988_v42 = vadd.s32 %v1987_v61, %v1983_v3  ;;  %vm1607_vm13 = vcmp.lt.s32.totalorder %v5462_v11, 2  ;;  %v5512_v40 = vpop.trf.xlu0  ;;  %v5517_v30 = vpop.trf.xlu1 }
 0x253   : > { %v1842_v13 = vshrl.u32 %v6373_v35, %v1839_v12  ;;  %v1844_v56 = vshll.u32 %v6373_v35, %v5319_v28  ;;  %v1853_v57 = vshll.u32 %v6376_v53, %v5319_v28  ;;  %v1854_v37 = vshrl.u32 %v6377_v1, %v1839_v12 }
 0x254   : > { %vm1604_vm14 = vweird.f32 %v6434_v50  ;;  %v1487_v63 = vor.u32 4788187, %v1486_v23  ;;  %v1989_v39 = vadd.s32 536870912, %v1988_v42  ;;  %v1847_v2 = vshll.u32 %v6374_v38, %v5319_v28 }
 0x255   : > { %v1852_v5 = vor.u32 %v1851_v41, %v1850_v27  ;;  %vm2251_vm7 = vcmp.gt.s32.totalorder %v5460_v15, 0  ;;  %v1840_v16 = vshrl.u32 %v6367_v21, %v1839_v12  ;;  %v1841_v33 = vshll.u32 %v6367_v21, %v5319_v28 }
 0x256   : > { %v1846_v46 = vor.u32 %v1845_v51, %v1844_v56  ;;  %v1855_v43 = vor.u32 %v1854_v37, %v1853_v57  ;;  %v1488_v34 = vand.u32 2147483647, %v1487_v63  ;;  %v1490_v44 = vcvt.s32.f32 %v1483_v52  ;;  %v3266_v25 = vpop.eup %3265  ;;  %v5537_v56 = vpop.trf.xlu0 }
 0x257   : > { %v5507_v49 = vshrl.u32 %v1989_v39, 30  ;;  %v1849_v4 = vor.u32 %v1848_v20, %v1847_v2  ;;  %v1832_v45 = vor.u32 8388608, %v5477_v26  ;;  %v1843_v9 = vor.u32 %v1842_v13, %v1841_v33  ;;  %v3268_v12 = vpop.eup %3267  ;;  %v5546_v39 = vpop.trf.xlu1 }
 0x258   : > { %vm1856_vm3 = vcmp.lt.s32.totalorder %v5316_v8, 1  ;;  %vm1859_vm8 = vcmp.lt.s32.totalorder %v5316_v8, 4  ;;  %v1612_v3 = vxor.u32 2147483648, %v3266_v25  ;;  %v1491_v28 = vmul.f32 %v1490_v44, %v1488_v34 }
 0x259   : > { %v1991_v29 = vshll.u32 %v5507_v49, 30  ;;  %v1865_v6 = vsel %vm1859_vm8, %v1852_v5, 920167782  ;;  %v1609_v22 = vxor.u32 2147483648, %v3268_v12  ;;  %vm1857_vm9 = vcmp.lt.s32.totalorder %v5316_v8, 2 }
 0x25a   : > { %vm1858_vm10 = vcmp.lt.s32.totalorder %v5316_v8, 3  ;;  %v1869_v26 = vsel %vm1859_vm8, %v1855_v43, 1326507024  ;;  %v1613_v61 = vsel %vm1611_vm11, %v1612_v3, %v3268_v12  ;;  %v1492_v51 = vxor.u32 2147483648, %v1491_v28 }
 0x25b   : > { %v5525_v20 = vsub.s32 %v1988_v42, %v1991_v29  ;;  %v1868_v41 = vsel %vm1856_vm3, %v1846_v46, %v1849_v4  ;;  %v1610_v52 = vsel %vm1608_vm5, %v3266_v25, %v1609_v22  ;;  %v1864_v23 = vsel %vm1856_vm3, %v1843_v9, %v1846_v46  ;;  %v5565_v25 = vpop.trf.xlu0 }
 0x25c   : > { %v1866_v27 = vsel %vm1858_vm10, %v1849_v4, %v1865_v6  ;;  %v1870_v13 = vsel %vm1858_vm10, %v1852_v5, %v1869_v26  ;;  %v1614_v42 = vsel %vm1607_vm13, %v1610_v52, %v1613_v61  ;;  %v1493_v57 = vsel %vm1410_vm12, %v1492_v51, %v1491_v28 }
 0x25d   : > { %v1994_v37 = vsub.s32 0, %v5525_v20  ;;  %v1861_v63 = vsel %vm1859_vm8, %v1849_v4, 2102212464  ;;  %v1615_v2 = vsel %vm1604_vm14, nan, %v1614_v42  ;;  %v1496_v5 = vsel %vm5443_vm15, %v6439_v36, %v1493_v57 }
 0x25e   : > { %v1871_v11 = vsel %vm1857_vm9, %v1868_v41, %v1870_v13  ;;  %v1872_v33 = vshll.u32 %v1832_v45, 8  ;;  %2576 = vxpose.xlu1.b32.cont [3/5] (short) %v1615_v2, 128  ;;  %3269 = vcosq.f32 %v1496_v5  ;;  %v1860_v34 = vsel %vm1856_vm3, %v1840_v16, %v1843_v9  ;;  %v5573_v9 = vpop.trf.xlu1 }
 0x25f   : > { %v3081_v43 = vmin.u32 %v1994_v37, %v5525_v20  ;;  %v1867_v44 = vsel %vm1857_vm9, %v1864_v23, %v1866_v27  ;;  %3271 = vsinq.f32 %v1496_v5  ;;  %v1862_v50 = vsel %vm1858_vm10, %v1846_v46, %v1861_v63 }
 0x260   : > { %v5562_v58 = vmul.u32.u64.low %v1872_v33, %v1871_v11  ;;  %v5563_v4 = vmul.u32.u64.high %v1872_v33, %v1871_v11, %v5562_v58  ;;  %v5570_v45 = vsel %vm2251_vm7, %v5460_v15, 0  ;;  %v2014_v16 = vsub.s32 4, %v5507_v49 }
 0x261   : > { %v1996_v12 = vclz %v3081_v43  ;;  %v5576_v3 = vand.u32 3, %v5469_v24  ;;  %v5578_v28 = vmul.u32.u64.low %v1872_v33, %v1867_v44  ;;  %v5579_v46 = vmul.u32.u64.high %v1872_v33, %v1867_v44, %v5578_v28  ;;  %v5594_v24 = vpop.trf.xlu0 }
 0x262   : > { %v5583_v29 = vsub.s32 32, %v5465_v31  ;;  %v1863_v15 = vsel %vm1857_vm9, %v1860_v34, %v1862_v50  ;;  %v5588_v22 = vand.u32 31, %v5570_v45  ;;  %v5591_v26 = vshrl.u32 %v5339_v59, 5  ;;  %v5605_v8 = vpop.trf.xlu1 }
 0x263   : > { %v3082_v6 = vadd.s32 4294967294, %v1996_v12  ;;  %vm1930_vm2 = vcmp.lt.s32.totalorder %v6440_v7, 0  ;;  %v1984_v61 = vadd.s32 %v5447_v0, %v5439_v18  ;;  %vm1881_vm12 = vc.u32 %v5563_v4, %v5578_v28 }
 0x264   : > { %v5601_v51 = vsel %vm1930_vm2, %v2014_v16, %v5507_v49  ;;  %vm1507_vm15 = vcmp.eq.s32.totalorder %v5576_v3, 2  ;;  %v1879_v41 = vmul.u32 %v1872_v33, %v1863_v15  ;;  %v1882_v52 = vadd.s32 1, %v5579_v46 }
 0x265   : > { %vm3083_vm4 = vcmp.lt.s32.totalorder %v3082_v6, 0  ;;  %v6317_v23 = vand.u32 2147483647, %v4733_v48  ;;  %vm1504_vm1 = vcmp.eq.s32.totalorder %v5576_v3, 0  ;;  %vm5613_vm6 = vcmp.le.f32.partialorder %v1928_v60, 0.7853982  ;;  %v5628_v63 = vpop.trf.xlu0 }
 0x266   : > { %v1999_v59 = vsel %vm3083_vm4, 0, %v3082_v6  ;;  %v2362_v27 = vshrl.u32 %v6373_v35, %v5583_v29  ;;  %v2365_v13 = vshrl.u32 %v6374_v38, %v5583_v29  ;;  %vm1503_vm11 = vcmp.lt.s32.totalorder %v5576_v3, 2  ;;  %v5633_v43 = vpop.trf.xlu1 }
 0x267   : > { %v2000_v0 = vsub.s32 32, %v1999_v59  ;;  %v2004_v49 = vsub.s32 4294967266, %v1999_v59  ;;  %v2001_v42 = vshll.u32 %v5525_v20, %v1999_v59  ;;  %v1883_v57 = vsel %vm1881_vm12, %v1882_v52, %v5579_v46 }
 0x268   : > { %v2368_v60 = vshrl.u32 %v6375_v17, %v5583_v29  ;;  %v2371_v37 = vshrl.u32 %v6376_v53, %v5583_v29  ;;  %vm1500_vm5 = vweird.f32 %v6439_v36  ;;  %v1884_v11 = vadd.s32 %v1883_v57, %v1879_v41 }
 0x269   : > { %v2002_v2 = vshrl.u32 %v1984_v61, %v2000_v0  ;;  %v2005_v5 = vadd.s32 127, %v2004_v49  ;;  %v2370_v33 = vshll.u32 %v6375_v17, %v5465_v31  ;;  %v2361_v20 = vshll.u32 %v6367_v21, %v5465_v31  ;;  %v5647_v52 = vpop.trf.xlu0 }
 0x26a   : > { %v2364_v34 = vshll.u32 %v6373_v35, %v5465_v31  ;;  %v2367_v44 = vshll.u32 %v6374_v38, %v5465_v31  ;;  %v2374_v50 = vshrl.u32 %v6377_v1, %v5583_v29  ;;  %v1885_v16 = vadd.s32 536870912, %v1884_v11 }
 0x26b   : > { %v2003_v58 = vor.u32 %v2002_v2, %v2001_v42  ;;  %v2006_v12 = vshll.u32 %v2005_v5, 23  ;;  %v2372_v46 = vor.u32 %v2371_v37, %v2370_v33  ;;  %v3270_v6 = vpop.eup %3269  ;;  %v2351_v15 = vand.u32 8388607, %v6317_v23  ;;  %v5651_v2 = vpop.trf.xlu1 }
 0x26c   : > { %v2363_v61 = vor.u32 %v2362_v27, %v2361_v20  ;;  %v2366_v59 = vor.u32 %v2365_v13, %v2364_v34  ;;  %v2373_v41 = vshll.u32 %v6376_v53, %v5465_v31  ;;  %v3272_v0 = vpop.eup %3271  ;;  %v1508_v49 = vxor.u32 2147483648, %v3270_v6 }
 0x26d   : > { %v2007_v57 = vor.u32 4788187, %v2006_v12  ;;  %v5649_v19 = vshrl.u32 %v1885_v16, 30  ;;  %v2369_v42 = vor.u32 %v2368_v60, %v2367_v44  ;;  %v1505_v37 = vxor.u32 2147483648, %v3272_v0 }
 0x26e   : > { %v2010_v5 = vcvt.s32.f32 %v2003_v58  ;;  %v2375_v33 = vor.u32 %v2374_v50, %v2373_v41  ;;  %vm2379_vm13 = vcmp.lt.s32.totalorder %v5591_v26, 4  ;;  %v1509_v27 = vsel %vm1507_vm15, %v1508_v49, %v3272_v0  ;;  %v5665_v50 = vpop.trf.xlu0 }
 0x26f   : > { %v2008_v13 = vand.u32 2147483647, %v2007_v57  ;;  %v1887_v31 = vshll.u32 %v5649_v19, 30  ;;  %v2385_v20 = vsel %vm2379_vm13, %v2372_v46, 920167782  ;;  %v1506_v34 = vsel %vm1504_vm1, %v3270_v6, %v1505_v37  ;;  %v5672_v41 = vpop.trf.xlu1 }
 0x270   : > { %v2017_v60 = vsel %vm5613_vm6, 0, %v5601_v51  ;;  %v2352_v44 = vor.u32 8388608, %v2351_v15  ;;  %vm2376_vm14 = vcmp.lt.s32.totalorder %v5591_v26, 1  ;;  %v1510_v58 = vsel %vm1503_vm11, %v1506_v34, %v1509_v27 }
 0x271   : > { %v2011_v12 = vmul.f32 %v2010_v5, %v2008_v13  ;;  %v5669_v16 = vsub.s32 %v1884_v11, %v1887_v31  ;;  %vm2378_vm7 = vcmp.lt.s32.totalorder %v5591_v26, 3  ;;  %v1511_v6 = vsel %vm1500_vm5, nan, %v1510_v58 }
 0x272   : > { %v2384_v51 = vsel %vm2376_vm14, %v2363_v61, %v2366_v59  ;;  %v2386_v15 = vsel %vm2378_vm7, %v2369_v42, %v2385_v20  ;;  %v2388_v3 = vsel %vm2376_vm14, %v2366_v59, %v2369_v42  ;;  %2544 = vxpose.xlu0.b32.cont [3/5] (short) %v1511_v6, 128  ;;  %v2360_v49 = vshrl.u32 %v6367_v21, %v5583_v29  ;;  %v5692_v27 = vpop.trf.xlu0 }
 0x273   : > { %v2012_v0 = vxor.u32 2147483648, %v2011_v12  ;;  %v1890_v11 = vsub.s32 0, %v5669_v16  ;;  %v2389_v36 = vsel %vm2379_vm13, %v2375_v33, 1326507024  ;;  %vm2377_vm3 = vcmp.lt.s32.totalorder %v5591_v26, 2  ;;  %v5701_v20 = vpop.trf.xlu1 }
 0x274   : > { %v2381_v57 = vsel %vm2379_vm13, %v2369_v42, 2102212464  ;;  %v2390_v37 = vsel %vm2378_vm7, %v2372_v46, %v2389_v36  ;;  %v2392_v5 = vshll.u32 %v2352_v44, 8  ;;  %v2387_v29 = vsel %vm2377_vm3, %v2384_v51, %v2386_v15 }
 0x275   : > { %v2013_v13 = vsel %vm1930_vm2, %v2012_v0, %v2011_v12  ;;  %v3077_v31 = vmin.u32 %v1890_v11, %v5669_v16  ;;  %v2391_v33 = vsel %vm2377_vm3, %v2388_v3, %v2390_v37  ;;  %v2021_v42 = vadd.s32 3, %v2017_v60 }
 0x276   : > { %v2016_v46 = vsel %vm5613_vm6, %v6440_v7, %v2013_v13  ;;  %v5706_v34 = vmul.u32.u64.low %v2392_v5, %v2391_v33  ;;  %v5707_v44 = vmul.u32.u64.high %v2392_v5, %v2391_v33, %v5706_v34  ;;  %v2380_v12 = vsel %vm2376_vm14, %v2360_v49, %v2363_v61  ;;  %v5717_v3 = vpop.trf.xlu0 }
 0x277   : > { %3273 = vcosq.f32 %v2016_v46  ;;  %v1892_v58 = vclz %v3077_v31  ;;  %v2382_v6 = vsel %vm2378_vm7, %v2366_v59, %v2381_v57  ;;  %v5719_v60 = vpop.trf.xlu1  ;;  %v2255_v0 = vsub.s32 32, %v5588_v22 }
 0x278   : > { %3275 = vsinq.f32 %v2016_v46  ;;  %v5713_v51 = vmul.u32.u64.low %v2392_v5, %v2387_v29  ;;  %v5714_v15 = vmul.u32.u64.high %v2392_v5, %v2387_v29, %v5713_v51  ;;  %v5722_v11 = vand.u32 3, %v2021_v42 }
 0x279   : > { %v3078_v18 = vadd.s32 4294967294, %v1892_v58  ;;  %v2383_v61 = vsel %vm2377_vm3, %v2380_v12, %v2382_v6  ;;  %v5727_v49 = vshrl.u32 %v5570_v45, 5  ;;  %v1880_v59 = vadd.s32 %v5578_v28, %v5563_v4 }
 0x27a   : > { %vm2401_vm9 = vc.u32 %v5707_v44, %v5713_v51  ;;  %v2402_v37 = vadd.s32 1, %v5714_v15  ;;  %v6318_v13 = vand.u32 2147483647, %v4701_v32  ;;  %v5736_v31 = vpop.trf.xlu0  ;;  %v2399_v45 = vmul.u32 %v2392_v5, %v2383_v61 }
 0x27b   : > { %vm3079_vm8 = vcmp.lt.s32.totalorder %v3078_v18, 0  ;;  %v2257_v33 = vshll.u32 %v6367_v21, %v5588_v22  ;;  %v5740_v4 = vpop.trf.xlu1  ;;  %vm2027_vm10 = vcmp.eq.s32.totalorder %v5722_v11, 2  ;;  %v2258_v42 = vshrl.u32 %v6373_v35, %v2255_v0 }
 0x27c   : > { %v1895_v36 = vsel %vm3079_vm8, 0, %v3078_v18  ;;  %v2403_v46 = vsel %vm2401_vm9, %v2402_v37, %v5714_v15  ;;  %v2266_v34 = vshll.u32 %v6375_v17, %v5588_v22  ;;  %vm2024_vm2 = vcmp.eq.s32.totalorder %v5722_v11, 0 }
 0x27d   : > { %v1896_v26 = vsub.s32 32, %v1895_v36  ;;  %v1900_v29 = vsub.s32 4294967266, %v1895_v36  ;;  %v1897_v28 = vshll.u32 %v5669_v16, %v1895_v36  ;;  %v2404_v12 = vadd.s32 %v2403_v46, %v2399_v45 }
 0x27e   : > { %v2267_v6 = vshrl.u32 %v6376_v53, %v2255_v0  ;;  %vm2023_vm4 = vcmp.lt.s32.totalorder %v5722_v11, 2  ;;  %v2261_v18 = vshrl.u32 %v6374_v38, %v2255_v0  ;;  %v2264_v16 = vshrl.u32 %v6375_v17, %v2255_v0  ;;  %v5756_v36 = vpop.trf.xlu0 }
 0x27f   : > { %v1898_v58 = vshrl.u32 %v1880_v59, %v1896_v26  ;;  %v1901_v5 = vadd.s32 127, %v1900_v29  ;;  %v2269_v15 = vshll.u32 %v6376_v53, %v5588_v22  ;;  %v2270_v61 = vshrl.u32 %v6377_v1, %v2255_v0  ;;  %v5759_v45 = vpop.trf.xlu1 }
 0x280   : > { %vm2020_vm12 = vweird.f32 %v6440_v7  ;;  %v2405_v26 = vadd.s32 536870912, %v2404_v12  ;;  %v2268_v29 = vor.u32 %v2267_v6, %v2266_v34  ;;  %vm1826_vm15 = vcmp.lt.s32.totalorder %v6445_v62, 0 }
 0x281   : > { %v1899_v59 = vor.u32 %v1898_v58, %v1897_v28  ;;  %v1902_v37 = vshll.u32 %v1901_v5, 23  ;;  %v2247_v17 = vand.u32 8388607, %v6318_v13  ;;  %v2256_v46 = vshrl.u32 %v6367_v21, %v2255_v0 }
 0x282   : > { %v2260_v53 = vshll.u32 %v6373_v35, %v5588_v22  ;;  %v2263_v1 = vshll.u32 %v6374_v38, %v5588_v22  ;;  %v6448_v28 = vand.u32 2147483647, %v6445_v62  ;;  %v5775_v5 = vshrl.u32 %v2405_v26, 30  ;;  %v5778_v35 = vpop.trf.xlu0 }
 0x283   : > { %v1903_v34 = vor.u32 4788187, %v1902_v37  ;;  %v2259_v6 = vor.u32 %v2258_v42, %v2257_v33  ;;  %v2271_v23 = vor.u32 %v2270_v61, %v2269_v15  ;;  %v1906_v57 = vcvt.s32.f32 %v1899_v59  ;;  %v5791_v15 = vpop.trf.xlu1 }
 0x284   : > { %vm5771_vm1 = vcmp.le.f32.partialorder %v6448_v28, 0.7853982  ;;  %v3274_v13 = vpop.eup %3273  ;;  %v2262_v21 = vor.u32 %v2261_v18, %v2260_v53  ;;  %v2265_v0 = vor.u32 %v2264_v16, %v2263_v1  ;;  %vm2275_vm6 = vcmp.lt.s32.totalorder %v5727_v49, 4 }
 0x285   : > { %v3276_v38 = vpop.eup %3275  ;;  %v2028_v22 = vxor.u32 2147483648, %v3274_v13  ;;  %v1904_v10 = vand.u32 2147483647, %v1903_v34  ;;  %v2407_v28 = vshll.u32 %v5775_v5, 30  ;;  %v2281_v37 = vsel %vm2275_vm6, %v2268_v29, 920167782 }
 0x286   : > { %v2025_v26 = vxor.u32 2147483648, %v3276_v38  ;;  %v2248_v32 = vor.u32 8388608, %v2247_v17  ;;  %vm2272_vm11 = vcmp.lt.s32.totalorder %v5727_v49, 1  ;;  %vm2274_vm5 = vcmp.lt.s32.totalorder %v5727_v49, 3 }
 0x287   : > { %v2029_v33 = vsel %vm2027_vm10, %v2028_v22, %v3276_v38  ;;  %v1907_v42 = vmul.f32 %v1906_v57, %v1904_v10  ;;  %v5787_v18 = vsub.s32 %v2404_v12, %v2407_v28  ;;  %v2285_v16 = vsel %vm2275_vm6, %v2271_v23, 1326507024  ;;  %v2507_v10 = vpop.trf.xlu0 }
 0x288   : > { %v2026_v61 = vsel %vm2024_vm2, %v3274_v13, %v2025_v26  ;;  %v2280_v59 = vsel %vm2272_vm11, %v2259_v6, %v2262_v21  ;;  %v2282_v17 = vsel %vm2274_vm5, %v2265_v0, %v2281_v37  ;;  %v2284_v53 = vsel %vm2272_vm11, %v2262_v21, %v2265_v0 }
 0x289   : > { %v2030_v57 = vsel %vm2023_vm4, %v2026_v61, %v2029_v33  ;;  %v1908_v12 = vxor.u32 2147483648, %v1907_v42  ;;  %v2410_v23 = vsub.s32 0, %v5787_v18  ;;  %vm2273_vm13 = vcmp.lt.s32.totalorder %v5727_v49, 2 }
 0x28a   : > { %v2031_v13 = vsel %vm2020_vm12, nan, %v2030_v57  ;;  %v2277_v1 = vsel %vm2275_vm6, %v2265_v0, 2102212464  ;;  %v2286_v34 = vsel %vm2274_vm5, %v2268_v29, %v2285_v16  ;;  %v5811_v38 = vshll.u32 %v2248_v32, 8  ;;  %v2541_v16 = vpop.trf.xlu1 }
 0x28b   : > { %2577 = vxpose.xlu1.b32.cont [4/5] (short) %v2031_v13, 128  ;;  %v1909_v11 = vsel %vm1826_vm15, %v1908_v12, %v1907_v42  ;;  %v3097_v22 = vmin.u32 %v2410_v23, %v5787_v18  ;;  %v2283_v28 = vsel %vm2273_vm13, %v2280_v59, %v2282_v17  ;;  %v2287_v7 = vsel %vm2273_vm13, %v2284_v53, %v2286_v34  ;;  %v2508_v37 = vpop.trf.xlu0 }
 0x28c   : > { %v1912_v0 = vsel %vm5771_vm1, %v6445_v62, %v1909_v11  ;;  %v5824_v32 = vmul.u32.u64.low %v5811_v38, %v2287_v7  ;;  %v5825_v29 = vmul.u32.u64.high %v5811_v38, %v2287_v7, %v5824_v32  ;;  %v2276_v33 = vsel %vm2272_vm11, %v2256_v46, %v2259_v6 }
 0x28d   : > { %3277 = vcosq.f32 %v1912_v0  ;;  %v2412_v26 = vclz %v3097_v22  ;;  %v2278_v42 = vsel %vm2274_vm5, %v2262_v21, %v2277_v1  ;;  %v6451_v61 = vsub.s32 4, %v5649_v19 }
 0x28e   : > { %3279 = vsinq.f32 %v1912_v0  ;;  %v5837_v17 = vmul.u32.u64.low %v5811_v38, %v2283_v28  ;;  %v5838_v53 = vmul.u32.u64.high %v5811_v38, %v2283_v28, %v5837_v17  ;;  %vm2607_vm14 = vcmask 318464  }
 0x28f   : > { %v1911_v59 = vsel %vm1826_vm15, %v6451_v61, %v5649_v19  ;;  %v3098_v57 = vadd.s32 4294967294, %v2412_v26  ;;  %v2279_v46 = vsel %vm2273_vm13, %v2276_v33, %v2278_v42  ;;  %2624 = vst.msk [vmem:[%s5845_s10 + $0x80] sm:$0xff] %vm2607_vm14, %v5456_v14  ;;  %2608 = vst.msk [vmem:[%s5845_s10] sm:$0xff] %vm2607_vm14, %v5496_v54  ;;  %v2509_v19 = vpop.trf.xlu0  ;;  %vm1916_vm2 = vweird.f32 %v6445_v62 }
 0x290   : > { %2625 = vst.msk [vmem:[%s5845_s10 + $0x88] sm:$0xff] %vm2607_vm14, %v5479_v47  ;;  %2609 = vst.msk [vmem:[%s5845_s10 + $0x8] sm:$0xff] %vm2607_vm14, %v5512_v40  ;;  %v1913_v14 = vsel %vm5771_vm1, 0, %v1911_v59  ;;  %vm2297_vm3 = vc.u32 %v5825_v29, %v5837_v17  ;;  %v2298_v54 = vadd.s32 1, %v5838_v53  ;;  %vm2346_vm4 = vcmp.lt.s32.totalorder %v4733_v48, 0 }
 0x291   : > { %2626 = vst.msk [vmem:[%s5845_s10 + $0x90] sm:$0xff] %vm2607_vm14, %v5501_v55  ;;  %2610 = vst.msk [vmem:[%s5845_s10 + $0x10] sm:$0xff] %vm2607_vm14, %v5537_v56  ;;  %vm3099_vm7 = vcmp.lt.s32.totalorder %v3098_v57, 0  ;;  %v2400_v55 = vadd.s32 %v5713_v51, %v5707_v44  ;;  %v2295_v56 = vmul.u32 %v5811_v38, %v2279_v46  ;;  %v2296_v22 = vadd.s32 %v5837_v17, %v5825_v29 }
 0x292   : > { %2627 = vst.msk [vmem:[%s5845_s10 + $0x98] sm:$0xff] %vm2607_vm14, %v5517_v30  ;;  %2611 = vst.msk [vmem:[%s5845_s10 + $0x18] sm:$0xff] %vm2607_vm14, %v5565_v25  ;;  %v2415_v47 = vsel %vm3099_vm7, 0, %v3098_v57  ;;  %v2299_v25 = vsel %vm2297_vm3, %v2298_v54, %v5838_v53  ;;  %vm2436_vm5 = vweird.f32 %v4733_v48 }
 0x293   : > { %2628 = vst.msk [vmem:[%s5845_s10 + $0xa0] sm:$0xff] %vm2607_vm14, %v5546_v39  ;;  %2612 = vst.msk [vmem:[%s5845_s10 + $0x20] sm:$0xff] %vm2607_vm14, %v5594_v24  ;;  %v2416_v40 = vsub.s32 32, %v2415_v47  ;;  %v2420_v30 = vsub.s32 4294967266, %v2415_v47  ;;  %v1917_v39 = vadd.s32 3, %v1913_v14 }
 0x294   : > { %2629 = vst.msk [vmem:[%s5845_s10 + $0xa8] sm:$0xff] %vm2607_vm14, %v5573_v9  ;;  %2613 = vst.msk [vmem:[%s5845_s10 + $0x28] sm:$0xff] %vm2607_vm14, %v5628_v63  ;;  %v2417_v9 = vshll.u32 %v5787_v18, %v2415_v47  ;;  %v2300_v63 = vadd.s32 %v2299_v25, %v2295_v56 }
 0x295   : > { %2630 = vst.msk [vmem:[%s5845_s10 + $0xb0] sm:$0xff] %vm2607_vm14, %v5605_v8  ;;  %2614 = vst.msk [vmem:[%s5845_s10 + $0x30] sm:$0xff] %vm2607_vm14, %v5647_v52  ;;  %v2418_v24 = vshrl.u32 %v2400_v55, %v2416_v40  ;;  %v2421_v8 = vadd.s32 127, %v2420_v30  ;;  %v6453_v40 = vld [vmem:[#allocation36_spill] sm:$0xff] }
 0x296   : > { %2631 = vst.msk [vmem:[%s5845_s10 + $0xb8] sm:$0xff] %vm2607_vm14, %v5633_v43  ;;  %2615 = vst.msk [vmem:[%s5845_s10 + $0x38] sm:$0xff] %vm2607_vm14, %v5665_v50  ;;  %v1918_v50 = vand.u32 3, %v1917_v39  ;;  %vm2242_vm13 = vcmp.lt.s32.totalorder %v6453_v40, 0  ;;  %v6454_v56 = vand.u32 2147483647, %v6453_v40 }
 0x297   : > { %2632 = vst.msk [vmem:[%s5845_s10 + $0xc0] sm:$0xff] %vm2607_vm14, %v5651_v2  ;;  %2616 = vst.msk [vmem:[%s5845_s10 + $0x40] sm:$0xff] %vm2607_vm14, %v5692_v27  ;;  %v2419_v43 = vor.u32 %v2418_v24, %v2417_v9  ;;  %v2422_v52 = vshll.u32 %v2421_v8, 23  ;;  %v2301_v2 = vadd.s32 536870912, %v2300_v63 }
 0x298   : > { %2633 = vst.msk [vmem:[%s5845_s10 + $0xc8] sm:$0xff] %vm2607_vm14, %v5672_v41  ;;  %2617 = vst.msk [vmem:[%s5845_s10 + $0x48] sm:$0xff] %vm2607_vm14, %v5717_v3  ;;  %vm1923_vm8 = vcmp.eq.s32.totalorder %v1918_v50, 2  ;;  %vm1920_vm9 = vcmp.eq.s32.totalorder %v1918_v50, 0  ;;  %vm1919_vm10 = vcmp.lt.s32.totalorder %v1918_v50, 2 }
 0x299   : > { %2634 = vst.msk [vmem:[%s5845_s10 + $0xd0] sm:$0xff] %vm2607_vm14, %v5701_v20  ;;  %2618 = vst.msk [vmem:[%s5845_s10 + $0x50] sm:$0xff] %vm2607_vm14, %v5736_v31  ;;  %v2423_v41 = vor.u32 4788187, %v2422_v52  ;;  %v5949_v27 = vshrl.u32 %v2301_v2, 30 }
 0x29a   : > { %2635 = vst.msk [vmem:[%s5845_s10 + $0xd8] sm:$0xff] %vm2607_vm14, %v5719_v60  ;;  %2619 = vst.msk [vmem:[%s5845_s10 + $0x58] sm:$0xff] %vm2607_vm14, %v5756_v36  ;;  %v3278_v20 = vpop.eup %3277  ;;  %v2426_v60 = vcvt.s32.f32 %v2419_v43  ;;  %vm2241_vm7 = vcmp.le.f32.partialorder %v6454_v56, 0.7853982 }
 0x29b   : > { %2636 = vst.msk [vmem:[%s5845_s10 + $0xe0] sm:$0xff] %vm2607_vm14, %v5740_v4  ;;  %2620 = vst.msk [vmem:[%s5845_s10 + $0x60] sm:$0xff] %vm2607_vm14, %v5778_v35  ;;  %v3280_v44 = vpop.eup %3279  ;;  %v1924_v51 = vxor.u32 2147483648, %v3278_v20  ;;  %v2424_v3 = vand.u32 2147483647, %v2423_v41  ;;  %v2303_v49 = vshll.u32 %v5949_v27, 30 }
 0x29c   : > { %2637 = vst.msk [vmem:[%s5845_s10 + $0xe8] sm:$0xff] %vm2607_vm14, %v5759_v45  ;;  %2621 = vst.msk [vmem:[%s5845_s10 + $0x68] sm:$0xff] %vm2607_vm14, %v2507_v10  ;;  %v1921_v31 = vxor.u32 2147483648, %v3280_v44  ;;  %v6452_v10 = vand.u32 2147483647, %v4733_v48  ;;  %v2326_v30 = vsub.s32 4, %v5949_v27 }
 0x29d   : > { %2638 = vst.msk [vmem:[%s5845_s10 + $0xf0] sm:$0xff] %vm2607_vm14, %v5791_v15  ;;  %2622 = vst.msk [vmem:[%s5845_s10 + $0x70] sm:$0xff] %vm2607_vm14, %v2508_v37  ;;  %v1925_v4 = vsel %vm1923_vm8, %v1924_v51, %v3280_v44  ;;  %v2427_v36 = vmul.f32 %v2426_v60, %v2424_v3  ;;  %v2304_v45 = vsub.s32 %v2300_v63, %v2303_v49  ;;  %v2430_v15 = vsub.s32 4, %v5775_v5 }
 0x29e   : > { %2639 = vst.msk [vmem:[%s5845_s10 + $0xf8] sm:$0xff] %vm2607_vm14, %v2541_v16  ;;  %2623 = vst.msk [vmem:[%s5845_s10 + $0x78] sm:$0xff] %vm2607_vm14, %v2509_v19  ;;  %v1922_v58 = vsel %vm1920_vm9, %v3278_v20, %v1921_v31  ;;  %vm2345_vm12 = vcmp.le.f32.partialorder %v6452_v10, 0.7853982  ;;  %v2327_v9 = vsel %vm2242_vm13, %v2326_v30, %v5949_v27 }
 0x29f   : > { %v1926_v6 = vsel %vm1919_vm10, %v1922_v58, %v1925_v4  ;;  %v2428_v21 = vxor.u32 2147483648, %v2427_v36  ;;  %v2306_v35 = vsub.s32 0, %v2304_v45  ;;  %v2431_v62 = vsel %vm2346_vm4, %v2430_v15, %v5775_v5 }
 0x2a0   : > { %v1927_v18 = vsel %vm1916_vm2, nan, %v1926_v6  ;;  %v2433_v38 = vsel %vm2345_vm12, 0, %v2431_v62  ;;  %v2329_v24 = vsel %vm2241_vm7, 0, %v2327_v9  ;;  %vm2332_vm10 = vweird.f32 %v6453_v40 }
 0x2a1   : > { %2545 = vxpose.xlu0.b32.cont [4/5] (short) %v1927_v18, 128  ;;  %v2429_v12 = vsel %vm2346_vm4, %v2428_v21, %v2427_v36  ;;  %v3093_v23 = vmin.u32 %v2306_v35, %v2304_v45  ;;  %v2437_v0 = vadd.s32 3, %v2433_v38 }
 0x2a2   : > { %v2432_v13 = vsel %vm2345_vm12, %v4733_v48, %v2429_v12  ;;  %v2333_v48 = vadd.s32 3, %v2329_v24 }
 0x2a3   : > { %3281 = vcosq.f32 %v2432_v13  ;;  %v2308_v1 = vclz %v3093_v23  ;;  %v2438_v16 = vand.u32 3, %v2437_v0 }
 0x2a4   : > { %3283 = vsinq.f32 %v2432_v13  ;;  %v2334_v8 = vand.u32 3, %v2333_v48 }
 0x2a5   : > { %v3094_v34 = vadd.s32 4294967294, %v2308_v1  ;;  %vm2443_vm1 = vcmp.eq.s32.totalorder %v2438_v16, 2  ;;  %vm2440_vm6 = vcmp.eq.s32.totalorder %v2438_v16, 0  ;;  %vm2439_vm11 = vcmp.lt.s32.totalorder %v2438_v16, 2 }
 0x2a6   : > { %vm2339_vm3 = vcmp.eq.s32.totalorder %v2334_v8, 2  ;;  %vm2336_vm8 = vcmp.eq.s32.totalorder %v2334_v8, 0  ;;  %vm2335_vm9 = vcmp.lt.s32.totalorder %v2334_v8, 2 }
 0x2a7   : > { %vm3095_vm15 = vcmp.lt.s32.totalorder %v3094_v34, 0 }
 0x2a8   : > { %v2311_v11 = vsel %vm3095_vm15, 0, %v3094_v34 }
 0x2a9   : > { %v2312_v28 = vsub.s32 32, %v2311_v11  ;;  %v2316_v7 = vsub.s32 4294967266, %v2311_v11  ;;  %v2313_v32 = vshll.u32 %v2304_v45, %v2311_v11 }
 0x2ab   : > { %v2314_v37 = vshrl.u32 %v2296_v22, %v2312_v28  ;;  %v2317_v26 = vadd.s32 127, %v2316_v7 }
 0x2ad   : > { %v2315_v33 = vor.u32 %v2314_v37, %v2313_v32  ;;  %v2318_v42 = vshll.u32 %v2317_v26, 23 }
 0x2af   : > { %v2319_v61 = vor.u32 4788187, %v2318_v42  ;;  %v2322_v46 = vcvt.s32.f32 %v2315_v33 }
 0x2b0   : > { %v3282_v59 = vpop.eup %3281 }
 0x2b1   : > { %v3284_v5 = vpop.eup %3283  ;;  %v2444_v53 = vxor.u32 2147483648, %v3282_v59  ;;  %v2320_v57 = vand.u32 2147483647, %v2319_v61 }
 0x2b2   : > { %v2441_v19 = vxor.u32 2147483648, %v3284_v5 }
 0x2b3   : > { %v2445_v14 = vsel %vm2443_vm1, %v2444_v53, %v3284_v5  ;;  %v2323_v29 = vmul.f32 %v2322_v46, %v2320_v57 }
 0x2b4   : > { %v2442_v17 = vsel %vm2440_vm6, %v3282_v59, %v2441_v19 }
 0x2b5   : > { %v2446_v47 = vsel %vm2439_vm11, %v2442_v17, %v2445_v14  ;;  %v2324_v54 = vxor.u32 2147483648, %v2323_v29 }
 0x2b6   : > { %v2447_v55 = vsel %vm2436_vm5, nan, %v2446_v47 }
 0x2b7   : > { %2578 = vxpose.xlu1.b32.end [5/5] (short) %v2447_v55, 128  ;;  %v2325_v39 = vsel %vm2242_vm13, %v2324_v54, %v2323_v29 }
 0x2b8   : > { %v2328_v25 = vsel %vm2241_vm7, %v6453_v40, %v2325_v39 }
 0x2b9   : > { %3285 = vcosq.f32 %v2328_v25 }
 0x2ba   : > { %3287 = vsinq.f32 %v2328_v25 }
 0x2c6   : > { %v3286_v63 = vpop.eup %3285 }
 0x2c7   : > { %v3288_v43 = vpop.eup %3287  ;;  %v2340_v52 = vxor.u32 2147483648, %v3286_v63 }
 0x2c8   : > { %v2337_v2 = vxor.u32 2147483648, %v3288_v43 }
 0x2c9   : > { %v2341_v50 = vsel %vm2339_vm3, %v2340_v52, %v3288_v43 }
 0x2ca   : > { %v2338_v41 = vsel %vm2336_vm8, %v3286_v63, %v2337_v2 }
 0x2cb   : > { %v2342_v27 = vsel %vm2335_vm9, %v2338_v41, %v2341_v50 }
 0x2cc   : > { %v2343_v20 = vsel %vm2332_vm10, nan, %v2342_v27 }
 0x2cd   : > { %2546 = vxpose.xlu0.b32.end [5/5] (short) %v2343_v20, 128 }
 0x323   : > { %v2590_v44 = vpop.trf.xlu1 }
 0x324   : > { %2656 = vst.msk [vmem:[%s5845_s10 + $0x180] sm:$0xff] %vm2607_vm14, %v2590_v44 }
 0x327   : > { %v2591_v51 = vpop.trf.xlu1 }
 0x328   : > { %2657 = vst.msk [vmem:[%s5845_s10 + $0x188] sm:$0xff] %vm2607_vm14, %v2591_v51 }
 0x32b   : > { %v2592_v3 = vpop.trf.xlu1 }
 0x32c   : > { %2658 = vst.msk [vmem:[%s5845_s10 + $0x190] sm:$0xff] %vm2607_vm14, %v2592_v3 }
 0x32f   : > { %v2593_v60 = vpop.trf.xlu1 }
 0x330   : > { %2659 = vst.msk [vmem:[%s5845_s10 + $0x198] sm:$0xff] %vm2607_vm14, %v2593_v60 }
 0x333   : > { %v2594_v49 = vpop.trf.xlu1 }
 0x334   : > { %2660 = vst.msk [vmem:[%s5845_s10 + $0x1a0] sm:$0xff] %vm2607_vm14, %v2594_v49 }
 0x337   : > { %v2595_v31 = vpop.trf.xlu1 }
 0x338   : > { %2661 = vst.msk [vmem:[%s5845_s10 + $0x1a8] sm:$0xff] %vm2607_vm14, %v2595_v31 }
 0x339   : > { %v2558_v4 = vpop.trf.xlu0 }
 0x33a   : > { %2640 = vst.msk [vmem:[%s5845_s10 + $0x100] sm:$0xff] %vm2607_vm14, %v2558_v4 }
 0x33b   : > { %v2596_v36 = vpop.trf.xlu1 }
 0x33c   : > { %2662 = vst.msk [vmem:[%s5845_s10 + $0x1b0] sm:$0xff] %vm2607_vm14, %v2596_v36 }
 0x33d   : > { %v2559_v45 = vpop.trf.xlu0 }
 0x33e   : > { %2641 = vst.msk [vmem:[%s5845_s10 + $0x108] sm:$0xff] %vm2607_vm14, %v2559_v45 }
 0x33f   : > { %v2597_v58 = vpop.trf.xlu1 }
 0x340   : > { %2663 = vst.msk [vmem:[%s5845_s10 + $0x1b8] sm:$0xff] %vm2607_vm14, %v2597_v58 }
 0x341   : > { %v2560_v6 = vpop.trf.xlu0 }
 0x342   : > { %2642 = vst.msk [vmem:[%s5845_s10 + $0x110] sm:$0xff] %vm2607_vm14, %v2560_v6 }
 0x343   : > { %v2598_v21 = vpop.trf.xlu1 }
 0x344   : > { %2664 = vst.msk [vmem:[%s5845_s10 + $0x1c0] sm:$0xff] %vm2607_vm14, %v2598_v21 }
 0x345   : > { %v2561_v35 = vpop.trf.xlu0 }
 0x346   : > { %2643 = vst.msk [vmem:[%s5845_s10 + $0x118] sm:$0xff] %vm2607_vm14, %v2561_v35 }
 0x347   : > { %v2599_v18 = vpop.trf.xlu1 }
 0x348   : > { %2665 = vst.msk [vmem:[%s5845_s10 + $0x1c8] sm:$0xff] %vm2607_vm14, %v2599_v18 }
 0x349   : > { %v2562_v15 = vpop.trf.xlu0 }
 0x34a   : > { %2644 = vst.msk [vmem:[%s5845_s10 + $0x120] sm:$0xff] %vm2607_vm14, %v2562_v15 }
 0x34b   : > { %v2600_v10 = vpop.trf.xlu1 }
 0x34c   : > { %2666 = vst.msk [vmem:[%s5845_s10 + $0x1d0] sm:$0xff] %vm2607_vm14, %v2600_v10 }
 0x34d   : > { %v2563_v12 = vpop.trf.xlu0 }
 0x34e   : > { %2645 = vst.msk [vmem:[%s5845_s10 + $0x128] sm:$0xff] %vm2607_vm14, %v2563_v12 }
 0x34f   : > { %v2601_v23 = vpop.trf.xlu1 }
 0x350   : > { %2667 = vst.msk [vmem:[%s5845_s10 + $0x1d8] sm:$0xff] %vm2607_vm14, %v2601_v23 }
 0x351   : > { %v2564_v13 = vpop.trf.xlu0 }
 0x352   : > { %2646 = vst.msk [vmem:[%s5845_s10 + $0x130] sm:$0xff] %vm2607_vm14, %v2564_v13 }
 0x353   : > { %v2602_v1 = vpop.trf.xlu1 }
 0x354   : > { %2668 = vst.msk [vmem:[%s5845_s10 + $0x1e0] sm:$0xff] %vm2607_vm14, %v2602_v1 }
 0x355   : > { %v2565_v62 = vpop.trf.xlu0 }
 0x356   : > { %2647 = vst.msk [vmem:[%s5845_s10 + $0x138] sm:$0xff] %vm2607_vm14, %v2565_v62 }
 0x357   : > { %v2603_v34 = vpop.trf.xlu1 }
 0x358   : > { %2669 = vst.msk [vmem:[%s5845_s10 + $0x1e8] sm:$0xff] %vm2607_vm14, %v2603_v34 }
 0x359   : > { %v2566_v38 = vpop.trf.xlu0 }
 0x35a   : > { %2648 = vst.msk [vmem:[%s5845_s10 + $0x140] sm:$0xff] %vm2607_vm14, %v2566_v38 }
 0x35b   : > { %v2604_v11 = vpop.trf.xlu1 }
 0x35c   : > { %2670 = vst.msk [vmem:[%s5845_s10 + $0x1f0] sm:$0xff] %vm2607_vm14, %v2604_v11 }
 0x35d   : > { %v2567_v22 = vpop.trf.xlu0 }
 0x35e   : > { %2649 = vst.msk [vmem:[%s5845_s10 + $0x148] sm:$0xff] %vm2607_vm14, %v2567_v22 }
 0x35f   : > { %v2605_v28 = vpop.trf.xlu1 }
 0x360   : > { %2671 = vst.msk [vmem:[%s5845_s10 + $0x1f8] sm:$0xff] %vm2607_vm14, %v2605_v28 }
 0x361   : > { %v2568_v7 = vpop.trf.xlu0 }
 0x362   : > { %2650 = vst.msk [vmem:[%s5845_s10 + $0x150] sm:$0xff] %vm2607_vm14, %v2568_v7 }
 0x365   : > { %v2569_v0 = vpop.trf.xlu0 }
 0x366   : > { %2651 = vst.msk [vmem:[%s5845_s10 + $0x158] sm:$0xff] %vm2607_vm14, %v2569_v0 }
 0x369   : > { %v2570_v32 = vpop.trf.xlu0 }
 0x36a   : > { %2652 = vst.msk [vmem:[%s5845_s10 + $0x160] sm:$0xff] %vm2607_vm14, %v2570_v32 }
 0x36d   : > { %v2571_v37 = vpop.trf.xlu0 }
 0x36e   : > { %2653 = vst.msk [vmem:[%s5845_s10 + $0x168] sm:$0xff] %vm2607_vm14, %v2571_v37 }
 0x371   : > { %v2572_v26 = vpop.trf.xlu0 }
 0x372   : > { %2654 = vst.msk [vmem:[%s5845_s10 + $0x170] sm:$0xff] %vm2607_vm14, %v2572_v26  ;;  %39 = sbr.rel (!%p37_p0) target bundleno = 8 (0x8), region = 79 }
 0x375   : > { %v2573_v33 = vpop.trf.xlu0 }
 0x376   : > { %2655 = vst.msk [vmem:[%s5845_s10 + $0x178] sm:$0xff] %vm2607_vm14, %v2573_v33 }
 0x37d   :  { %v2850_v42 = vld [vmem:[#allocation2] sm:$0xff]  ;;  %v2852_v16 = vld [vmem:[#allocation2 + $0x8] sm:$0xff]  ;;  %v2854_v61 = vld [vmem:[#allocation2 + $0x10] sm:$0xff] }
 0x37e   :  { %2851 = vst [vmem:[%s6264_s3] sm:$0xff] %v2850_v42  ;;  %2853 = vst [vmem:[%s6264_s3 + $0x8] sm:$0xff] %v2852_v16  ;;  %v2856_v59 = vld [vmem:[#allocation2 + $0x18] sm:$0xff]  ;;  %v2858_v5 = vld [vmem:[#allocation2 + $0x20] sm:$0xff] }
 0x37f   :  { %2855 = vst [vmem:[%s6264_s3 + $0x10] sm:$0xff] %v2854_v61  ;;  %v2860_v53 = vld [vmem:[#allocation2 + $0x28] sm:$0xff]  ;;  %2857 = vst [vmem:[%s6264_s3 + $0x18] sm:$0xff] %v2856_v59  ;;  %v2862_v57 = vld [vmem:[#allocation2 + $0x30] sm:$0xff] }
 0x380   :  { %2859 = vst [vmem:[%s6264_s3 + $0x20] sm:$0xff] %v2858_v5  ;;  %2861 = vst [vmem:[%s6264_s3 + $0x28] sm:$0xff] %v2860_v53  ;;  %v2864_v46 = vld [vmem:[#allocation2 + $0x38] sm:$0xff]  ;;  %v2866_v19 = vld [vmem:[#allocation2 + $0x40] sm:$0xff] }
 0x381   :  { %2863 = vst [vmem:[%s6264_s3 + $0x30] sm:$0xff] %v2862_v57  ;;  %2865 = vst [vmem:[%s6264_s3 + $0x38] sm:$0xff] %v2864_v46  ;;  %v2868_v14 = vld [vmem:[#allocation2 + $0x48] sm:$0xff]  ;;  %v2870_v29 = vld [vmem:[#allocation2 + $0x50] sm:$0xff] }
 0x382   :  { %2867 = vst [vmem:[%s6264_s3 + $0x40] sm:$0xff] %v2866_v19  ;;  %v2872_v17 = vld [vmem:[#allocation2 + $0x58] sm:$0xff]  ;;  %2869 = vst [vmem:[%s6264_s3 + $0x48] sm:$0xff] %v2868_v14  ;;  %v2874_v47 = vld [vmem:[#allocation2 + $0x60] sm:$0xff] }
 0x383   :  { %2871 = vst [vmem:[%s6264_s3 + $0x50] sm:$0xff] %v2870_v29  ;;  %2873 = vst [vmem:[%s6264_s3 + $0x58] sm:$0xff] %v2872_v17  ;;  %v2876_v54 = vld [vmem:[#allocation2 + $0x68] sm:$0xff]  ;;  %v2878_v55 = vld [vmem:[#allocation2 + $0x70] sm:$0xff] }
 0x384   :  { %2875 = vst [vmem:[%s6264_s3 + $0x60] sm:$0xff] %v2874_v47  ;;  %2877 = vst [vmem:[%s6264_s3 + $0x68] sm:$0xff] %v2876_v54  ;;  %v2880_v40 = vld [vmem:[#allocation2 + $0x78] sm:$0xff]  ;;  %v2882_v30 = vld [vmem:[#allocation2 + $0x80] sm:$0xff] }
 0x385   :  { %2879 = vst [vmem:[%s6264_s3 + $0x70] sm:$0xff] %v2878_v55  ;;  %v2884_v56 = vld [vmem:[#allocation2 + $0x88] sm:$0xff]  ;;  %2881 = vst [vmem:[%s6264_s3 + $0x78] sm:$0xff] %v2880_v40  ;;  %v2886_v39 = vld [vmem:[#allocation2 + $0x90] sm:$0xff] }
 0x386   :  { %2883 = vst [vmem:[%s6264_s3 + $0x80] sm:$0xff] %v2882_v30  ;;  %2885 = vst [vmem:[%s6264_s3 + $0x88] sm:$0xff] %v2884_v56  ;;  %v2888_v25 = vld [vmem:[#allocation2 + $0x98] sm:$0xff]  ;;  %v2890_v9 = vld [vmem:[#allocation2 + $0xa0] sm:$0xff] }
 0x387   :  { %2887 = vst [vmem:[%s6264_s3 + $0x90] sm:$0xff] %v2886_v39  ;;  %2889 = vst [vmem:[%s6264_s3 + $0x98] sm:$0xff] %v2888_v25  ;;  %v2892_v24 = vld [vmem:[#allocation2 + $0xa8] sm:$0xff]  ;;  %v2894_v48 = vld [vmem:[#allocation2 + $0xb0] sm:$0xff] }
 0x388   :  { %2891 = vst [vmem:[%s6264_s3 + $0xa0] sm:$0xff] %v2890_v9  ;;  %v2896_v8 = vld [vmem:[#allocation2 + $0xb8] sm:$0xff]  ;;  %2893 = vst [vmem:[%s6264_s3 + $0xa8] sm:$0xff] %v2892_v24  ;;  %v2898_v63 = vld [vmem:[#allocation2 + $0xc0] sm:$0xff] }
 0x389   :  { %2895 = vst [vmem:[%s6264_s3 + $0xb0] sm:$0xff] %v2894_v48  ;;  %2897 = vst [vmem:[%s6264_s3 + $0xb8] sm:$0xff] %v2896_v8  ;;  %v2900_v43 = vld [vmem:[#allocation2 + $0xc8] sm:$0xff]  ;;  %v2902_v52 = vld [vmem:[#allocation2 + $0xd0] sm:$0xff] }
 0x38a   :  { %2899 = vst [vmem:[%s6264_s3 + $0xc0] sm:$0xff] %v2898_v63  ;;  %2901 = vst [vmem:[%s6264_s3 + $0xc8] sm:$0xff] %v2900_v43  ;;  %v2904_v2 = vld [vmem:[#allocation2 + $0xd8] sm:$0xff]  ;;  %v2906_v50 = vld [vmem:[#allocation2 + $0xe0] sm:$0xff] }
 0x38b   :  { %2903 = vst [vmem:[%s6264_s3 + $0xd0] sm:$0xff] %v2902_v52  ;;  %v2908_v41 = vld [vmem:[#allocation2 + $0xe8] sm:$0xff]  ;;  %2905 = vst [vmem:[%s6264_s3 + $0xd8] sm:$0xff] %v2904_v2  ;;  %v2910_v27 = vld [vmem:[#allocation2 + $0xf0] sm:$0xff] }
 0x38c   :  { %2907 = vst [vmem:[%s6264_s3 + $0xe0] sm:$0xff] %v2906_v50  ;;  %2909 = vst [vmem:[%s6264_s3 + $0xe8] sm:$0xff] %v2908_v41  ;;  %v2912_v20 = vld [vmem:[#allocation2 + $0xf8] sm:$0xff]  ;;  %v2914_v44 = vld [vmem:[#allocation2 + $0x100] sm:$0xff] }
 0x38d   :  { %2911 = vst [vmem:[%s6264_s3 + $0xf0] sm:$0xff] %v2910_v27  ;;  %2913 = vst [vmem:[%s6264_s3 + $0xf8] sm:$0xff] %v2912_v20  ;;  %v2916_v51 = vld [vmem:[#allocation2 + $0x108] sm:$0xff]  ;;  %v2918_v3 = vld [vmem:[#allocation2 + $0x110] sm:$0xff] }
 0x38e   :  { %2915 = vst [vmem:[%s6264_s3 + $0x100] sm:$0xff] %v2914_v44  ;;  %v2920_v60 = vld [vmem:[#allocation2 + $0x118] sm:$0xff]  ;;  %2917 = vst [vmem:[%s6264_s3 + $0x108] sm:$0xff] %v2916_v51  ;;  %v2922_v49 = vld [vmem:[#allocation2 + $0x120] sm:$0xff] }
 0x38f   :  { %2919 = vst [vmem:[%s6264_s3 + $0x110] sm:$0xff] %v2918_v3  ;;  %2921 = vst [vmem:[%s6264_s3 + $0x118] sm:$0xff] %v2920_v60  ;;  %v2924_v31 = vld [vmem:[#allocation2 + $0x128] sm:$0xff]  ;;  %v2926_v4 = vld [vmem:[#allocation2 + $0x130] sm:$0xff] }
 0x390   :  { %2923 = vst [vmem:[%s6264_s3 + $0x120] sm:$0xff] %v2922_v49  ;;  %2925 = vst [vmem:[%s6264_s3 + $0x128] sm:$0xff] %v2924_v31  ;;  %v2928_v36 = vld [vmem:[#allocation2 + $0x138] sm:$0xff]  ;;  %v2930_v45 = vld [vmem:[#allocation2 + $0x140] sm:$0xff] }
 0x391   :  { %2927 = vst [vmem:[%s6264_s3 + $0x130] sm:$0xff] %v2926_v4  ;;  %v2932_v58 = vld [vmem:[#allocation2 + $0x148] sm:$0xff]  ;;  %2929 = vst [vmem:[%s6264_s3 + $0x138] sm:$0xff] %v2928_v36  ;;  %v2934_v6 = vld [vmem:[#allocation2 + $0x150] sm:$0xff] }
 0x392   :  { %2931 = vst [vmem:[%s6264_s3 + $0x140] sm:$0xff] %v2930_v45  ;;  %2933 = vst [vmem:[%s6264_s3 + $0x148] sm:$0xff] %v2932_v58  ;;  %v2936_v21 = vld [vmem:[#allocation2 + $0x158] sm:$0xff]  ;;  %v2938_v35 = vld [vmem:[#allocation2 + $0x160] sm:$0xff] }
 0x393   :  { %2935 = vst [vmem:[%s6264_s3 + $0x150] sm:$0xff] %v2934_v6  ;;  %2937 = vst [vmem:[%s6264_s3 + $0x158] sm:$0xff] %v2936_v21  ;;  %v2940_v18 = vld [vmem:[#allocation2 + $0x168] sm:$0xff]  ;;  %v2942_v15 = vld [vmem:[#allocation2 + $0x170] sm:$0xff] }
 0x394   :  { %2939 = vst [vmem:[%s6264_s3 + $0x160] sm:$0xff] %v2938_v35  ;;  %v2944_v10 = vld [vmem:[#allocation2 + $0x178] sm:$0xff]  ;;  %2941 = vst [vmem:[%s6264_s3 + $0x168] sm:$0xff] %v2940_v18  ;;  %v2946_v12 = vld [vmem:[#allocation2 + $0x180] sm:$0xff] }
 0x395   :  { %2943 = vst [vmem:[%s6264_s3 + $0x170] sm:$0xff] %v2942_v15  ;;  %2945 = vst [vmem:[%s6264_s3 + $0x178] sm:$0xff] %v2944_v10  ;;  %v2948_v23 = vld [vmem:[#allocation2 + $0x188] sm:$0xff]  ;;  %v2950_v13 = vld [vmem:[#allocation2 + $0x190] sm:$0xff] }
 0x396   :  { %2947 = vst [vmem:[%s6264_s3 + $0x180] sm:$0xff] %v2946_v12  ;;  %2949 = vst [vmem:[%s6264_s3 + $0x188] sm:$0xff] %v2948_v23  ;;  %v2952_v1 = vld [vmem:[#allocation2 + $0x198] sm:$0xff]  ;;  %v2954_v62 = vld [vmem:[#allocation2 + $0x1a0] sm:$0xff] }
 0x397   :  { %2951 = vst [vmem:[%s6264_s3 + $0x190] sm:$0xff] %v2950_v13  ;;  %v2956_v34 = vld [vmem:[#allocation2 + $0x1a8] sm:$0xff]  ;;  %2953 = vst [vmem:[%s6264_s3 + $0x198] sm:$0xff] %v2952_v1  ;;  %v2958_v38 = vld [vmem:[#allocation2 + $0x1b0] sm:$0xff] }
 0x398   :  { %2955 = vst [vmem:[%s6264_s3 + $0x1a0] sm:$0xff] %v2954_v62  ;;  %2957 = vst [vmem:[%s6264_s3 + $0x1a8] sm:$0xff] %v2956_v34  ;;  %v2960_v11 = vld [vmem:[#allocation2 + $0x1b8] sm:$0xff]  ;;  %v2962_v22 = vld [vmem:[#allocation2 + $0x1c0] sm:$0xff] }
 0x399   :  { %2959 = vst [vmem:[%s6264_s3 + $0x1b0] sm:$0xff] %v2958_v38  ;;  %2961 = vst [vmem:[%s6264_s3 + $0x1b8] sm:$0xff] %v2960_v11  ;;  %v2964_v28 = vld [vmem:[#allocation2 + $0x1c8] sm:$0xff]  ;;  %v2966_v7 = vld [vmem:[#allocation2 + $0x1d0] sm:$0xff] }
 0x39a   :  { %2963 = vst [vmem:[%s6264_s3 + $0x1c0] sm:$0xff] %v2962_v22  ;;  %v2968_v0 = vld [vmem:[#allocation2 + $0x1d8] sm:$0xff]  ;;  %2965 = vst [vmem:[%s6264_s3 + $0x1c8] sm:$0xff] %v2964_v28  ;;  %v2970_v32 = vld [vmem:[#allocation2 + $0x1e0] sm:$0xff] }
 0x39b   :  { %2967 = vst [vmem:[%s6264_s3 + $0x1d0] sm:$0xff] %v2966_v7  ;;  %2969 = vst [vmem:[%s6264_s3 + $0x1d8] sm:$0xff] %v2968_v0  ;;  %v2972_v37 = vld [vmem:[#allocation2 + $0x1e8] sm:$0xff]  ;;  %v2974_v26 = vld [vmem:[#allocation2 + $0x1f0] sm:$0xff] }
 0x39c   :  { %2971 = vst [vmem:[%s6264_s3 + $0x1e0] sm:$0xff] %v2970_v32  ;;  %2973 = vst [vmem:[%s6264_s3 + $0x1e8] sm:$0xff] %v2972_v37  ;;  %v2976_v33 = vld [vmem:[#allocation2 + $0x1f8] sm:$0xff]  ;;  %v2978_v42 = vld [vmem:[#allocation2 + $0x200] sm:$0xff] }
 0x39d   :  { %2975 = vst [vmem:[%s6264_s3 + $0x1f0] sm:$0xff] %v2974_v26  ;;  %v2980_v16 = vld [vmem:[#allocation2 + $0x208] sm:$0xff]  ;;  %2977 = vst [vmem:[%s6264_s3 + $0x1f8] sm:$0xff] %v2976_v33  ;;  %v2982_v61 = vld [vmem:[#allocation2 + $0x210] sm:$0xff] }
 0x39e   :  { %2979 = vst [vmem:[%s6264_s3 + $0x200] sm:$0xff] %v2978_v42  ;;  %2981 = vst [vmem:[%s6264_s3 + $0x208] sm:$0xff] %v2980_v16  ;;  %v2984_v59 = vld [vmem:[#allocation2 + $0x218] sm:$0xff]  ;;  %v2986_v5 = vld [vmem:[#allocation2 + $0x220] sm:$0xff] }
 0x39f   :  { %2983 = vst [vmem:[%s6264_s3 + $0x210] sm:$0xff] %v2982_v61  ;;  %2985 = vst [vmem:[%s6264_s3 + $0x218] sm:$0xff] %v2984_v59  ;;  %v2988_v53 = vld [vmem:[#allocation2 + $0x228] sm:$0xff]  ;;  %v2990_v57 = vld [vmem:[#allocation2 + $0x230] sm:$0xff] }
 0x3a0   :  { %2987 = vst [vmem:[%s6264_s3 + $0x220] sm:$0xff] %v2986_v5  ;;  %v2992_v46 = vld [vmem:[#allocation2 + $0x238] sm:$0xff]  ;;  %2989 = vst [vmem:[%s6264_s3 + $0x228] sm:$0xff] %v2988_v53  ;;  %v2994_v19 = vld [vmem:[#allocation2 + $0x240] sm:$0xff] }
 0x3a1   :  { %2991 = vst [vmem:[%s6264_s3 + $0x230] sm:$0xff] %v2990_v57  ;;  %2993 = vst [vmem:[%s6264_s3 + $0x238] sm:$0xff] %v2992_v46  ;;  %v2996_v14 = vld [vmem:[#allocation2 + $0x248] sm:$0xff]  ;;  %v2998_v29 = vld [vmem:[#allocation2 + $0x250] sm:$0xff] }
 0x3a2   :  { %2995 = vst [vmem:[%s6264_s3 + $0x240] sm:$0xff] %v2994_v19  ;;  %2997 = vst [vmem:[%s6264_s3 + $0x248] sm:$0xff] %v2996_v14 }
 0x3a3   :  { %2999 = vst [vmem:[%s6264_s3 + $0x250] sm:$0xff] %v2998_v29 }

</bundles_post_ra>
